<compile_context>
chip_gen: v5e
topology: v5e:2x2
jax: 0.10.0
libtpu: 0.0.40
codegen_flags: <defaults>
</compile_context>

<pallas_src>
import jax
import jax.numpy as jnp
from jax.experimental import pallas as pl
from jax.experimental.pallas import tpu as pltpu

LANES = 128  # channel padding of inter-stage activations (TPU lane width)


# --------------------------------------------------------------------- kernels
def _make_stem_kernel(*, H, W, Cin, C0, OH, OW):
    """Fused conv0 stem: conv3x3/s2/p1 (Cin->C0)+BN+ReLU | dw3x3/s1/p1 +BN+ReLU |
    conv1x1 (C0 -> lane-padded Cout)+BN.  One batch element per grid step."""
    KH = KW = 3
    M = OH * OW

    def kernel(x_ref, w0_ref, b0_ref, w1_ref, b1_ref, w2_ref, b2_ref,
               o_ref, xp_ref, pat_ref, hp_ref):
        # ---- in-kernel zero padding of the input (pad = 1) ----
        xp_ref[...] = jnp.zeros_like(xp_ref)
        xp_ref[1:1 + H, 1:1 + W, :] = x_ref[...].astype(jnp.float32)

        # ---- 3x3 stride-2 conv as a single im2col matmul ----
        # Build patches [M, KH*KW*Cin] in VMEM scratch, then one MXU matmul.
        for kh in range(KH):
            for kw in range(KW):
                k = kh * KW + kw
                tap = xp_ref[pl.ds(kh, OH, 2), pl.ds(kw, OW, 2), :]   # (OH, OW, Cin)
                pat_ref[:, k * Cin:(k + 1) * Cin] = tap.reshape(M, Cin)
        h0 = jnp.dot(pat_ref[...], w0_ref[...],
                     preferred_element_type=jnp.float32) + b0_ref[...]
        h0 = jnp.maximum(h0, 0.0)                                     # (M, C0)

        # ---- depthwise 3x3, stride 1, pad 1 (+BN+ReLU); pad in VMEM scratch ----
        hp_ref[...] = jnp.zeros_like(hp_ref)
        hp_ref[1:1 + OH, 1:1 + OW, :] = h0.reshape(OH, OW, C0)
        w1 = w1_ref[...]                                              # (9, C0), loaded once
        acc = jnp.zeros((OH, OW, C0), jnp.float32)
        for kh in range(KH):
            for kw in range(KW):
                acc = acc + hp_ref[kh:kh + OH, kw:kw + OW, :] * w1[kh * KW + kw]
        h1 = jnp.maximum(acc + b1_ref[...], 0.0)                      # (OH, OW, C0)

        # ---- pointwise projection (+BN, no ReLU), lane-padded output channels ----
        y = jnp.dot(h1.reshape(M, C0), w2_ref[...],
                    preferred_element_type=jnp.float32) + b2_ref[...]
        o_ref[...] = y.astype(o_ref.dtype)                            # (M, LANES)

    return kernel


def _make_ir_kernel(*, Hin, Win, mid, stride, OH, OW, residual):
    """Fused MNASNet InvertedResidual: pw1(+BN+ReLU) | dw3x3/s{1,2}/p1(+BN+ReLU) |
    pw2(+BN) [+ residual].  HBM activations are lane-padded to LANES channels."""
    KH = KW = 3
    Mout = OH * OW

    def kernel(x_ref, w1_ref, b1_ref, wd_ref, bd_ref, w2_ref, b2_ref,
               o_ref, hp_ref):
        x = x_ref[...].astype(jnp.float32)                            # (Hin*Win, LANES)

        # ---- pointwise expansion: single matmul over all pixels ----
        h = jnp.dot(x, w1_ref[...], preferred_element_type=jnp.float32) + b1_ref[...]
        h = jnp.maximum(h, 0.0)                                       # (Hin*Win, mid)

        # ---- depthwise 3x3 (stride 1 or 2), pad 1; padding in VMEM scratch ----
        hp_ref[...] = jnp.zeros_like(hp_ref)
        hp_ref[1:1 + Hin, 1:1 + Win, :] = h.reshape(Hin, Win, mid)
        wd = wd_ref[...]                                              # (9, mid), loaded once
        acc = jnp.zeros((OH, OW, mid), jnp.float32)
        for kh in range(KH):
            for kw in range(KW):
                if stride == 1:
                    win = hp_ref[kh:kh + OH, kw:kw + OW, :]
                else:
                    win = hp_ref[pl.ds(kh, OH, stride), pl.ds(kw, OW, stride), :]
                acc = acc + win * wd[kh * KW + kw]
        h2 = jnp.maximum(acc + bd_ref[...], 0.0)                      # (OH, OW, mid)

        # ---- pointwise projection (+BN, no ReLU) and optional residual add ----
        y = jnp.dot(h2.reshape(Mout, mid), w2_ref[...],
                    preferred_element_type=jnp.float32) + b2_ref[...]
        if residual:
            y = y + x
        o_ref[...] = y.astype(o_ref.dtype)                            # (Mout, LANES)

    return kernel


# -------------------------------------------------------------------- wrappers
def _stem_call(x_nhwc, w0, b0, w1, b1, w2, b2):
    """x: [N,H,W,Cin] -> lane-padded activations [N, (H/2)*(W/2), LANES]."""
    N, H, W, Cin = x_nhwc.shape
    OH, OW = (H - 1) // 2 + 1, (W - 1) // 2 + 1
    C0 = w0.shape[-1]
    M = OH * OW
    kernel = _make_stem_kernel(H=H, W=W, Cin=Cin, C0=C0, OH=OH, OW=OW)
    return pl.pallas_call(
        kernel,
        out_shape=jax.ShapeDtypeStruct((N, M, LANES), x_nhwc.dtype),
        grid=(N,),
        in_specs=[
            pl.BlockSpec((None, H, W, Cin), lambda n: (n, 0, 0, 0)),
            pl.BlockSpec((9 * Cin, C0), lambda n: (0, 0)),
            pl.BlockSpec((1, C0), lambda n: (0, 0)),
            pl.BlockSpec((9, C0), lambda n: (0, 0)),
            pl.BlockSpec((1, C0), lambda n: (0, 0)),
            pl.BlockSpec((C0, LANES), lambda n: (0, 0)),
            pl.BlockSpec((1, LANES), lambda n: (0, 0)),
        ],
        out_specs=pl.BlockSpec((None, M, LANES), lambda n: (n, 0, 0)),
        scratch_shapes=[
            pltpu.VMEM((H + 2, W + 2, Cin), jnp.float32),    # padded input
            pltpu.VMEM((M, 9 * Cin), jnp.float32),           # im2col patches
            pltpu.VMEM((OH + 2, OW + 2, C0), jnp.float32),   # padded depthwise input
        ],
        compiler_params=pltpu.CompilerParams(dimension_semantics=("parallel",)),
    )(x_nhwc, w0, b0, w1, b1, w2, b2)


def _ir_call(x, w1, b1, wd, bd, w2, b2, *, Hin, Win, stride, residual):
    """x: [N, Hin*Win, LANES] -> [N, OH*OW, LANES]."""
    N = x.shape[0]
    mid = w1.shape[-1]
    OH = (Hin - 1) // stride + 1
    OW = (Win - 1) // stride + 1
    Mout = OH * OW
    kernel = _make_ir_kernel(Hin=Hin, Win=Win, mid=mid, stride=stride,
                             OH=OH, OW=OW, residual=residual)
    return pl.pallas_call(
        kernel,
        out_shape=jax.ShapeDtypeStruct((N, Mout, LANES), x.dtype),
        grid=(N,),
        in_specs=[
            pl.BlockSpec((None, Hin * Win, LANES), lambda n: (n, 0, 0)),
            pl.BlockSpec((LANES, mid), lambda n: (0, 0)),
            pl.BlockSpec((1, mid), lambda n: (0, 0)),
            pl.BlockSpec((9, mid), lambda n: (0, 0)),
            pl.BlockSpec((1, mid), lambda n: (0, 0)),
            pl.BlockSpec((mid, LANES), lambda n: (0, 0)),
            pl.BlockSpec((1, LANES), lambda n: (0, 0)),
        ],
        out_specs=pl.BlockSpec((None, Mout, LANES), lambda n: (n, 0, 0)),
        scratch_shapes=[pltpu.VMEM((Hin + 2, Win + 2, mid), jnp.float32)],
        compiler_params=pltpu.CompilerParams(dimension_semantics=("parallel",)),
    )(x, w1, b1, wd, bd, w2, b2)


def _pad_lanes(a, axis):
    widths = [(0, 0)] * a.ndim
    widths[axis] = (0, LANES - a.shape[axis])
    return jnp.pad(a, widths)


def feature_extractor(x_nchw, params):
    """Matches FeatureExtractor.forward: returns (feature_half, feature_quarter), NCHW."""
    N, Cin, H, W = x_nchw.shape
    x = jnp.transpose(x_nchw, (0, 2, 3, 1))                  # NCHW -> NHWC

    # ---- conv0 stem (BN scale folded into weights; final channels lane-padded) ----
    p = params["conv0"]
    w0 = (p["w0"] * p["s0"]).reshape(3 * 3 * Cin, 32)
    b0 = p["b0"].reshape(1, 32)
    w1 = (p["w1"] * p["s1"]).reshape(3 * 3, 32)
    b1 = p["b1"].reshape(1, 32)
    w2 = _pad_lanes(p["w2"].reshape(32, 16) * p["s2"], axis=1)
    b2 = _pad_lanes(p["b2"].reshape(1, 16), axis=1)
    h = _stem_call(x, w0, b0, w1, b1, w2, b2)                # (N, (H/2)*(W/2), 128)
    Hc, Wc = (H - 1) // 2 + 1, (W - 1) // 2 + 1
    feat_half = h[:, :, :16].reshape(N, Hc, Wc, 16)

    # ---- conv1 = MNASNet layers[8]: 3x InvertedResidual(16 -> 24, k=3, expansion 3) ----
    cin = 16
    for i, blk in enumerate(params["conv1"]):
        stride = 2 if i == 0 else 1
        mid = blk["pw1_w"].shape[-1]
        cout = blk["pw2_w"].shape[-1]
        w1p = _pad_lanes(blk["pw1_w"].reshape(cin, mid) * blk["pw1_s"], axis=0)
        b1p = blk["pw1_b"].reshape(1, mid)
        wdp = (blk["dw_w"] * blk["dw_s"]).reshape(9, mid)
        bdp = blk["dw_b"].reshape(1, mid)
        w2p = _pad_lanes(blk["pw2_w"].reshape(mid, cout) * blk["pw2_s"], axis=1)
        b2p = _pad_lanes(blk["pw2_b"].reshape(1, cout), axis=1)
        residual = (cin == cout) and (stride == 1)
        h = _ir_call(h, w1p, b1p, wdp, bdp, w2p, b2p,
                     Hin=Hc, Win=Wc, stride=stride, residual=residual)
        Hc, Wc = (Hc - 1) // stride + 1, (Wc - 1) // stride + 1
        cin = cout
    feat_quarter = h[:, :, :cin].reshape(N, Hc, Wc, cin)

    to_nchw = lambda t: jnp.transpose(t, (0, 3, 1, 2))       # NHWC -> NCHW
    return to_nchw(feat_half), to_nchw(feat_quarter)


# ---------------------------------------------------------------------- params
def _init_bn(key, c):
    k1, k2, k3, k4 = jax.random.split(key, 4)
    gamma = 1.0 + 0.1 * jax.random.normal(k1, (c,), jnp.float32)
    beta = 0.1 * jax.random.normal(k2, (c,), jnp.float32)
    mean = 0.1 * jax.random.normal(k3, (c,), jnp.float32)
    var = 0.5 + jnp.abs(jax.random.normal(k4, (c,), jnp.float32))
    scale = gamma * jax.lax.rsqrt(var + 1e-5)
    bias = beta - mean * scale
    return scale, bias


def _init_conv(key, kh, kw, cin, cout):
    fan_in = kh * kw * cin
    return jax.random.normal(key, (kh, kw, cin, cout), jnp.float32) * (2.0 / fan_in) ** 0.5


def _init_dw(key, kh, kw, c):
    return jax.random.normal(key, (kh, kw, c), jnp.float32) * (2.0 / (kh * kw)) ** 0.5


def init_params(key, in_channels=1):
    keys = iter(jax.random.split(key, 64))
    nk = lambda: next(keys)
    s0, b0 = _init_bn(nk(), 32)
    s1, b1 = _init_bn(nk(), 32)
    s2, b2 = _init_bn(nk(), 16)
    params = {"conv0": dict(
        w0=_init_conv(nk(), 3, 3, in_channels, 32), s0=s0, b0=b0,
        w1=_init_dw(nk(), 3, 3, 32), s1=s1, b1=b1,
        w2=_init_conv(nk(), 1, 1, 32, 16), s2=s2, b2=b2,
    )}

    def ir_params(cin, cout, k, exp):
        mid = cin * exp
        s_pw1, b_pw1 = _init_bn(nk(), mid)
        s_dw, b_dw = _init_bn(nk(), mid)
        s_pw2, b_pw2 = _init_bn(nk(), cout)
        return dict(
            pw1_w=_init_conv(nk(), 1, 1, cin, mid), pw1_s=s_pw1, pw1_b=b_pw1,
            dw_w=_init_dw(nk(), k, k, mid), dw_s=s_dw, dw_b=b_dw,
            pw2_w=_init_conv(nk(), 1, 1, mid, cout), pw2_s=s_pw2, pw2_b=b_pw2,
        )

    params["conv1"] = [ir_params(16, 24, 3, 3),
                       ir_params(24, 24, 3, 3),
                       ir_params(24, 24, 3, 3)]
    return params


# ------------------------------------------------------------------------ main
if __name__ == "__main__":
    key = jax.random.PRNGKey(0)
    k_param, k_x = jax.random.split(key)
    params = init_params(k_param, in_channels=1)
    x = jax.random.normal(k_x, (2, 1, 16, 16), jnp.float32)   # NCHW, like the PyTorch module

    fwd = jax.jit(feature_extractor)
    f_half, f_quarter = fwd(x, params)
    jax.block_until_ready((f_half, f_quarter))

    assert f_half.shape == (2, 16, 8, 8), f_half.shape        # H/2, W/2, 16 channels
    assert f_quarter.shape == (2, 24, 4, 4), f_quarter.shape  # H/4, W/4, 24 channels
    assert f_half.dtype == f_quarter.dtype == jnp.float32
    assert bool(jnp.all(jnp.isfinite(f_half))) and bool(jnp.all(jnp.isfinite(f_quarter)))
    print("KERNEL_OK")
</pallas_src>

<mosaic_0001>
module attributes {stable_mosaic.version = 11 : i64} {
  func.func @kernel(%arg0: i32, %arg1: memref<1x16x16x1xf32, #tpu.memory_space<vmem>>, %arg2: memref<9x32xf32, #tpu.memory_space<vmem>>, %arg3: memref<1x32xf32, #tpu.memory_space<vmem>>, %arg4: memref<9x32xf32, #tpu.memory_space<vmem>>, %arg5: memref<1x32xf32, #tpu.memory_space<vmem>>, %arg6: memref<32x128xf32, #tpu.memory_space<vmem>>, %arg7: memref<1x128xf32, #tpu.memory_space<vmem>>, %arg8: memref<1x64x128xf32, #tpu.memory_space<vmem>>, %arg9: memref<18x18x1xf32, #tpu.memory_space<vmem>>, %arg10: memref<64x9xf32, #tpu.memory_space<vmem>>, %arg11: memref<10x10x32xf32, #tpu.memory_space<vmem>>) attributes {dimension_semantics = [#tpu.dimension_semantics<parallel>], iteration_bounds = array<i64: 2>, scalar_prefetch = 0 : i64, scratch_operands = 3 : i64, tpu.core_type = #tpu.core_type<tc>, window_params = [{transform_indices = @transform_0, window_bounds = array<i64: 1, 16, 16, 1>}, {pipeline_mode = #tpu.pipeline_mode<synchronous>, transform_indices = @transform_1, window_bounds = array<i64: 9, 32>}, {pipeline_mode = #tpu.pipeline_mode<synchronous>, transform_indices = @transform_2, window_bounds = array<i64: 1, 32>}, {pipeline_mode = #tpu.pipeline_mode<synchronous>, transform_indices = @transform_3, window_bounds = array<i64: 9, 32>}, {pipeline_mode = #tpu.pipeline_mode<synchronous>, transform_indices = @transform_4, window_bounds = array<i64: 1, 32>}, {pipeline_mode = #tpu.pipeline_mode<synchronous>, transform_indices = @transform_5, window_bounds = array<i64: 32, 128>}, {pipeline_mode = #tpu.pipeline_mode<synchronous>, transform_indices = @transform_6, window_bounds = array<i64: 1, 128>}, {transform_indices = @transform_7, window_bounds = array<i64: 1, 64, 128>}]} {
    %cst = arith.constant 0.000000e+00 : f32
    %0 = vector.broadcast %cst : f32 to vector<18x18x1xf32>
    %c0 = arith.constant 0 : index
    %c0_0 = arith.constant 0 : index
    %c0_1 = arith.constant 0 : index
    %1 = vector.load %arg9[%c0, %c0_0, %c0_1] : memref<18x18x1xf32, #tpu.memory_space<vmem>>, vector<18x18x1xf32>
    tpu.vector_store %arg9[%c0, %c0_0, %c0_1], %0 {strides = array<i32>} : memref<18x18x1xf32, #tpu.memory_space<vmem>>, vector<18x18x1xf32>,
    %c0_2 = arith.constant 0 : index
    %c0_3 = arith.constant 0 : index
    %c0_4 = arith.constant 0 : index
    %c0_5 = arith.constant 0 : index
    %2 = vector.load %arg1[%c0_2, %c0_3, %c0_4, %c0_5] : memref<1x16x16x1xf32, #tpu.memory_space<vmem>>, vector<1x16x16x1xf32>
    %3 = vector.shape_cast %2 : vector<1x16x16x1xf32> to vector<16x16x1xf32>
    %c1 = arith.constant 1 : index
    %c1_6 = arith.constant 1 : index
    %c0_7 = arith.constant 0 : index
    %4 = vector.load %arg9[%c1, %c1_6, %c0_7] : memref<18x18x1xf32, #tpu.memory_space<vmem>>, vector<16x16x1xf32>
    tpu.vector_store %arg9[%c1, %c1_6, %c0_7], %3 {strides = array<i32>} : memref<18x18x1xf32, #tpu.memory_space<vmem>>, vector<16x16x1xf32>,
    %c0_8 = arith.constant 0 : index
    %c0_9 = arith.constant 0 : index
    %c0_10 = arith.constant 0 : index
    %5 = tpu.strided_load %arg9[%c0_8, %c0_9, %c0_10] {strides = array<i32: 2, 2, 1>} : memref<18x18x1xf32, #tpu.memory_space<vmem>>, vector<8x8x1xf32>
    %6 = vector.shape_cast %5 : vector<8x8x1xf32> to vector<64x1xf32>
    %c0_11 = arith.constant 0 : index
    %c0_12 = arith.constant 0 : index
    %7 = vector.load %arg10[%c0_11, %c0_12] : memref<64x9xf32, #tpu.memory_space<vmem>>, vector<64x1xf32>
    tpu.vector_store %arg10[%c0_11, %c0_12], %6 {strides = array<i32>} : memref<64x9xf32, #tpu.memory_space<vmem>>, vector<64x1xf32>,
    %c0_13 = arith.constant 0 : index
    %c1_14 = arith.constant 1 : index
    %c0_15 = arith.constant 0 : index
    %8 = tpu.strided_load %arg9[%c0_13, %c1_14, %c0_15] {strides = array<i32: 2, 2, 1>} : memref<18x18x1xf32, #tpu.memory_space<vmem>>, vector<8x8x1xf32>
    %9 = vector.shape_cast %8 : vector<8x8x1xf32> to vector<64x1xf32>
    %c0_16 = arith.constant 0 : index
    %c1_17 = arith.constant 1 : index
    %10 = vector.load %arg10[%c0_16, %c1_17] : memref<64x9xf32, #tpu.memory_space<vmem>>, vector<64x1xf32>
    tpu.vector_store %arg10[%c0_16, %c1_17], %9 {strides = array<i32>} : memref<64x9xf32, #tpu.memory_space<vmem>>, vector<64x1xf32>,
    %c0_18 = arith.constant 0 : index
    %c2 = arith.constant 2 : index
    %c0_19 = arith.constant 0 : index
    %11 = tpu.strided_load %arg9[%c0_18, %c2, %c0_19] {strides = array<i32: 2, 2, 1>} : memref<18x18x1xf32, #tpu.memory_space<vmem>>, vector<8x8x1xf32>
    %12 = vector.shape_cast %11 : vector<8x8x1xf32> to vector<64x1xf32>
    %c0_20 = arith.constant 0 : index
    %c2_21 = arith.constant 2 : index
    %13 = vector.load %arg10[%c0_20, %c2_21] : memref<64x9xf32, #tpu.memory_space<vmem>>, vector<64x1xf32>
    tpu.vector_store %arg10[%c0_20, %c2_21], %12 {strides = array<i32>} : memref<64x9xf32, #tpu.memory_space<vmem>>, vector<64x1xf32>,
    %c1_22 = arith.constant 1 : index
    %c0_23 = arith.constant 0 : index
    %c0_24 = arith.constant 0 : index
    %14 = tpu.strided_load %arg9[%c1_22, %c0_23, %c0_24] {strides = array<i32: 2, 2, 1>} : memref<18x18x1xf32, #tpu.memory_space<vmem>>, vector<8x8x1xf32>
    %15 = vector.shape_cast %14 : vector<8x8x1xf32> to vector<64x1xf32>
    %c0_25 = arith.constant 0 : index
    %c3 = arith.constant 3 : index
    %16 = vector.load %arg10[%c0_25, %c3] : memref<64x9xf32, #tpu.memory_space<vmem>>, vector<64x1xf32>
    tpu.vector_store %arg10[%c0_25, %c3], %15 {strides = array<i32>} : memref<64x9xf32, #tpu.memory_space<vmem>>, vector<64x1xf32>,
    %c1_26 = arith.constant 1 : index
    %c1_27 = arith.constant 1 : index
    %c0_28 = arith.constant 0 : index
    %17 = tpu.strided_load %arg9[%c1_26, %c1_27, %c0_28] {strides = array<i32: 2, 2, 1>} : memref<18x18x1xf32, #tpu.memory_space<vmem>>, vector<8x8x1xf32>
    %18 = vector.shape_cast %17 : vector<8x8x1xf32> to vector<64x1xf32>
    %c0_29 = arith.constant 0 : index
    %c4 = arith.constant 4 : index
    %19 = vector.load %arg10[%c0_29, %c4] : memref<64x9xf32, #tpu.memory_space<vmem>>, vector<64x1xf32>
    tpu.vector_store %arg10[%c0_29, %c4], %18 {strides = array<i32>} : memref<64x9xf32, #tpu.memory_space<vmem>>, vector<64x1xf32>,
    %c1_30 = arith.constant 1 : index
    %c2_31 = arith.constant 2 : index
    %c0_32 = arith.constant 0 : index
    %20 = tpu.strided_load %arg9[%c1_30, %c2_31, %c0_32] {strides = array<i32: 2, 2, 1>} : memref<18x18x1xf32, #tpu.memory_space<vmem>>, vector<8x8x1xf32>
    %21 = vector.shape_cast %20 : vector<8x8x1xf32> to vector<64x1xf32>
    %c0_33 = arith.constant 0 : index
    %c5 = arith.constant 5 : index
    %22 = vector.load %arg10[%c0_33, %c5] : memref<64x9xf32, #tpu.memory_space<vmem>>, vector<64x1xf32>
    tpu.vector_store %arg10[%c0_33, %c5], %21 {strides = array<i32>} : memref<64x9xf32, #tpu.memory_space<vmem>>, vector<64x1xf32>,
    %c2_34 = arith.constant 2 : index
    %c0_35 = arith.constant 0 : index
    %c0_36 = arith.constant 0 : index
    %23 = tpu.strided_load %arg9[%c2_34, %c0_35, %c0_36] {strides = array<i32: 2, 2, 1>} : memref<18x18x1xf32, #tpu.memory_space<vmem>>, vector<8x8x1xf32>
    %24 = vector.shape_cast %23 : vector<8x8x1xf32> to vector<64x1xf32>
    %c0_37 = arith.constant 0 : index
    %c6 = arith.constant 6 : index
    %25 = vector.load %arg10[%c0_37, %c6] : memref<64x9xf32, #tpu.memory_space<vmem>>, vector<64x1xf32>
    tpu.vector_store %arg10[%c0_37, %c6], %24 {strides = array<i32>} : memref<64x9xf32, #tpu.memory_space<vmem>>, vector<64x1xf32>,
    %c2_38 = arith.constant 2 : index
    %c1_39 = arith.constant 1 : index
    %c0_40 = arith.constant 0 : index
    %26 = tpu.strided_load %arg9[%c2_38, %c1_39, %c0_40] {strides = array<i32: 2, 2, 1>} : memref<18x18x1xf32, #tpu.memory_space<vmem>>, vector<8x8x1xf32>
    %27 = vector.shape_cast %26 : vector<8x8x1xf32> to vector<64x1xf32>
    %c0_41 = arith.constant 0 : index
    %c7 = arith.constant 7 : index
    %28 = vector.load %arg10[%c0_41, %c7] : memref<64x9xf32, #tpu.memory_space<vmem>>, vector<64x1xf32>
    tpu.vector_store %arg10[%c0_41, %c7], %27 {strides = array<i32>} : memref<64x9xf32, #tpu.memory_space<vmem>>, vector<64x1xf32>,
    %c2_42 = arith.constant 2 : index
    %c2_43 = arith.constant 2 : index
    %c0_44 = arith.constant 0 : index
    %29 = tpu.strided_load %arg9[%c2_42, %c2_43, %c0_44] {strides = array<i32: 2, 2, 1>} : memref<18x18x1xf32, #tpu.memory_space<vmem>>, vector<8x8x1xf32>
    %30 = vector.shape_cast %29 : vector<8x8x1xf32> to vector<64x1xf32>
    %c0_45 = arith.constant 0 : index
    %c8 = arith.constant 8 : index
    %31 = vector.load %arg10[%c0_45, %c8] : memref<64x9xf32, #tpu.memory_space<vmem>>, vector<64x1xf32>
    tpu.vector_store %arg10[%c0_45, %c8], %30 {strides = array<i32>} : memref<64x9xf32, #tpu.memory_space<vmem>>, vector<64x1xf32>,
    %c0_46 = arith.constant 0 : index
    %c0_47 = arith.constant 0 : index
    %32 = vector.load %arg10[%c0_46, %c0_47] : memref<64x9xf32, #tpu.memory_space<vmem>>, vector<64x9xf32>
    %c0_48 = arith.constant 0 : index
    %c0_49 = arith.constant 0 : index
    %33 = vector.load %arg2[%c0_48, %c0_49] : memref<9x32xf32, #tpu.memory_space<vmem>>, vector<9x32xf32>
    %cst_50 = arith.constant dense<0.000000e+00> : vector<64x32xf32>
    %34 = tpu.matmul %32, %33, %cst_50 {dimension_numbers = #tpu.dot_dimension_numbers<[1], [0], [0], [1], [0, 0, 1, 1], [], []>} : vector<64x9xf32>, vector<9x32xf32>, vector<64x32xf32> -> vector<64x32xf32>
    %c0_51 = arith.constant 0 : index
    %c0_52 = arith.constant 0 : index
    %35 = vector.load %arg3[%c0_51, %c0_52] : memref<1x32xf32, #tpu.memory_space<vmem>>, vector<1x32xf32>
    %36 = vector.broadcast %35 : vector<1x32xf32> to vector<64x32xf32>
    %37 = arith.addf %34, %36 : vector<64x32xf32>
    %cst_53 = arith.constant 0.000000e+00 : f32
    %38 = vector.broadcast %cst_53 : f32 to vector<64x32xf32>
    %39 = arith.maximumf %37, %38 : vector<64x32xf32>
    %cst_54 = arith.constant 0.000000e+00 : f32
    %40 = vector.broadcast %cst_54 : f32 to vector<10x10x32xf32>
    %c0_55 = arith.constant 0 : index
    %c0_56 = arith.constant 0 : index
    %c0_57 = arith.constant 0 : index
    %41 = vector.load %arg11[%c0_55, %c0_56, %c0_57] : memref<10x10x32xf32, #tpu.memory_space<vmem>>, vector<10x10x32xf32>
    tpu.vector_store %arg11[%c0_55, %c0_56, %c0_57], %40 {strides = array<i32>} : memref<10x10x32xf32, #tpu.memory_space<vmem>>, vector<10x10x32xf32>,
    %42 = vector.shape_cast %39 : vector<64x32xf32> to vector<8x8x32xf32>
    %c1_58 = arith.constant 1 : index
    %c1_59 = arith.constant 1 : index
    %c0_60 = arith.constant 0 : index
    %43 = vector.load %arg11[%c1_58, %c1_59, %c0_60] : memref<10x10x32xf32, #tpu.memory_space<vmem>>, vector<8x8x32xf32>
    tpu.vector_store %arg11[%c1_58, %c1_59, %c0_60], %42 {strides = array<i32>} : memref<10x10x32xf32, #tpu.memory_space<vmem>>, vector<8x8x32xf32>,
    %c0_61 = arith.constant 0 : index
    %c0_62 = arith.constant 0 : index
    %44 = vector.load %arg4[%c0_61, %c0_62] : memref<9x32xf32, #tpu.memory_space<vmem>>, vector<9x32xf32>
    %cst_63 = arith.constant 0.000000e+00 : f32
    %45 = vector.broadcast %cst_63 : f32 to vector<8x8x32xf32>
    %c0_64 = arith.constant 0 : index
    %c0_65 = arith.constant 0 : index
    %c0_66 = arith.constant 0 : index
    %46 = vector.load %arg11[%c0_64, %c0_65, %c0_66] : memref<10x10x32xf32, #tpu.memory_space<vmem>>, vector<8x8x32xf32>
    %47 = vector.extract_strided_slice %44 {offsets = [0, 0], sizes = [1, 32], strides = [1, 1]} : vector<9x32xf32> to vector<1x32xf32>
    %48 = vector.shape_cast %47 : vector<1x32xf32> to vector<32xf32>
    %49 = vector.shape_cast %48 : vector<32xf32> to vector<1x1x32xf32>
    %50 = vector.broadcast %49 : vector<1x1x32xf32> to vector<8x8x32xf32>
    %51 = arith.mulf %46, %50 : vector<8x8x32xf32>
    %52 = arith.addf %45, %51 : vector<8x8x32xf32>
    %c0_67 = arith.constant 0 : index
    %c1_68 = arith.constant 1 : index
    %c0_69 = arith.constant 0 : index
    %53 = vector.load %arg11[%c0_67, %c1_68, %c0_69] : memref<10x10x32xf32, #tpu.memory_space<vmem>>, vector<8x8x32xf32>
    %54 = vector.extract_strided_slice %44 {offsets = [1, 0], sizes = [1, 32], strides = [1, 1]} : vector<9x32xf32> to vector<1x32xf32>
    %55 = vector.shape_cast %54 : vector<1x32xf32> to vector<32xf32>
    %56 = vector.shape_cast %55 : vector<32xf32> to vector<1x1x32xf32>
    %57 = vector.broadcast %56 : vector<1x1x32xf32> to vector<8x8x32xf32>
    %58 = arith.mulf %53, %57 : vector<8x8x32xf32>
    %59 = arith.addf %52, %58 : vector<8x8x32xf32>
    %c0_70 = arith.constant 0 : index
    %c2_71 = arith.constant 2 : index
    %c0_72 = arith.constant 0 : index
    %60 = vector.load %arg11[%c0_70, %c2_71, %c0_72] : memref<10x10x32xf32, #tpu.memory_space<vmem>>, vector<8x8x32xf32>
    %61 = vector.extract_strided_slice %44 {offsets = [2, 0], sizes = [1, 32], strides = [1, 1]} : vector<9x32xf32> to vector<1x32xf32>
    %62 = vector.shape_cast %61 : vector<1x32xf32> to vector<32xf32>
    %63 = vector.shape_cast %62 : vector<32xf32> to vector<1x1x32xf32>
    %64 = vector.broadcast %63 : vector<1x1x32xf32> to vector<8x8x32xf32>
    %65 = arith.mulf %60, %64 : vector<8x8x32xf32>
    %66 = arith.addf %59, %65 : vector<8x8x32xf32>
    %c1_73 = arith.constant 1 : index
    %c0_74 = arith.constant 0 : index
    %c0_75 = arith.constant 0 : index
    %67 = vector.load %arg11[%c1_73, %c0_74, %c0_75] : memref<10x10x32xf32, #tpu.memory_space<vmem>>, vector<8x8x32xf32>
    %68 = vector.extract_strided_slice %44 {offsets = [3, 0], sizes = [1, 32], strides = [1, 1]} : vector<9x32xf32> to vector<1x32xf32>
    %69 = vector.shape_cast %68 : vector<1x32xf32> to vector<32xf32>
    %70 = vector.shape_cast %69 : vector<32xf32> to vector<1x1x32xf32>
    %71 = vector.broadcast %70 : vector<1x1x32xf32> to vector<8x8x32xf32>
    %72 = arith.mulf %67, %71 : vector<8x8x32xf32>
    %73 = arith.addf %66, %72 : vector<8x8x32xf32>
    %c1_76 = arith.constant 1 : index
    %c1_77 = arith.constant 1 : index
    %c0_78 = arith.constant 0 : index
    %74 = vector.load %arg11[%c1_76, %c1_77, %c0_78] : memref<10x10x32xf32, #tpu.memory_space<vmem>>, vector<8x8x32xf32>
    %75 = vector.extract_strided_slice %44 {offsets = [4, 0], sizes = [1, 32], strides = [1, 1]} : vector<9x32xf32> to vector<1x32xf32>
    %76 = vector.shape_cast %75 : vector<1x32xf32> to vector<32xf32>
    %77 = vector.shape_cast %76 : vector<32xf32> to vector<1x1x32xf32>
    %78 = vector.broadcast %77 : vector<1x1x32xf32> to vector<8x8x32xf32>
    %79 = arith.mulf %74, %78 : vector<8x8x32xf32>
    %80 = arith.addf %73, %79 : vector<8x8x32xf32>
    %c1_79 = arith.constant 1 : index
    %c2_80 = arith.constant 2 : index
    %c0_81 = arith.constant 0 : index
    %81 = vector.load %arg11[%c1_79, %c2_80, %c0_81] : memref<10x10x32xf32, #tpu.memory_space<vmem>>, vector<8x8x32xf32>
    %82 = vector.extract_strided_slice %44 {offsets = [5, 0], sizes = [1, 32], strides = [1, 1]} : vector<9x32xf32> to vector<1x32xf32>
    %83 = vector.shape_cast %82 : vector<1x32xf32> to vector<32xf32>
    %84 = vector.shape_cast %83 : vector<32xf32> to vector<1x1x32xf32>
    %85 = vector.broadcast %84 : vector<1x1x32xf32> to vector<8x8x32xf32>
    %86 = arith.mulf %81, %85 : vector<8x8x32xf32>
    %87 = arith.addf %80, %86 : vector<8x8x32xf32>
    %c2_82 = arith.constant 2 : index
    %c0_83 = arith.constant 0 : index
    %c0_84 = arith.constant 0 : index
    %88 = vector.load %arg11[%c2_82, %c0_83, %c0_84] : memref<10x10x32xf32, #tpu.memory_space<vmem>>, vector<8x8x32xf32>
    %89 = vector.extract_strided_slice %44 {offsets = [6, 0], sizes = [1, 32], strides = [1, 1]} : vector<9x32xf32> to vector<1x32xf32>
    %90 = vector.shape_cast %89 : vector<1x32xf32> to vector<32xf32>
    %91 = vector.shape_cast %90 : vector<32xf32> to vector<1x1x32xf32>
    %92 = vector.broadcast %91 : vector<1x1x32xf32> to vector<8x8x32xf32>
    %93 = arith.mulf %88, %92 : vector<8x8x32xf32>
    %94 = arith.addf %87, %93 : vector<8x8x32xf32>
    %c2_85 = arith.constant 2 : index
    %c1_86 = arith.constant 1 : index
    %c0_87 = arith.constant 0 : index
    %95 = vector.load %arg11[%c2_85, %c1_86, %c0_87] : memref<10x10x32xf32, #tpu.memory_space<vmem>>, vector<8x8x32xf32>
    %96 = vector.extract_strided_slice %44 {offsets = [7, 0], sizes = [1, 32], strides = [1, 1]} : vector<9x32xf32> to vector<1x32xf32>
    %97 = vector.shape_cast %96 : vector<1x32xf32> to vector<32xf32>
    %98 = vector.shape_cast %97 : vector<32xf32> to vector<1x1x32xf32>
    %99 = vector.broadcast %98 : vector<1x1x32xf32> to vector<8x8x32xf32>
    %100 = arith.mulf %95, %99 : vector<8x8x32xf32>
    %101 = arith.addf %94, %100 : vector<8x8x32xf32>
    %c2_88 = arith.constant 2 : index
    %c2_89 = arith.constant 2 : index
    %c0_90 = arith.constant 0 : index
    %102 = vector.load %arg11[%c2_88, %c2_89, %c0_90] : memref<10x10x32xf32, #tpu.memory_space<vmem>>, vector<8x8x32xf32>
    %103 = vector.extract_strided_slice %44 {offsets = [8, 0], sizes = [1, 32], strides = [1, 1]} : vector<9x32xf32> to vector<1x32xf32>
    %104 = vector.shape_cast %103 : vector<1x32xf32> to vector<32xf32>
    %105 = vector.shape_cast %104 : vector<32xf32> to vector<1x1x32xf32>
    %106 = vector.broadcast %105 : vector<1x1x32xf32> to vector<8x8x32xf32>
    %107 = arith.mulf %102, %106 : vector<8x8x32xf32>
    %108 = arith.addf %101, %107 : vector<8x8x32xf32>
    %c0_91 = arith.constant 0 : index
    %c0_92 = arith.constant 0 : index
    %109 = vector.load %arg5[%c0_91, %c0_92] : memref<1x32xf32, #tpu.memory_space<vmem>>, vector<1x32xf32>
    %110 = vector.shape_cast %109 : vector<1x32xf32> to vector<1x1x32xf32>
    %111 = vector.broadcast %110 : vector<1x1x32xf32> to vector<8x8x32xf32>
    %112 = arith.addf %108, %111 : vector<8x8x32xf32>
    %cst_93 = arith.constant 0.000000e+00 : f32
    %113 = vector.broadcast %cst_93 : f32 to vector<8x8x32xf32>
    %114 = arith.maximumf %112, %113 : vector<8x8x32xf32>
    %115 = vector.shape_cast %114 : vector<8x8x32xf32> to vector<64x32xf32>
    %c0_94 = arith.constant 0 : index
    %c0_95 = arith.constant 0 : index
    %116 = vector.load %arg6[%c0_94, %c0_95] : memref<32x128xf32, #tpu.memory_space<vmem>>, vector<32x128xf32>
    %cst_96 = arith.constant dense<0.000000e+00> : vector<64x128xf32>
    %117 = tpu.matmul %115, %116, %cst_96 {dimension_numbers = #tpu.dot_dimension_numbers<[1], [0], [0], [1], [0, 0, 1, 1], [], []>} : vector<64x32xf32>, vector<32x128xf32>, vector<64x128xf32> -> vector<64x128xf32>
    %c0_97 = arith.constant 0 : index
    %c0_98 = arith.constant 0 : index
    %118 = vector.load %arg7[%c0_97, %c0_98] : memref<1x128xf32, #tpu.memory_space<vmem>>, vector<1x128xf32>
    %119 = vector.broadcast %118 : vector<1x128xf32> to vector<64x128xf32>
    %120 = arith.addf %117, %119 : vector<64x128xf32>
    %c0_99 = arith.constant 0 : index
    %c0_100 = arith.constant 0 : index
    %c0_101 = arith.constant 0 : index
    %121 = vector.load %arg8[%c0_99, %c0_100, %c0_101] : memref<1x64x128xf32, #tpu.memory_space<vmem>>, vector<1x64x128xf32>
    %122 = vector.shape_cast %121 : vector<1x64x128xf32> to vector<64x128xf32>
    %123 = vector.shape_cast %120 : vector<64x128xf32> to vector<1x64x128xf32>
    tpu.vector_store %arg8[%c0_99, %c0_100, %c0_101], %123 {strides = array<i32>} : memref<1x64x128xf32, #tpu.memory_space<vmem>>, vector<1x64x128xf32>,
    return
  }
  func.func @transform_0(%arg0: i32) -> (i32, i32, i32, i32) {
    %c0_i32 = arith.constant 0 : i32
    %c0_i32_0 = arith.constant 0 : i32
    %c0_i32_1 = arith.constant 0 : i32
    %c0_i32_2 = arith.constant 0 : i32
    return %arg0, %c0_i32, %c0_i32_0, %c0_i32_1 : i32, i32, i32, i32
  }
  func.func @transform_1(%arg0: i32) -> (i32, i32) {
    %c0_i32 = arith.constant 0 : i32
    %c0_i32_0 = arith.constant 0 : i32
    %c0_i32_1 = arith.constant 0 : i32
    return %c0_i32, %c0_i32_0 : i32, i32
  }
  func.func @transform_2(%arg0: i32) -> (i32, i32) {
    %c0_i32 = arith.constant 0 : i32
    %c0_i32_0 = arith.constant 0 : i32
    %c0_i32_1 = arith.constant 0 : i32
    return %c0_i32, %c0_i32_0 : i32, i32
  }
  func.func @transform_3(%arg0: i32) -> (i32, i32) {
    %c0_i32 = arith.constant 0 : i32
    %c0_i32_0 = arith.constant 0 : i32
    %c0_i32_1 = arith.constant 0 : i32
    return %c0_i32, %c0_i32_0 : i32, i32
  }
  func.func @transform_4(%arg0: i32) -> (i32, i32) {
    %c0_i32 = arith.constant 0 : i32
    %c0_i32_0 = arith.constant 0 : i32
    %c0_i32_1 = arith.constant 0 : i32
    return %c0_i32, %c0_i32_0 : i32, i32
  }
  func.func @transform_5(%arg0: i32) -> (i32, i32) {
    %c0_i32 = arith.constant 0 : i32
    %c0_i32_0 = arith.constant 0 : i32
    %c0_i32_1 = arith.constant 0 : i32
    return %c0_i32, %c0_i32_0 : i32, i32
  }
  func.func @transform_6(%arg0: i32) -> (i32, i32) {
    %c0_i32 = arith.constant 0 : i32
    %c0_i32_0 = arith.constant 0 : i32
    %c0_i32_1 = arith.constant 0 : i32
    return %c0_i32, %c0_i32_0 : i32, i32
  }
  func.func @transform_7(%arg0: i32) -> (i32, i32, i32) {
    %c0_i32 = arith.constant 0 : i32
    %c0_i32_0 = arith.constant 0 : i32
    %c0_i32_1 = arith.constant 0 : i32
    return %arg0, %c0_i32, %c0_i32_0 : i32, i32, i32
  }
}

module attributes {stable_mosaic.version = 11 : i64} {
  func.func @kernel(%arg0: i32, %arg1: memref<1x64x128xf32, #tpu.memory_space<vmem>>, %arg2: memref<128x48xf32, #tpu.memory_space<vmem>>, %arg3: memref<1x48xf32, #tpu.memory_space<vmem>>, %arg4: memref<9x48xf32, #tpu.memory_space<vmem>>, %arg5: memref<1x48xf32, #tpu.memory_space<vmem>>, %arg6: memref<48x128xf32, #tpu.memory_space<vmem>>, %arg7: memref<1x128xf32, #tpu.memory_space<vmem>>, %arg8: memref<1x16x128xf32, #tpu.memory_space<vmem>>, %arg9: memref<10x10x48xf32, #tpu.memory_space<vmem>>) attributes {dimension_semantics = [#tpu.dimension_semantics<parallel>], iteration_bounds = array<i64: 2>, scalar_prefetch = 0 : i64, scratch_operands = 1 : i64, tpu.core_type = #tpu.core_type<tc>, window_params = [{transform_indices = @transform_0, window_bounds = array<i64: 1, 64, 128>}, {pipeline_mode = #tpu.pipeline_mode<synchronous>, transform_indices = @transform_1, window_bounds = array<i64: 128, 48>}, {pipeline_mode = #tpu.pipeline_mode<synchronous>, transform_indices = @transform_2, window_bounds = array<i64: 1, 48>}, {pipeline_mode = #tpu.pipeline_mode<synchronous>, transform_indices = @transform_3, window_bounds = array<i64: 9, 48>}, {pipeline_mode = #tpu.pipeline_mode<synchronous>, transform_indices = @transform_4, window_bounds = array<i64: 1, 48>}, {pipeline_mode = #tpu.pipeline_mode<synchronous>, transform_indices = @transform_5, window_bounds = array<i64: 48, 128>}, {pipeline_mode = #tpu.pipeline_mode<synchronous>, transform_indices = @transform_6, window_bounds = array<i64: 1, 128>}, {transform_indices = @transform_7, window_bounds = array<i64: 1, 16, 128>}]} {
    %c0 = arith.constant 0 : index
    %c0_0 = arith.constant 0 : index
    %c0_1 = arith.constant 0 : index
    %0 = vector.load %arg1[%c0, %c0_0, %c0_1] : memref<1x64x128xf32, #tpu.memory_space<vmem>>, vector<1x64x128xf32>
    %1 = vector.shape_cast %0 : vector<1x64x128xf32> to vector<64x128xf32>
    %c0_2 = arith.constant 0 : index
    %c0_3 = arith.constant 0 : index
    %2 = vector.load %arg2[%c0_2, %c0_3] : memref<128x48xf32, #tpu.memory_space<vmem>>, vector<128x48xf32>
    %cst = arith.constant dense<0.000000e+00> : vector<64x48xf32>
    %3 = tpu.matmul %1, %2, %cst {dimension_numbers = #tpu.dot_dimension_numbers<[1], [0], [0], [1], [0, 0, 1, 1], [], []>} : vector<64x128xf32>, vector<128x48xf32>, vector<64x48xf32> -> vector<64x48xf32>
    %c0_4 = arith.constant 0 : index
    %c0_5 = arith.constant 0 : index
    %4 = vector.load %arg3[%c0_4, %c0_5] : memref<1x48xf32, #tpu.memory_space<vmem>>, vector<1x48xf32>
    %5 = vector.broadcast %4 : vector<1x48xf32> to vector<64x48xf32>
    %6 = arith.addf %3, %5 : vector<64x48xf32>
    %cst_6 = arith.constant 0.000000e+00 : f32
    %7 = vector.broadcast %cst_6 : f32 to vector<64x48xf32>
    %8 = arith.maximumf %6, %7 : vector<64x48xf32>
    %cst_7 = arith.constant 0.000000e+00 : f32
    %9 = vector.broadcast %cst_7 : f32 to vector<10x10x48xf32>
    %c0_8 = arith.constant 0 : index
    %c0_9 = arith.constant 0 : index
    %c0_10 = arith.constant 0 : index
    %10 = vector.load %arg9[%c0_8, %c0_9, %c0_10] : memref<10x10x48xf32, #tpu.memory_space<vmem>>, vector<10x10x48xf32>
    tpu.vector_store %arg9[%c0_8, %c0_9, %c0_10], %9 {strides = array<i32>} : memref<10x10x48xf32, #tpu.memory_space<vmem>>, vector<10x10x48xf32>,
    %11 = vector.shape_cast %8 : vector<64x48xf32> to vector<8x8x48xf32>
    %c1 = arith.constant 1 : index
    %c1_11 = arith.constant 1 : index
    %c0_12 = arith.constant 0 : index
    %12 = vector.load %arg9[%c1, %c1_11, %c0_12] : memref<10x10x48xf32, #tpu.memory_space<vmem>>, vector<8x8x48xf32>
    tpu.vector_store %arg9[%c1, %c1_11, %c0_12], %11 {strides = array<i32>} : memref<10x10x48xf32, #tpu.memory_space<vmem>>, vector<8x8x48xf32>,
    %c0_13 = arith.constant 0 : index
    %c0_14 = arith.constant 0 : index
    %13 = vector.load %arg4[%c0_13, %c0_14] : memref<9x48xf32, #tpu.memory_space<vmem>>, vector<9x48xf32>
    %cst_15 = arith.constant 0.000000e+00 : f32
    %14 = vector.broadcast %cst_15 : f32 to vector<4x4x48xf32>
    %c0_16 = arith.constant 0 : index
    %c0_17 = arith.constant 0 : index
    %c0_18 = arith.constant 0 : index
    %15 = tpu.strided_load %arg9[%c0_16, %c0_17, %c0_18] {strides = array<i32: 2, 2, 1>} : memref<10x10x48xf32, #tpu.memory_space<vmem>>, vector<4x4x48xf32>
    %16 = vector.extract_strided_slice %13 {offsets = [0, 0], sizes = [1, 48], strides = [1, 1]} : vector<9x48xf32> to vector<1x48xf32>
    %17 = vector.shape_cast %16 : vector<1x48xf32> to vector<48xf32>
    %18 = vector.shape_cast %17 : vector<48xf32> to vector<1x1x48xf32>
    %19 = vector.broadcast %18 : vector<1x1x48xf32> to vector<4x4x48xf32>
    %20 = arith.mulf %15, %19 : vector<4x4x48xf32>
    %21 = arith.addf %14, %20 : vector<4x4x48xf32>
    %c0_19 = arith.constant 0 : index
    %c1_20 = arith.constant 1 : index
    %c0_21 = arith.constant 0 : index
    %22 = tpu.strided_load %arg9[%c0_19, %c1_20, %c0_21] {strides = array<i32: 2, 2, 1>} : memref<10x10x48xf32, #tpu.memory_space<vmem>>, vector<4x4x48xf32>
    %23 = vector.extract_strided_slice %13 {offsets = [1, 0], sizes = [1, 48], strides = [1, 1]} : vector<9x48xf32> to vector<1x48xf32>
    %24 = vector.shape_cast %23 : vector<1x48xf32> to vector<48xf32>
    %25 = vector.shape_cast %24 : vector<48xf32> to vector<1x1x48xf32>
    %26 = vector.broadcast %25 : vector<1x1x48xf32> to vector<4x4x48xf32>
    %27 = arith.mulf %22, %26 : vector<4x4x48xf32>
    %28 = arith.addf %21, %27 : vector<4x4x48xf32>
    %c0_22 = arith.constant 0 : index
    %c2 = arith.constant 2 : index
    %c0_23 = arith.constant 0 : index
    %29 = tpu.strided_load %arg9[%c0_22, %c2, %c0_23] {strides = array<i32: 2, 2, 1>} : memref<10x10x48xf32, #tpu.memory_space<vmem>>, vector<4x4x48xf32>
    %30 = vector.extract_strided_slice %13 {offsets = [2, 0], sizes = [1, 48], strides = [1, 1]} : vector<9x48xf32> to vector<1x48xf32>
    %31 = vector.shape_cast %30 : vector<1x48xf32> to vector<48xf32>
    %32 = vector.shape_cast %31 : vector<48xf32> to vector<1x1x48xf32>
    %33 = vector.broadcast %32 : vector<1x1x48xf32> to vector<4x4x48xf32>
    %34 = arith.mulf %29, %33 : vector<4x4x48xf32>
    %35 = arith.addf %28, %34 : vector<4x4x48xf32>
    %c1_24 = arith.constant 1 : index
    %c0_25 = arith.constant 0 : index
    %c0_26 = arith.constant 0 : index
    %36 = tpu.strided_load %arg9[%c1_24, %c0_25, %c0_26] {strides = array<i32: 2, 2, 1>} : memref<10x10x48xf32, #tpu.memory_space<vmem>>, vector<4x4x48xf32>
    %37 = vector.extract_strided_slice %13 {offsets = [3, 0], sizes = [1, 48], strides = [1, 1]} : vector<9x48xf32> to vector<1x48xf32>
    %38 = vector.shape_cast %37 : vector<1x48xf32> to vector<48xf32>
    %39 = vector.shape_cast %38 : vector<48xf32> to vector<1x1x48xf32>
    %40 = vector.broadcast %39 : vector<1x1x48xf32> to vector<4x4x48xf32>
    %41 = arith.mulf %36, %40 : vector<4x4x48xf32>
    %42 = arith.addf %35, %41 : vector<4x4x48xf32>
    %c1_27 = arith.constant 1 : index
    %c1_28 = arith.constant 1 : index
    %c0_29 = arith.constant 0 : index
    %43 = tpu.strided_load %arg9[%c1_27, %c1_28, %c0_29] {strides = array<i32: 2, 2, 1>} : memref<10x10x48xf32, #tpu.memory_space<vmem>>, vector<4x4x48xf32>
    %44 = vector.extract_strided_slice %13 {offsets = [4, 0], sizes = [1, 48], strides = [1, 1]} : vector<9x48xf32> to vector<1x48xf32>
    %45 = vector.shape_cast %44 : vector<1x48xf32> to vector<48xf32>
    %46 = vector.shape_cast %45 : vector<48xf32> to vector<1x1x48xf32>
    %47 = vector.broadcast %46 : vector<1x1x48xf32> to vector<4x4x48xf32>
    %48 = arith.mulf %43, %47 : vector<4x4x48xf32>
    %49 = arith.addf %42, %48 : vector<4x4x48xf32>
    %c1_30 = arith.constant 1 : index
    %c2_31 = arith.constant 2 : index
    %c0_32 = arith.constant 0 : index
    %50 = tpu.strided_load %arg9[%c1_30, %c2_31, %c0_32] {strides = array<i32: 2, 2, 1>} : memref<10x10x48xf32, #tpu.memory_space<vmem>>, vector<4x4x48xf32>
    %51 = vector.extract_strided_slice %13 {offsets = [5, 0], sizes = [1, 48], strides = [1, 1]} : vector<9x48xf32> to vector<1x48xf32>
    %52 = vector.shape_cast %51 : vector<1x48xf32> to vector<48xf32>
    %53 = vector.shape_cast %52 : vector<48xf32> to vector<1x1x48xf32>
    %54 = vector.broadcast %53 : vector<1x1x48xf32> to vector<4x4x48xf32>
    %55 = arith.mulf %50, %54 : vector<4x4x48xf32>
    %56 = arith.addf %49, %55 : vector<4x4x48xf32>
    %c2_33 = arith.constant 2 : index
    %c0_34 = arith.constant 0 : index
    %c0_35 = arith.constant 0 : index
    %57 = tpu.strided_load %arg9[%c2_33, %c0_34, %c0_35] {strides = array<i32: 2, 2, 1>} : memref<10x10x48xf32, #tpu.memory_space<vmem>>, vector<4x4x48xf32>
    %58 = vector.extract_strided_slice %13 {offsets = [6, 0], sizes = [1, 48], strides = [1, 1]} : vector<9x48xf32> to vector<1x48xf32>
    %59 = vector.shape_cast %58 : vector<1x48xf32> to vector<48xf32>
    %60 = vector.shape_cast %59 : vector<48xf32> to vector<1x1x48xf32>
    %61 = vector.broadcast %60 : vector<1x1x48xf32> to vector<4x4x48xf32>
    %62 = arith.mulf %57, %61 : vector<4x4x48xf32>
    %63 = arith.addf %56, %62 : vector<4x4x48xf32>
    %c2_36 = arith.constant 2 : index
    %c1_37 = arith.constant 1 : index
    %c0_38 = arith.constant 0 : index
    %64 = tpu.strided_load %arg9[%c2_36, %c1_37, %c0_38] {strides = array<i32: 2, 2, 1>} : memref<10x10x48xf32, #tpu.memory_space<vmem>>, vector<4x4x48xf32>
    %65 = vector.extract_strided_slice %13 {offsets = [7, 0], sizes = [1, 48], strides = [1, 1]} : vector<9x48xf32> to vector<1x48xf32>
    %66 = vector.shape_cast %65 : vector<1x48xf32> to vector<48xf32>
    %67 = vector.shape_cast %66 : vector<48xf32> to vector<1x1x48xf32>
    %68 = vector.broadcast %67 : vector<1x1x48xf32> to vector<4x4x48xf32>
    %69 = arith.mulf %64, %68 : vector<4x4x48xf32>
    %70 = arith.addf %63, %69 : vector<4x4x48xf32>
    %c2_39 = arith.constant 2 : index
    %c2_40 = arith.constant 2 : index
    %c0_41 = arith.constant 0 : index
    %71 = tpu.strided_load %arg9[%c2_39, %c2_40, %c0_41] {strides = array<i32: 2, 2, 1>} : memref<10x10x48xf32, #tpu.memory_space<vmem>>, vector<4x4x48xf32>
    %72 = vector.extract_strided_slice %13 {offsets = [8, 0], sizes = [1, 48], strides = [1, 1]} : vector<9x48xf32> to vector<1x48xf32>
    %73 = vector.shape_cast %72 : vector<1x48xf32> to vector<48xf32>
    %74 = vector.shape_cast %73 : vector<48xf32> to vector<1x1x48xf32>
    %75 = vector.broadcast %74 : vector<1x1x48xf32> to vector<4x4x48xf32>
    %76 = arith.mulf %71, %75 : vector<4x4x48xf32>
    %77 = arith.addf %70, %76 : vector<4x4x48xf32>
    %c0_42 = arith.constant 0 : index
    %c0_43 = arith.constant 0 : index
    %78 = vector.load %arg5[%c0_42, %c0_43] : memref<1x48xf32, #tpu.memory_space<vmem>>, vector<1x48xf32>
    %79 = vector.shape_cast %78 : vector<1x48xf32> to vector<1x1x48xf32>
    %80 = vector.broadcast %79 : vector<1x1x48xf32> to vector<4x4x48xf32>
    %81 = arith.addf %77, %80 : vector<4x4x48xf32>
    %cst_44 = arith.constant 0.000000e+00 : f32
    %82 = vector.broadcast %cst_44 : f32 to vector<4x4x48xf32>
    %83 = arith.maximumf %81, %82 : vector<4x4x48xf32>
    %84 = vector.shape_cast %83 : vector<4x4x48xf32> to vector<16x48xf32>
    %c0_45 = arith.constant 0 : index
    %c0_46 = arith.constant 0 : index
    %85 = vector.load %arg6[%c0_45, %c0_46] : memref<48x128xf32, #tpu.memory_space<vmem>>, vector<48x128xf32>
    %cst_47 = arith.constant dense<0.000000e+00> : vector<16x128xf32>
    %86 = tpu.matmul %84, %85, %cst_47 {dimension_numbers = #tpu.dot_dimension_numbers<[1], [0], [0], [1], [0, 0, 1, 1], [], []>} : vector<16x48xf32>, vector<48x128xf32>, vector<16x128xf32> -> vector<16x128xf32>
    %c0_48 = arith.constant 0 : index
    %c0_49 = arith.constant 0 : index
    %87 = vector.load %arg7[%c0_48, %c0_49] : memref<1x128xf32, #tpu.memory_space<vmem>>, vector<1x128xf32>
    %88 = vector.broadcast %87 : vector<1x128xf32> to vector<16x128xf32>
    %89 = arith.addf %86, %88 : vector<16x128xf32>
    %c0_50 = arith.constant 0 : index
    %c0_51 = arith.constant 0 : index
    %c0_52 = arith.constant 0 : index
    %90 = vector.load %arg8[%c0_50, %c0_51, %c0_52] : memref<1x16x128xf32, #tpu.memory_space<vmem>>, vector<1x16x128xf32>
    %91 = vector.shape_cast %90 : vector<1x16x128xf32> to vector<16x128xf32>
    %92 = vector.shape_cast %89 : vector<16x128xf32> to vector<1x16x128xf32>
    tpu.vector_store %arg8[%c0_50, %c0_51, %c0_52], %92 {strides = array<i32>} : memref<1x16x128xf32, #tpu.memory_space<vmem>>, vector<1x16x128xf32>,
    return
  }
  func.func @transform_0(%arg0: i32) -> (i32, i32, i32) {
    %c0_i32 = arith.constant 0 : i32
    %c0_i32_0 = arith.constant 0 : i32
    %c0_i32_1 = arith.constant 0 : i32
    return %arg0, %c0_i32, %c0_i32_0 : i32, i32, i32
  }
  func.func @transform_1(%arg0: i32) -> (i32, i32) {
    %c0_i32 = arith.constant 0 : i32
    %c0_i32_0 = arith.constant 0 : i32
    %c0_i32_1 = arith.constant 0 : i32
    return %c0_i32, %c0_i32_0 : i32, i32
  }
  func.func @transform_2(%arg0: i32) -> (i32, i32) {
    %c0_i32 = arith.constant 0 : i32
    %c0_i32_0 = arith.constant 0 : i32
    %c0_i32_1 = arith.constant 0 : i32
    return %c0_i32, %c0_i32_0 : i32, i32
  }
  func.func @transform_3(%arg0: i32) -> (i32, i32) {
    %c0_i32 = arith.constant 0 : i32
    %c0_i32_0 = arith.constant 0 : i32
    %c0_i32_1 = arith.constant 0 : i32
    return %c0_i32, %c0_i32_0 : i32, i32
  }
  func.func @transform_4(%arg0: i32) -> (i32, i32) {
    %c0_i32 = arith.constant 0 : i32
    %c0_i32_0 = arith.constant 0 : i32
    %c0_i32_1 = arith.constant 0 : i32
    return %c0_i32, %c0_i32_0 : i32, i32
  }
  func.func @transform_5(%arg0: i32) -> (i32, i32) {
    %c0_i32 = arith.constant 0 : i32
    %c0_i32_0 = arith.constant 0 : i32
    %c0_i32_1 = arith.constant 0 : i32
    return %c0_i32, %c0_i32_0 : i32, i32
  }
  func.func @transform_6(%arg0: i32) -> (i32, i32) {
    %c0_i32 = arith.constant 0 : i32
    %c0_i32_0 = arith.constant 0 : i32
    %c0_i32_1 = arith.constant 0 : i32
    return %c0_i32, %c0_i32_0 : i32, i32
  }
  func.func @transform_7(%arg0: i32) -> (i32, i32, i32) {
    %c0_i32 = arith.constant 0 : i32
    %c0_i32_0 = arith.constant 0 : i32
    %c0_i32_1 = arith.constant 0 : i32
    return %arg0, %c0_i32, %c0_i32_0 : i32, i32, i32
  }
}

module attributes {stable_mosaic.version = 11 : i64} {
  func.func @kernel(%arg0: i32, %arg1: memref<1x16x128xf32, #tpu.memory_space<vmem>>, %arg2: memref<128x72xf32, #tpu.memory_space<vmem>>, %arg3: memref<1x72xf32, #tpu.memory_space<vmem>>, %arg4: memref<9x72xf32, #tpu.memory_space<vmem>>, %arg5: memref<1x72xf32, #tpu.memory_space<vmem>>, %arg6: memref<72x128xf32, #tpu.memory_space<vmem>>, %arg7: memref<1x128xf32, #tpu.memory_space<vmem>>, %arg8: memref<1x16x128xf32, #tpu.memory_space<vmem>>, %arg9: memref<6x6x72xf32, #tpu.memory_space<vmem>>) attributes {dimension_semantics = [#tpu.dimension_semantics<parallel>], iteration_bounds = array<i64: 2>, scalar_prefetch = 0 : i64, scratch_operands = 1 : i64, tpu.core_type = #tpu.core_type<tc>, window_params = [{transform_indices = @transform_0, window_bounds = array<i64: 1, 16, 128>}, {pipeline_mode = #tpu.pipeline_mode<synchronous>, transform_indices = @transform_1, window_bounds = array<i64: 128, 72>}, {pipeline_mode = #tpu.pipeline_mode<synchronous>, transform_indices = @transform_2, window_bounds = array<i64: 1, 72>}, {pipeline_mode = #tpu.pipeline_mode<synchronous>, transform_indices = @transform_3, window_bounds = array<i64: 9, 72>}, {pipeline_mode = #tpu.pipeline_mode<synchronous>, transform_indices = @transform_4, window_bounds = array<i64: 1, 72>}, {pipeline_mode = #tpu.pipeline_mode<synchronous>, transform_indices = @transform_5, window_bounds = array<i64: 72, 128>}, {pipeline_mode = #tpu.pipeline_mode<synchronous>, transform_indices = @transform_6, window_bounds = array<i64: 1, 128>}, {transform_indices = @transform_7, window_bounds = array<i64: 1, 16, 128>}]} {
    %c0 = arith.constant 0 : index
    %c0_0 = arith.constant 0 : index
    %c0_1 = arith.constant 0 : index
    %0 = vector.load %arg1[%c0, %c0_0, %c0_1] : memref<1x16x128xf32, #tpu.memory_space<vmem>>, vector<1x16x128xf32>
    %1 = vector.shape_cast %0 : vector<1x16x128xf32> to vector<16x128xf32>
    %c0_2 = arith.constant 0 : index
    %c0_3 = arith.constant 0 : index
    %2 = vector.load %arg2[%c0_2, %c0_3] : memref<128x72xf32, #tpu.memory_space<vmem>>, vector<128x72xf32>
    %cst = arith.constant dense<0.000000e+00> : vector<16x72xf32>
    %3 = tpu.matmul %1, %2, %cst {dimension_numbers = #tpu.dot_dimension_numbers<[1], [0], [0], [1], [0, 0, 1, 1], [], []>} : vector<16x128xf32>, vector<128x72xf32>, vector<16x72xf32> -> vector<16x72xf32>
    %c0_4 = arith.constant 0 : index
    %c0_5 = arith.constant 0 : index
    %4 = vector.load %arg3[%c0_4, %c0_5] : memref<1x72xf32, #tpu.memory_space<vmem>>, vector<1x72xf32>
    %5 = vector.broadcast %4 : vector<1x72xf32> to vector<16x72xf32>
    %6 = arith.addf %3, %5 : vector<16x72xf32>
    %cst_6 = arith.constant 0.000000e+00 : f32
    %7 = vector.broadcast %cst_6 : f32 to vector<16x72xf32>
    %8 = arith.maximumf %6, %7 : vector<16x72xf32>
    %cst_7 = arith.constant 0.000000e+00 : f32
    %9 = vector.broadcast %cst_7 : f32 to vector<6x6x72xf32>
    %c0_8 = arith.constant 0 : index
    %c0_9 = arith.constant 0 : index
    %c0_10 = arith.constant 0 : index
    %10 = vector.load %arg9[%c0_8, %c0_9, %c0_10] : memref<6x6x72xf32, #tpu.memory_space<vmem>>, vector<6x6x72xf32>
    tpu.vector_store %arg9[%c0_8, %c0_9, %c0_10], %9 {strides = array<i32>} : memref<6x6x72xf32, #tpu.memory_space<vmem>>, vector<6x6x72xf32>,
    %11 = vector.shape_cast %8 : vector<16x72xf32> to vector<4x4x72xf32>
    %c1 = arith.constant 1 : index
    %c1_11 = arith.constant 1 : index
    %c0_12 = arith.constant 0 : index
    %12 = vector.load %arg9[%c1, %c1_11, %c0_12] : memref<6x6x72xf32, #tpu.memory_space<vmem>>, vector<4x4x72xf32>
    tpu.vector_store %arg9[%c1, %c1_11, %c0_12], %11 {strides = array<i32>} : memref<6x6x72xf32, #tpu.memory_space<vmem>>, vector<4x4x72xf32>,
    %c0_13 = arith.constant 0 : index
    %c0_14 = arith.constant 0 : index
    %13 = vector.load %arg4[%c0_13, %c0_14] : memref<9x72xf32, #tpu.memory_space<vmem>>, vector<9x72xf32>
    %cst_15 = arith.constant 0.000000e+00 : f32
    %14 = vector.broadcast %cst_15 : f32 to vector<4x4x72xf32>
    %c0_16 = arith.constant 0 : index
    %c0_17 = arith.constant 0 : index
    %c0_18 = arith.constant 0 : index
    %15 = vector.load %arg9[%c0_16, %c0_17, %c0_18] : memref<6x6x72xf32, #tpu.memory_space<vmem>>, vector<4x4x72xf32>
    %16 = vector.extract_strided_slice %13 {offsets = [0, 0], sizes = [1, 72], strides = [1, 1]} : vector<9x72xf32> to vector<1x72xf32>
    %17 = vector.shape_cast %16 : vector<1x72xf32> to vector<72xf32>
    %18 = vector.shape_cast %17 : vector<72xf32> to vector<1x1x72xf32>
    %19 = vector.broadcast %18 : vector<1x1x72xf32> to vector<4x4x72xf32>
    %20 = arith.mulf %15, %19 : vector<4x4x72xf32>
    %21 = arith.addf %14, %20 : vector<4x4x72xf32>
    %c0_19 = arith.constant 0 : index
    %c1_20 = arith.constant 1 : index
    %c0_21 = arith.constant 0 : index
    %22 = vector.load %arg9[%c0_19, %c1_20, %c0_21] : memref<6x6x72xf32, #tpu.memory_space<vmem>>, vector<4x4x72xf32>
    %23 = vector.extract_strided_slice %13 {offsets = [1, 0], sizes = [1, 72], strides = [1, 1]} : vector<9x72xf32> to vector<1x72xf32>
    %24 = vector.shape_cast %23 : vector<1x72xf32> to vector<72xf32>
    %25 = vector.shape_cast %24 : vector<72xf32> to vector<1x1x72xf32>
    %26 = vector.broadcast %25 : vector<1x1x72xf32> to vector<4x4x72xf32>
    %27 = arith.mulf %22, %26 : vector<4x4x72xf32>
    %28 = arith.addf %21, %27 : vector<4x4x72xf32>
    %c0_22 = arith.constant 0 : index
    %c2 = arith.constant 2 : index
    %c0_23 = arith.constant 0 : index
    %29 = vector.load %arg9[%c0_22, %c2, %c0_23] : memref<6x6x72xf32, #tpu.memory_space<vmem>>, vector<4x4x72xf32>
    %30 = vector.extract_strided_slice %13 {offsets = [2, 0], sizes = [1, 72], strides = [1, 1]} : vector<9x72xf32> to vector<1x72xf32>
    %31 = vector.shape_cast %30 : vector<1x72xf32> to vector<72xf32>
    %32 = vector.shape_cast %31 : vector<72xf32> to vector<1x1x72xf32>
    %33 = vector.broadcast %32 : vector<1x1x72xf32> to vector<4x4x72xf32>
    %34 = arith.mulf %29, %33 : vector<4x4x72xf32>
    %35 = arith.addf %28, %34 : vector<4x4x72xf32>
    %c1_24 = arith.constant 1 : index
    %c0_25 = arith.constant 0 : index
    %c0_26 = arith.constant 0 : index
    %36 = vector.load %arg9[%c1_24, %c0_25, %c0_26] : memref<6x6x72xf32, #tpu.memory_space<vmem>>, vector<4x4x72xf32>
    %37 = vector.extract_strided_slice %13 {offsets = [3, 0], sizes = [1, 72], strides = [1, 1]} : vector<9x72xf32> to vector<1x72xf32>
    %38 = vector.shape_cast %37 : vector<1x72xf32> to vector<72xf32>
    %39 = vector.shape_cast %38 : vector<72xf32> to vector<1x1x72xf32>
    %40 = vector.broadcast %39 : vector<1x1x72xf32> to vector<4x4x72xf32>
    %41 = arith.mulf %36, %40 : vector<4x4x72xf32>
    %42 = arith.addf %35, %41 : vector<4x4x72xf32>
    %c1_27 = arith.constant 1 : index
    %c1_28 = arith.constant 1 : index
    %c0_29 = arith.constant 0 : index
    %43 = vector.load %arg9[%c1_27, %c1_28, %c0_29] : memref<6x6x72xf32, #tpu.memory_space<vmem>>, vector<4x4x72xf32>
    %44 = vector.extract_strided_slice %13 {offsets = [4, 0], sizes = [1, 72], strides = [1, 1]} : vector<9x72xf32> to vector<1x72xf32>
    %45 = vector.shape_cast %44 : vector<1x72xf32> to vector<72xf32>
    %46 = vector.shape_cast %45 : vector<72xf32> to vector<1x1x72xf32>
    %47 = vector.broadcast %46 : vector<1x1x72xf32> to vector<4x4x72xf32>
    %48 = arith.mulf %43, %47 : vector<4x4x72xf32>
    %49 = arith.addf %42, %48 : vector<4x4x72xf32>
    %c1_30 = arith.constant 1 : index
    %c2_31 = arith.constant 2 : index
    %c0_32 = arith.constant 0 : index
    %50 = vector.load %arg9[%c1_30, %c2_31, %c0_32] : memref<6x6x72xf32, #tpu.memory_space<vmem>>, vector<4x4x72xf32>
    %51 = vector.extract_strided_slice %13 {offsets = [5, 0], sizes = [1, 72], strides = [1, 1]} : vector<9x72xf32> to vector<1x72xf32>
    %52 = vector.shape_cast %51 : vector<1x72xf32> to vector<72xf32>
    %53 = vector.shape_cast %52 : vector<72xf32> to vector<1x1x72xf32>
    %54 = vector.broadcast %53 : vector<1x1x72xf32> to vector<4x4x72xf32>
    %55 = arith.mulf %50, %54 : vector<4x4x72xf32>
    %56 = arith.addf %49, %55 : vector<4x4x72xf32>
    %c2_33 = arith.constant 2 : index
    %c0_34 = arith.constant 0 : index
    %c0_35 = arith.constant 0 : index
    %57 = vector.load %arg9[%c2_33, %c0_34, %c0_35] : memref<6x6x72xf32, #tpu.memory_space<vmem>>, vector<4x4x72xf32>
    %58 = vector.extract_strided_slice %13 {offsets = [6, 0], sizes = [1, 72], strides = [1, 1]} : vector<9x72xf32> to vector<1x72xf32>
    %59 = vector.shape_cast %58 : vector<1x72xf32> to vector<72xf32>
    %60 = vector.shape_cast %59 : vector<72xf32> to vector<1x1x72xf32>
    %61 = vector.broadcast %60 : vector<1x1x72xf32> to vector<4x4x72xf32>
    %62 = arith.mulf %57, %61 : vector<4x4x72xf32>
    %63 = arith.addf %56, %62 : vector<4x4x72xf32>
    %c2_36 = arith.constant 2 : index
    %c1_37 = arith.constant 1 : index
    %c0_38 = arith.constant 0 : index
    %64 = vector.load %arg9[%c2_36, %c1_37, %c0_38] : memref<6x6x72xf32, #tpu.memory_space<vmem>>, vector<4x4x72xf32>
    %65 = vector.extract_strided_slice %13 {offsets = [7, 0], sizes = [1, 72], strides = [1, 1]} : vector<9x72xf32> to vector<1x72xf32>
    %66 = vector.shape_cast %65 : vector<1x72xf32> to vector<72xf32>
    %67 = vector.shape_cast %66 : vector<72xf32> to vector<1x1x72xf32>
    %68 = vector.broadcast %67 : vector<1x1x72xf32> to vector<4x4x72xf32>
    %69 = arith.mulf %64, %68 : vector<4x4x72xf32>
    %70 = arith.addf %63, %69 : vector<4x4x72xf32>
    %c2_39 = arith.constant 2 : index
    %c2_40 = arith.constant 2 : index
    %c0_41 = arith.constant 0 : index
    %71 = vector.load %arg9[%c2_39, %c2_40, %c0_41] : memref<6x6x72xf32, #tpu.memory_space<vmem>>, vector<4x4x72xf32>
    %72 = vector.extract_strided_slice %13 {offsets = [8, 0], sizes = [1, 72], strides = [1, 1]} : vector<9x72xf32> to vector<1x72xf32>
    %73 = vector.shape_cast %72 : vector<1x72xf32> to vector<72xf32>
    %74 = vector.shape_cast %73 : vector<72xf32> to vector<1x1x72xf32>
    %75 = vector.broadcast %74 : vector<1x1x72xf32> to vector<4x4x72xf32>
    %76 = arith.mulf %71, %75 : vector<4x4x72xf32>
    %77 = arith.addf %70, %76 : vector<4x4x72xf32>
    %c0_42 = arith.constant 0 : index
    %c0_43 = arith.constant 0 : index
    %78 = vector.load %arg5[%c0_42, %c0_43] : memref<1x72xf32, #tpu.memory_space<vmem>>, vector<1x72xf32>
    %79 = vector.shape_cast %78 : vector<1x72xf32> to vector<1x1x72xf32>
    %80 = vector.broadcast %79 : vector<1x1x72xf32> to vector<4x4x72xf32>
    %81 = arith.addf %77, %80 : vector<4x4x72xf32>
    %cst_44 = arith.constant 0.000000e+00 : f32
    %82 = vector.broadcast %cst_44 : f32 to vector<4x4x72xf32>
    %83 = arith.maximumf %81, %82 : vector<4x4x72xf32>
    %84 = vector.shape_cast %83 : vector<4x4x72xf32> to vector<16x72xf32>
    %c0_45 = arith.constant 0 : index
    %c0_46 = arith.constant 0 : index
    %85 = vector.load %arg6[%c0_45, %c0_46] : memref<72x128xf32, #tpu.memory_space<vmem>>, vector<72x128xf32>
    %cst_47 = arith.constant dense<0.000000e+00> : vector<16x128xf32>
    %86 = tpu.matmul %84, %85, %cst_47 {dimension_numbers = #tpu.dot_dimension_numbers<[1], [0], [0], [1], [0, 0, 1, 1], [], []>} : vector<16x72xf32>, vector<72x128xf32>, vector<16x128xf32> -> vector<16x128xf32>
    %c0_48 = arith.constant 0 : index
    %c0_49 = arith.constant 0 : index
    %87 = vector.load %arg7[%c0_48, %c0_49] : memref<1x128xf32, #tpu.memory_space<vmem>>, vector<1x128xf32>
    %88 = vector.broadcast %87 : vector<1x128xf32> to vector<16x128xf32>
    %89 = arith.addf %86, %88 : vector<16x128xf32>
    %90 = arith.addf %89, %1 : vector<16x128xf32>
    %c0_50 = arith.constant 0 : index
    %c0_51 = arith.constant 0 : index
    %c0_52 = arith.constant 0 : index
    %91 = vector.load %arg8[%c0_50, %c0_51, %c0_52] : memref<1x16x128xf32, #tpu.memory_space<vmem>>, vector<1x16x128xf32>
    %92 = vector.shape_cast %91 : vector<1x16x128xf32> to vector<16x128xf32>
    %93 = vector.shape_cast %90 : vector<16x128xf32> to vector<1x16x128xf32>
    tpu.vector_store %arg8[%c0_50, %c0_51, %c0_52], %93 {strides = array<i32>} : memref<1x16x128xf32, #tpu.memory_space<vmem>>, vector<1x16x128xf32>,
    return
  }
  func.func @transform_0(%arg0: i32) -> (i32, i32, i32) {
    %c0_i32 = arith.constant 0 : i32
    %c0_i32_0 = arith.constant 0 : i32
    %c0_i32_1 = arith.constant 0 : i32
    return %arg0, %c0_i32, %c0_i32_0 : i32, i32, i32
  }
  func.func @transform_1(%arg0: i32) -> (i32, i32) {
    %c0_i32 = arith.constant 0 : i32
    %c0_i32_0 = arith.constant 0 : i32
    %c0_i32_1 = arith.constant 0 : i32
    return %c0_i32, %c0_i32_0 : i32, i32
  }
  func.func @transform_2(%arg0: i32) -> (i32, i32) {
    %c0_i32 = arith.constant 0 : i32
    %c0_i32_0 = arith.constant 0 : i32
    %c0_i32_1 = arith.constant 0 : i32
    return %c0_i32, %c0_i32_0 : i32, i32
  }
  func.func @transform_3(%arg0: i32) -> (i32, i32) {
    %c0_i32 = arith.constant 0 : i32
    %c0_i32_0 = arith.constant 0 : i32
    %c0_i32_1 = arith.constant 0 : i32
    return %c0_i32, %c0_i32_0 : i32, i32
  }
  func.func @transform_4(%arg0: i32) -> (i32, i32) {
    %c0_i32 = arith.constant 0 : i32
    %c0_i32_0 = arith.constant 0 : i32
    %c0_i32_1 = arith.constant 0 : i32
    return %c0_i32, %c0_i32_0 : i32, i32
  }
  func.func @transform_5(%arg0: i32) -> (i32, i32) {
    %c0_i32 = arith.constant 0 : i32
    %c0_i32_0 = arith.constant 0 : i32
    %c0_i32_1 = arith.constant 0 : i32
    return %c0_i32, %c0_i32_0 : i32, i32
  }
  func.func @transform_6(%arg0: i32) -> (i32, i32) {
    %c0_i32 = arith.constant 0 : i32
    %c0_i32_0 = arith.constant 0 : i32
    %c0_i32_1 = arith.constant 0 : i32
    return %c0_i32, %c0_i32_0 : i32, i32
  }
  func.func @transform_7(%arg0: i32) -> (i32, i32, i32) {
    %c0_i32 = arith.constant 0 : i32
    %c0_i32_0 = arith.constant 0 : i32
    %c0_i32_1 = arith.constant 0 : i32
    return %arg0, %c0_i32, %c0_i32_0 : i32, i32, i32
  }
}

module attributes {stable_mosaic.version = 11 : i64} {
  func.func @kernel(%arg0: i32, %arg1: memref<1x16x128xf32, #tpu.memory_space<vmem>>, %arg2: memref<128x72xf32, #tpu.memory_space<vmem>>, %arg3: memref<1x72xf32, #tpu.memory_space<vmem>>, %arg4: memref<9x72xf32, #tpu.memory_space<vmem>>, %arg5: memref<1x72xf32, #tpu.memory_space<vmem>>, %arg6: memref<72x128xf32, #tpu.memory_space<vmem>>, %arg7: memref<1x128xf32, #tpu.memory_space<vmem>>, %arg8: memref<1x16x128xf32, #tpu.memory_space<vmem>>, %arg9: memref<6x6x72xf32, #tpu.memory_space<vmem>>) attributes {dimension_semantics = [#tpu.dimension_semantics<parallel>], iteration_bounds = array<i64: 2>, scalar_prefetch = 0 : i64, scratch_operands = 1 : i64, tpu.core_type = #tpu.core_type<tc>, window_params = [{transform_indices = @transform_0, window_bounds = array<i64: 1, 16, 128>}, {pipeline_mode = #tpu.pipeline_mode<synchronous>, transform_indices = @transform_1, window_bounds = array<i64: 128, 72>}, {pipeline_mode = #tpu.pipeline_mode<synchronous>, transform_indices = @transform_2, window_bounds = array<i64: 1, 72>}, {pipeline_mode = #tpu.pipeline_mode<synchronous>, transform_indices = @transform_3, window_bounds = array<i64: 9, 72>}, {pipeline_mode = #tpu.pipeline_mode<synchronous>, transform_indices = @transform_4, window_bounds = array<i64: 1, 72>}, {pipeline_mode = #tpu.pipeline_mode<synchronous>, transform_indices = @transform_5, window_bounds = array<i64: 72, 128>}, {pipeline_mode = #tpu.pipeline_mode<synchronous>, transform_indices = @transform_6, window_bounds = array<i64: 1, 128>}, {transform_indices = @transform_7, window_bounds = array<i64: 1, 16, 128>}]} {
    %c0 = arith.constant 0 : index
    %c0_0 = arith.constant 0 : index
    %c0_1 = arith.constant 0 : index
    %0 = vector.load %arg1[%c0, %c0_0, %c0_1] : memref<1x16x128xf32, #tpu.memory_space<vmem>>, vector<1x16x128xf32>
    %1 = vector.shape_cast %0 : vector<1x16x128xf32> to vector<16x128xf32>
    %c0_2 = arith.constant 0 : index
    %c0_3 = arith.constant 0 : index
    %2 = vector.load %arg2[%c0_2, %c0_3] : memref<128x72xf32, #tpu.memory_space<vmem>>, vector<128x72xf32>
    %cst = arith.constant dense<0.000000e+00> : vector<16x72xf32>
    %3 = tpu.matmul %1, %2, %cst {dimension_numbers = #tpu.dot_dimension_numbers<[1], [0], [0], [1], [0, 0, 1, 1], [], []>} : vector<16x128xf32>, vector<128x72xf32>, vector<16x72xf32> -> vector<16x72xf32>
    %c0_4 = arith.constant 0 : index
    %c0_5 = arith.constant 0 : index
    %4 = vector.load %arg3[%c0_4, %c0_5] : memref<1x72xf32, #tpu.memory_space<vmem>>, vector<1x72xf32>
    %5 = vector.broadcast %4 : vector<1x72xf32> to vector<16x72xf32>
    %6 = arith.addf %3, %5 : vector<16x72xf32>
    %cst_6 = arith.constant 0.000000e+00 : f32
    %7 = vector.broadcast %cst_6 : f32 to vector<16x72xf32>
    %8 = arith.maximumf %6, %7 : vector<16x72xf32>
    %cst_7 = arith.constant 0.000000e+00 : f32
    %9 = vector.broadcast %cst_7 : f32 to vector<6x6x72xf32>
    %c0_8 = arith.constant 0 : index
    %c0_9 = arith.constant 0 : index
    %c0_10 = arith.constant 0 : index
    %10 = vector.load %arg9[%c0_8, %c0_9, %c0_10] : memref<6x6x72xf32, #tpu.memory_space<vmem>>, vector<6x6x72xf32>
    tpu.vector_store %arg9[%c0_8, %c0_9, %c0_10], %9 {strides = array<i32>} : memref<6x6x72xf32, #tpu.memory_space<vmem>>, vector<6x6x72xf32>,
    %11 = vector.shape_cast %8 : vector<16x72xf32> to vector<4x4x72xf32>
    %c1 = arith.constant 1 : index
    %c1_11 = arith.constant 1 : index
    %c0_12 = arith.constant 0 : index
    %12 = vector.load %arg9[%c1, %c1_11, %c0_12] : memref<6x6x72xf32, #tpu.memory_space<vmem>>, vector<4x4x72xf32>
    tpu.vector_store %arg9[%c1, %c1_11, %c0_12], %11 {strides = array<i32>} : memref<6x6x72xf32, #tpu.memory_space<vmem>>, vector<4x4x72xf32>,
    %c0_13 = arith.constant 0 : index
    %c0_14 = arith.constant 0 : index
    %13 = vector.load %arg4[%c0_13, %c0_14] : memref<9x72xf32, #tpu.memory_space<vmem>>, vector<9x72xf32>
    %cst_15 = arith.constant 0.000000e+00 : f32
    %14 = vector.broadcast %cst_15 : f32 to vector<4x4x72xf32>
    %c0_16 = arith.constant 0 : index
    %c0_17 = arith.constant 0 : index
    %c0_18 = arith.constant 0 : index
    %15 = vector.load %arg9[%c0_16, %c0_17, %c0_18] : memref<6x6x72xf32, #tpu.memory_space<vmem>>, vector<4x4x72xf32>
    %16 = vector.extract_strided_slice %13 {offsets = [0, 0], sizes = [1, 72], strides = [1, 1]} : vector<9x72xf32> to vector<1x72xf32>
    %17 = vector.shape_cast %16 : vector<1x72xf32> to vector<72xf32>
    %18 = vector.shape_cast %17 : vector<72xf32> to vector<1x1x72xf32>
    %19 = vector.broadcast %18 : vector<1x1x72xf32> to vector<4x4x72xf32>
    %20 = arith.mulf %15, %19 : vector<4x4x72xf32>
    %21 = arith.addf %14, %20 : vector<4x4x72xf32>
    %c0_19 = arith.constant 0 : index
    %c1_20 = arith.constant 1 : index
    %c0_21 = arith.constant 0 : index
    %22 = vector.load %arg9[%c0_19, %c1_20, %c0_21] : memref<6x6x72xf32, #tpu.memory_space<vmem>>, vector<4x4x72xf32>
    %23 = vector.extract_strided_slice %13 {offsets = [1, 0], sizes = [1, 72], strides = [1, 1]} : vector<9x72xf32> to vector<1x72xf32>
    %24 = vector.shape_cast %23 : vector<1x72xf32> to vector<72xf32>
    %25 = vector.shape_cast %24 : vector<72xf32> to vector<1x1x72xf32>
    %26 = vector.broadcast %25 : vector<1x1x72xf32> to vector<4x4x72xf32>
    %27 = arith.mulf %22, %26 : vector<4x4x72xf32>
    %28 = arith.addf %21, %27 : vector<4x4x72xf32>
    %c0_22 = arith.constant 0 : index
    %c2 = arith.constant 2 : index
    %c0_23 = arith.constant 0 : index
    %29 = vector.load %arg9[%c0_22, %c2, %c0_23] : memref<6x6x72xf32, #tpu.memory_space<vmem>>, vector<4x4x72xf32>
    %30 = vector.extract_strided_slice %13 {offsets = [2, 0], sizes = [1, 72], strides = [1, 1]} : vector<9x72xf32> to vector<1x72xf32>
    %31 = vector.shape_cast %30 : vector<1x72xf32> to vector<72xf32>
    %32 = vector.shape_cast %31 : vector<72xf32> to vector<1x1x72xf32>
    %33 = vector.broadcast %32 : vector<1x1x72xf32> to vector<4x4x72xf32>
    %34 = arith.mulf %29, %33 : vector<4x4x72xf32>
    %35 = arith.addf %28, %34 : vector<4x4x72xf32>
    %c1_24 = arith.constant 1 : index
    %c0_25 = arith.constant 0 : index
    %c0_26 = arith.constant 0 : index
    %36 = vector.load %arg9[%c1_24, %c0_25, %c0_26] : memref<6x6x72xf32, #tpu.memory_space<vmem>>, vector<4x4x72xf32>
    %37 = vector.extract_strided_slice %13 {offsets = [3, 0], sizes = [1, 72], strides = [1, 1]} : vector<9x72xf32> to vector<1x72xf32>
    %38 = vector.shape_cast %37 : vector<1x72xf32> to vector<72xf32>
    %39 = vector.shape_cast %38 : vector<72xf32> to vector<1x1x72xf32>
    %40 = vector.broadcast %39 : vector<1x1x72xf32> to vector<4x4x72xf32>
    %41 = arith.mulf %36, %40 : vector<4x4x72xf32>
    %42 = arith.addf %35, %41 : vector<4x4x72xf32>
    %c1_27 = arith.constant 1 : index
    %c1_28 = arith.constant 1 : index
    %c0_29 = arith.constant 0 : index
    %43 = vector.load %arg9[%c1_27, %c1_28, %c0_29] : memref<6x6x72xf32, #tpu.memory_space<vmem>>, vector<4x4x72xf32>
    %44 = vector.extract_strided_slice %13 {offsets = [4, 0], sizes = [1, 72], strides = [1, 1]} : vector<9x72xf32> to vector<1x72xf32>
    %45 = vector.shape_cast %44 : vector<1x72xf32> to vector<72xf32>
    %46 = vector.shape_cast %45 : vector<72xf32> to vector<1x1x72xf32>
    %47 = vector.broadcast %46 : vector<1x1x72xf32> to vector<4x4x72xf32>
    %48 = arith.mulf %43, %47 : vector<4x4x72xf32>
    %49 = arith.addf %42, %48 : vector<4x4x72xf32>
    %c1_30 = arith.constant 1 : index
    %c2_31 = arith.constant 2 : index
    %c0_32 = arith.constant 0 : index
    %50 = vector.load %arg9[%c1_30, %c2_31, %c0_32] : memref<6x6x72xf32, #tpu.memory_space<vmem>>, vector<4x4x72xf32>
    %51 = vector.extract_strided_slice %13 {offsets = [5, 0], sizes = [1, 72], strides = [1, 1]} : vector<9x72xf32> to vector<1x72xf32>
    %52 = vector.shape_cast %51 : vector<1x72xf32> to vector<72xf32>
    %53 = vector.shape_cast %52 : vector<72xf32> to vector<1x1x72xf32>
    %54 = vector.broadcast %53 : vector<1x1x72xf32> to vector<4x4x72xf32>
    %55 = arith.mulf %50, %54 : vector<4x4x72xf32>
    %56 = arith.addf %49, %55 : vector<4x4x72xf32>
    %c2_33 = arith.constant 2 : index
    %c0_34 = arith.constant 0 : index
    %c0_35 = arith.constant 0 : index
    %57 = vector.load %arg9[%c2_33, %c0_34, %c0_35] : memref<6x6x72xf32, #tpu.memory_space<vmem>>, vector<4x4x72xf32>
    %58 = vector.extract_strided_slice %13 {offsets = [6, 0], sizes = [1, 72], strides = [1, 1]} : vector<9x72xf32> to vector<1x72xf32>
    %59 = vector.shape_cast %58 : vector<1x72xf32> to vector<72xf32>
    %60 = vector.shape_cast %59 : vector<72xf32> to vector<1x1x72xf32>
    %61 = vector.broadcast %60 : vector<1x1x72xf32> to vector<4x4x72xf32>
    %62 = arith.mulf %57, %61 : vector<4x4x72xf32>
    %63 = arith.addf %56, %62 : vector<4x4x72xf32>
    %c2_36 = arith.constant 2 : index
    %c1_37 = arith.constant 1 : index
    %c0_38 = arith.constant 0 : index
    %64 = vector.load %arg9[%c2_36, %c1_37, %c0_38] : memref<6x6x72xf32, #tpu.memory_space<vmem>>, vector<4x4x72xf32>
    %65 = vector.extract_strided_slice %13 {offsets = [7, 0], sizes = [1, 72], strides = [1, 1]} : vector<9x72xf32> to vector<1x72xf32>
    %66 = vector.shape_cast %65 : vector<1x72xf32> to vector<72xf32>
    %67 = vector.shape_cast %66 : vector<72xf32> to vector<1x1x72xf32>
    %68 = vector.broadcast %67 : vector<1x1x72xf32> to vector<4x4x72xf32>
    %69 = arith.mulf %64, %68 : vector<4x4x72xf32>
    %70 = arith.addf %63, %69 : vector<4x4x72xf32>
    %c2_39 = arith.constant 2 : index
    %c2_40 = arith.constant 2 : index
    %c0_41 = arith.constant 0 : index
    %71 = vector.load %arg9[%c2_39, %c2_40, %c0_41] : memref<6x6x72xf32, #tpu.memory_space<vmem>>, vector<4x4x72xf32>
    %72 = vector.extract_strided_slice %13 {offsets = [8, 0], sizes = [1, 72], strides = [1, 1]} : vector<9x72xf32> to vector<1x72xf32>
    %73 = vector.shape_cast %72 : vector<1x72xf32> to vector<72xf32>
    %74 = vector.shape_cast %73 : vector<72xf32> to vector<1x1x72xf32>
    %75 = vector.broadcast %74 : vector<1x1x72xf32> to vector<4x4x72xf32>
    %76 = arith.mulf %71, %75 : vector<4x4x72xf32>
    %77 = arith.addf %70, %76 : vector<4x4x72xf32>
    %c0_42 = arith.constant 0 : index
    %c0_43 = arith.constant 0 : index
    %78 = vector.load %arg5[%c0_42, %c0_43] : memref<1x72xf32, #tpu.memory_space<vmem>>, vector<1x72xf32>
    %79 = vector.shape_cast %78 : vector<1x72xf32> to vector<1x1x72xf32>
    %80 = vector.broadcast %79 : vector<1x1x72xf32> to vector<4x4x72xf32>
    %81 = arith.addf %77, %80 : vector<4x4x72xf32>
    %cst_44 = arith.constant 0.000000e+00 : f32
    %82 = vector.broadcast %cst_44 : f32 to vector<4x4x72xf32>
    %83 = arith.maximumf %81, %82 : vector<4x4x72xf32>
    %84 = vector.shape_cast %83 : vector<4x4x72xf32> to vector<16x72xf32>
    %c0_45 = arith.constant 0 : index
    %c0_46 = arith.constant 0 : index
    %85 = vector.load %arg6[%c0_45, %c0_46] : memref<72x128xf32, #tpu.memory_space<vmem>>, vector<72x128xf32>
    %cst_47 = arith.constant dense<0.000000e+00> : vector<16x128xf32>
    %86 = tpu.matmul %84, %85, %cst_47 {dimension_numbers = #tpu.dot_dimension_numbers<[1], [0], [0], [1], [0, 0, 1, 1], [], []>} : vector<16x72xf32>, vector<72x128xf32>, vector<16x128xf32> -> vector<16x128xf32>
    %c0_48 = arith.constant 0 : index
    %c0_49 = arith.constant 0 : index
    %87 = vector.load %arg7[%c0_48, %c0_49] : memref<1x128xf32, #tpu.memory_space<vmem>>, vector<1x128xf32>
    %88 = vector.broadcast %87 : vector<1x128xf32> to vector<16x128xf32>
    %89 = arith.addf %86, %88 : vector<16x128xf32>
    %90 = arith.addf %89, %1 : vector<16x128xf32>
    %c0_50 = arith.constant 0 : index
    %c0_51 = arith.constant 0 : index
    %c0_52 = arith.constant 0 : index
    %91 = vector.load %arg8[%c0_50, %c0_51, %c0_52] : memref<1x16x128xf32, #tpu.memory_space<vmem>>, vector<1x16x128xf32>
    %92 = vector.shape_cast %91 : vector<1x16x128xf32> to vector<16x128xf32>
    %93 = vector.shape_cast %90 : vector<16x128xf32> to vector<1x16x128xf32>
    tpu.vector_store %arg8[%c0_50, %c0_51, %c0_52], %93 {strides = array<i32>} : memref<1x16x128xf32, #tpu.memory_space<vmem>>, vector<1x16x128xf32>,
    return
  }
  func.func @transform_0(%arg0: i32) -> (i32, i32, i32) {
    %c0_i32 = arith.constant 0 : i32
    %c0_i32_0 = arith.constant 0 : i32
    %c0_i32_1 = arith.constant 0 : i32
    return %arg0, %c0_i32, %c0_i32_0 : i32, i32, i32
  }
  func.func @transform_1(%arg0: i32) -> (i32, i32) {
    %c0_i32 = arith.constant 0 : i32
    %c0_i32_0 = arith.constant 0 : i32
    %c0_i32_1 = arith.constant 0 : i32
    return %c0_i32, %c0_i32_0 : i32, i32
  }
  func.func @transform_2(%arg0: i32) -> (i32, i32) {
    %c0_i32 = arith.constant 0 : i32
    %c0_i32_0 = arith.constant 0 : i32
    %c0_i32_1 = arith.constant 0 : i32
    return %c0_i32, %c0_i32_0 : i32, i32
  }
  func.func @transform_3(%arg0: i32) -> (i32, i32) {
    %c0_i32 = arith.constant 0 : i32
    %c0_i32_0 = arith.constant 0 : i32
    %c0_i32_1 = arith.constant 0 : i32
    return %c0_i32, %c0_i32_0 : i32, i32
  }
  func.func @transform_4(%arg0: i32) -> (i32, i32) {
    %c0_i32 = arith.constant 0 : i32
    %c0_i32_0 = arith.constant 0 : i32
    %c0_i32_1 = arith.constant 0 : i32
    return %c0_i32, %c0_i32_0 : i32, i32
  }
  func.func @transform_5(%arg0: i32) -> (i32, i32) {
    %c0_i32 = arith.constant 0 : i32
    %c0_i32_0 = arith.constant 0 : i32
    %c0_i32_1 = arith.constant 0 : i32
    return %c0_i32, %c0_i32_0 : i32, i32
  }
  func.func @transform_6(%arg0: i32) -> (i32, i32) {
    %c0_i32 = arith.constant 0 : i32
    %c0_i32_0 = arith.constant 0 : i32
    %c0_i32_1 = arith.constant 0 : i32
    return %c0_i32, %c0_i32_0 : i32, i32
  }
  func.func @transform_7(%arg0: i32) -> (i32, i32, i32) {
    %c0_i32 = arith.constant 0 : i32
    %c0_i32_0 = arith.constant 0 : i32
    %c0_i32_1 = arith.constant 0 : i32
    return %arg0, %c0_i32, %c0_i32_0 : i32, i32, i32
  }
}

</mosaic_0001>

<bundles_post_ra>
// kernel: feature_extractor.6
= control target key start
LH: loop header
LB: loop body
LE: loop exit
PB: predicated region body
PF: predicated region fallthrough
CT: control target
= control target key end

     0   :  { %s683_s24 = smov 0   ;;  %s871_s0 = inlined_call_operand.vmem [shape: f32[2,16,128], index: 0, kind: input, shape index: {}]   ;;  %s872_s1 = inlined_call_operand.vmem [shape: f32[128,72], index: 1, kind: input, shape index: {}]   ;;  %s873_s2 = inlined_call_operand.vmem [shape: f32[1,72], index: 2, kind: input, shape index: {}]   ;;  %s874_s3 = inlined_call_operand.vmem [shape: f32[9,72], index: 3, kind: input, shape index: {}]   ;;  %s875_s4 = inlined_call_operand.vmem [shape: f32[1,72], index: 4, kind: input, shape index: {}]   ;;  %s876_s5 = inlined_call_operand.vmem [shape: f32[72,128], index: 5, kind: input, shape index: {}]   ;;  %s877_s6 = inlined_call_operand.vmem [shape: f32[1,128], index: 6, kind: input, shape index: {}]   ;;  %s878_s7 = inlined_call_operand.vmem [shape: f32[2,16,128], index: 7, kind: output, shape index: {}]  }
   0x1 LB: > { %s590_s25 = sadd.s32 4294967295, %s640_s24   ;;  %p594_p0 = scmp.ge.s32.totalorder %s640_s24, 1  ;;  %s640_s24 = sphi %s683_s24, %s17_s24  }
   0x2   : > { %p237_p1 = scmp.lt.s32.totalorder %s640_s24, 3 }
   0x4   : > { %p238_p2 = pnand %p594_p0, %p237_p1 }
   0x5   : > { %p269_p3 = scmp.lt.s32.totalorder (!%p238_p2), %s590_s25, 1 }
   0x6   : > { %241 = sbr.rel (%p238_p2) target bundleno = 352 (0x160), region = 48 }
   0xb   : > { %v296_v0 = vld [vmem:[%s872_s1 + $0x78] sm:$0xff]  ;;  %v295_v1 = vld [vmem:[%s872_s1 + $0x70] sm:$0xff]  ;;  %v294_v2 = vld [vmem:[%s872_s1 + $0x68] sm:$0xff]  ;;  %s880_s25 = smov (!%p269_p3, %s590_s25), 1  ;;  %vm326_vm0 = vcmask 586752   ;;  %v642_v18 = vmov 0.0  }
   0xc   : > { %301 = vmatpush.msra.mxu0 %v296_v0  ;;  %605 = vmatpush.msra.mxu2 %v296_v0  ;;  %v293_v3 = vld [vmem:[%s872_s1 + $0x60] sm:$0xff]  ;;  %v292_v4 = vld [vmem:[%s872_s1 + $0x58] sm:$0xff]  ;;  %v291_v5 = vld [vmem:[%s872_s1 + $0x50] sm:$0xff]  ;;  %s603_s8 = sshll.u32 %s880_s25, 4  ;;  %327 = vst.msk [vmem:[#allocation2] sm:$0x3f] %vm326_vm0, %v642_v18 }
   0xd   : > { %v290_v6 = vld [vmem:[%s872_s1 + $0x48] sm:$0xff]  ;;  %v289_v7 = vld [vmem:[%s872_s1 + $0x40] sm:$0xff]  ;;  %v288_v8 = vld [vmem:[%s872_s1 + $0x38] sm:$0xff]  ;;  %s273_s15 = scalar_lea.vmem %s871_s0, %s603_s8  ;;  %328 = vst.msk [vmem:[#allocation2 + $0x8] sm:$0x3f] %vm326_vm0, %v642_v18  ;;  %vm340_vm1 = vcmask 584704   ;;  %s278_s30 = scalar_lea.vmem %s878_s7, %s603_s8 }
   0xe   : > { %302 = vmatpush.msra.mxu0 %v295_v1  ;;  %606 = vmatpush.msra.mxu2 %v295_v1  ;;  %v287_v9 = vld [vmem:[%s872_s1 + $0x30] sm:$0xff]  ;;  %v286_v10 = vld [vmem:[%s872_s1 + $0x28] sm:$0xff]  ;;  %v285_v11 = vld [vmem:[%s872_s1 + $0x20] sm:$0xff]  ;;  %329 = vst.msk [vmem:[#allocation2 + $0x10] sm:$0x3f] %vm326_vm0, %v642_v18  ;;  %vm503_vm2 = vcmask 588800  }
   0xf   : > { %v284_v12 = vld [vmem:[%s872_s1 + $0x18] sm:$0xff]  ;;  %v283_v13 = vld [vmem:[%s872_s1 + $0x10] sm:$0xff]  ;;  %v282_v14 = vld [vmem:[%s872_s1 + $0x8] sm:$0xff]  ;;  %332 = vst.msk [vmem:[#allocation2 + $0x28] sm:$0x3f] %vm326_vm0, %v642_v18 }
  0x10   : > { %303 = vmatpush.msra.mxu0 %v294_v2  ;;  %607 = vmatpush.msra.mxu2 %v294_v2  ;;  %v281_v15 = vld [vmem:[%s872_s1] sm:$0xff]  ;;  %v753_v17 = vld [vmem:[%s273_s15 + $0x8] sm:$0xff]  ;;  %330 = vst.msk [vmem:[#allocation2 + $0x18] sm:$0x3f] %vm326_vm0, %v642_v18  ;;  %v484_v22 = vld [vmem:[%s876_s5 + $0x38] sm:$0xff] }
  0x11   : > { %v751_v16 = vld [vmem:[%s273_s15] sm:$0xff]  ;;  %331 = vst.msk [vmem:[#allocation2 + $0x20] sm:$0x3f] %vm326_vm0, %v642_v18  ;;  %v483_v23 = vld [vmem:[%s876_s5 + $0x30] sm:$0xff]  ;;  %v482_v27 = vld [vmem:[%s876_s5 + $0x28] sm:$0xff] }
  0x12   : > { %304 = vmatpush.msra.mxu0 %v293_v3  ;;  %608 = vmatpush.msra.mxu2 %v293_v3  ;;  %v485_v19 = vld [vmem:[%s876_s5 + $0x40] sm:$0xff]  ;;  %v480_v36 = vld [vmem:[%s876_s5 + $0x18] sm:$0xff]  ;;  %v479_v40 = vld [vmem:[%s876_s5 + $0x10] sm:$0xff] }
  0x13   : > { %v630_v20 = vld [vmem:[%s873_s2] ss:$0 sm:$0xff]  ;;  %515 = vmatpush.msra.mxu1 %v485_v19  ;;  %v347_v29 = vld [vmem:[#allocation2] sm:$0xf] }
  0x14   : > { %305 = vmatpush.msra.mxu0 %v292_v4  ;;  %609 = vmatpush.msra.mxu2 %v292_v4  ;;  %v766_v21 = vld [vmem:[%s874_s3] sm:$0xff]  ;;  %v360_v30 = vld [vmem:[#allocation2 + $0x1] sm:$0xf] }
  0x15   : > { %516 = vmatpush.msra.mxu1 %v484_v22  ;;  %v775_v25 = vperm.slane %v766_v21, 0  ;;  %v778_v26 = vperm.slane %v766_v21, 1  ;;  %v481_v31 = vld [vmem:[%s876_s5 + $0x20] sm:$0xff]  ;;  %v789_v35 = vperm.slane %v766_v21, 2  ;;  %v373_v38 = vld [vmem:[#allocation2 + $0x2] sm:$0xf] }
  0x16   : > { %306 = vmatpush.msra.mxu0 %v291_v5  ;;  %610 = vmatpush.msra.mxu2 %v291_v5  ;;  %v478_v44 = vld [vmem:[%s876_s5 + $0x8] sm:$0xff]  ;;  %v804_v46 = vperm.slane %v766_v21, 3  ;;  %v477_v47 = vld [vmem:[%s876_s5] sm:$0xff]  ;;  %v810_v48 = vperm.slane %v766_v21, 4  ;;  %v813_v49 = vperm.slane %v766_v21, 5  ;;  %v819_v58 = vperm.slane %v766_v21, 6 }
  0x17   : > { %517 = vmatpush.msra.mxu1 %v483_v23  ;;  %v352_v33 = vmul.f32 %v775_v25, %v347_v29  ;;  %v365_v34 = vmul.f32 %v778_v26, %v360_v30  ;;  %v378_v43 = vmul.f32 %v789_v35, %v373_v38 }
  0x18   : > { %307 = vmatpush.msra.mxu0 %v290_v6  ;;  %611 = vmatpush.msra.mxu2 %v290_v6 }
  0x19   : > { %518 = vmatpush.msra.mxu1 %v482_v27  ;;  %v369_v42 = vadd.f32 %v365_v34, %v352_v33 }
  0x1a   : > { %308 = vmatpush.msra.mxu0 %v289_v7  ;;  %612 = vmatpush.msra.mxu2 %v289_v7 }
  0x1b   : > { %519 = vmatpush.msra.mxu1 %v481_v31  ;;  %v382_v53 = vadd.f32 %v378_v43, %v369_v42 }
  0x1c   : > { %309 = vmatpush.msra.mxu0 %v288_v8  ;;  %613 = vmatpush.msra.mxu2 %v288_v8 }
  0x1d   : > { %520 = vmatpush.msra.mxu1 %v480_v36 }
  0x1e   : > { %310 = vmatpush.msra.mxu0 %v287_v9  ;;  %614 = vmatpush.msra.mxu2 %v287_v9 }
  0x1f   : > { %521 = vmatpush.msra.mxu1 %v479_v40  ;;  %v631_v40 = vld [vmem:[%s874_s3 + $0x8] ss:$0 sm:$0xff] }
  0x20   : > { %311 = vmatpush.msra.mxu0 %v286_v10  ;;  %615 = vmatpush.msra.mxu2 %v286_v10  ;;  %v827_v10 = vperm.slane %v766_v21, 7 }
  0x21   : > { %522 = vmatpush.msra.mxu1 %v478_v44 }
  0x22   : > { %312 = vmatpush.msra.mxu0 %v285_v11  ;;  %616 = vmatpush.msra.mxu2 %v285_v11 }
  0x23   : > { %523 = vmatpush.msra.mxu1 %v477_v47 }
  0x24   : > { %313 = vmatpush.msra.mxu0 %v284_v12  ;;  %617 = vmatpush.msra.mxu2 %v284_v12 }
  0x26   : > { %314 = vmatpush.msra.mxu0 %v283_v13  ;;  %618 = vmatpush.msra.mxu2 %v283_v13 }
  0x28   : > { %315 = vmatpush.msra.mxu0 %v282_v14  ;;  %619 = vmatpush.msra.mxu2 %v282_v14 }
  0x2a   : > { %316 = vmatpush.msra.mxu0 %v281_v15  ;;  %620 = vmatpush.msra.mxu2 %v281_v15 }
  0x2b   : > { %317 = vmatmul.f32.vlgmr.msra.gmra.mxu0 %v751_v16  ;;  %320 = vmatmul.f32.vlgmr.msra.gmra.mxu2 %v753_v17 }
  0xa8   : > { %v318_v24 = vpop.f32.mrf.mxu0 }
  0xa9   : > { %v319_v28 = vadd.f32 %v630_v20, %v318_v24 }
  0xab   : > { %v324_v32 = vmax.f32 %v319_v28, 0.0 }
  0xad   : > { %v335_v37 = vrot.slane %v324_v32, 4  ;;  %341 = vst.msk [vmem:[#allocation2 + $0x9] sm:$0xf] %vm340_vm1, %v324_v32 }
  0xae   : > { %v321_v39 = vpop.f32.mrf.mxu2 }
  0xaf   : > { %342 = vst.msk [vmem:[#allocation2 + $0x11] sm:$0xf] %vm340_vm1, %v335_v37  ;;  %v322_v41 = vadd.f32 %v630_v20, %v321_v39 }
  0xb1   : > { %v325_v45 = vmax.f32 %v322_v41, 0.0 }
  0xb3   : > { %343 = vst.msk [vmem:[#allocation2 + $0x19] sm:$0xf] %vm340_vm1, %v325_v45  ;;  %v336_v59 = vrot.slane %v325_v45, 4 }
  0xb4   : > { %v348_v50 = vld [vmem:[#allocation2 + $0x8] sm:$0xf] }
  0xb5   : > { %v361_v51 = vld [vmem:[#allocation2 + $0x9] sm:$0xf]  ;;  %v353_v54 = vmul.f32 %v775_v25, %v348_v50  ;;  %344 = vst.msk [vmem:[#allocation2 + $0x21] sm:$0xf] %vm340_vm1, %v336_v59 }
  0xb6   : > { %v374_v52 = vld [vmem:[#allocation2 + $0xa] sm:$0xf]  ;;  %v366_v55 = vmul.f32 %v778_v26, %v361_v51  ;;  %v349_v60 = vld [vmem:[#allocation2 + $0x10] sm:$0xf] }
  0xb7   : > { %v386_v56 = vld [vmem:[#allocation2 + $0x8] sm:$0xf]  ;;  %v362_v61 = vld [vmem:[#allocation2 + $0x11] sm:$0xf]  ;;  %v354_v0 = vmul.f32 %v775_v25, %v349_v60  ;;  %v379_v4 = vmul.f32 %v789_v35, %v374_v52 }
  0xb8   : > { %v399_v57 = vld [vmem:[#allocation2 + $0x9] sm:$0xf]  ;;  %v391_v62 = vmul.f32 %v804_v46, %v386_v56  ;;  %v367_v1 = vmul.f32 %v778_v26, %v362_v61  ;;  %v370_v2 = vadd.f32 %v366_v55, %v353_v54  ;;  %v375_v3 = vld [vmem:[#allocation2 + $0x12] sm:$0xf] }
  0xb9   : > { %v412_v63 = vld [vmem:[#allocation2 + $0xa] sm:$0xf]  ;;  %v387_v5 = vld [vmem:[#allocation2 + $0x10] sm:$0xf]  ;;  %v404_v8 = vmul.f32 %v810_v48, %v399_v57  ;;  %v380_v18 = vmul.f32 %v789_v35, %v375_v3 }
  0xba   : > { %v400_v6 = vld [vmem:[#allocation2 + $0x11] sm:$0xf]  ;;  %v395_v7 = vadd.f32 %v391_v62, %v382_v53  ;;  %v371_v11 = vadd.f32 %v367_v1, %v354_v0  ;;  %v383_v12 = vadd.f32 %v379_v4, %v370_v2  ;;  %v392_v13 = vmul.f32 %v804_v46, %v387_v5  ;;  %v350_v23 = vld [vmem:[#allocation2 + $0x18] sm:$0xf] }
  0xbb   : > { %v426_v9 = vld [vmem:[#allocation2 + $0x10] sm:$0xf]  ;;  %v417_v15 = vmul.f32 %v813_v49, %v412_v63  ;;  %v405_v19 = vmul.f32 %v810_v48, %v400_v6  ;;  %v363_v24 = vld [vmem:[#allocation2 + $0x19] sm:$0xf]  ;;  %v355_v29 = vmul.f32 %v775_v25, %v350_v23  ;;  %v632_v53 = vld [vmem:[%s875_s4] ss:$0 sm:$0xff] }
  0xbc   : > { %v413_v14 = vld [vmem:[#allocation2 + $0x12] sm:$0xf]  ;;  %v408_v20 = vadd.f32 %v404_v8, %v395_v7  ;;  %v431_v22 = vmul.f32 %v819_v58, %v426_v9  ;;  %v376_v21 = vld [vmem:[#allocation2 + $0x1a] sm:$0xf]  ;;  %v396_v27 = vadd.f32 %v392_v13, %v383_v12  ;;  %v368_v30 = vmul.f32 %v778_v26, %v363_v24  ;;  %v389_v54 = vld [vmem:[#allocation2 + $0x20] sm:$0xf] }
  0xbd   : > { %v439_v28 = vld [vmem:[#allocation2 + $0x11] sm:$0xf]  ;;  %v381_v31 = vmul.f32 %v789_v35, %v376_v21  ;;  %v388_v32 = vld [vmem:[#allocation2 + $0x18] sm:$0xf]  ;;  %v384_v36 = vadd.f32 %v380_v18, %v371_v11  ;;  %v418_v25 = vmul.f32 %v813_v49, %v413_v14  ;;  %v402_v55 = vld [vmem:[#allocation2 + $0x21] sm:$0xf]  ;;  %v394_v62 = vmul.f32 %v804_v46, %v389_v54 }
  0xbe   : > { %v401_v33 = vld [vmem:[#allocation2 + $0x19] sm:$0xf]  ;;  %v421_v34 = vadd.f32 %v417_v15, %v408_v20  ;;  %v393_v37 = vmul.f32 %v804_v46, %v388_v32  ;;  %v409_v41 = vadd.f32 %v405_v19, %v396_v27  ;;  %v452_v42 = vld [vmem:[#allocation2 + $0x12] sm:$0xf]  ;;  %v372_v26 = vadd.f32 %v368_v30, %v355_v29  ;;  %v428_v63 = vld [vmem:[#allocation2 + $0x20] sm:$0xf] }
  0xbf   : > { %v406_v38 = vmul.f32 %v810_v48, %v401_v33  ;;  %v427_v39 = vld [vmem:[#allocation2 + $0x18] sm:$0xf]  ;;  %v444_v35 = vmul.f32 %v827_v10, %v439_v28  ;;  %v457_v61 = vmul.f32 %v631_v40, %v452_v42  ;;  %v441_v1 = vld [vmem:[#allocation2 + $0x21] sm:$0xf]  ;;  %v433_v5 = vmul.f32 %v819_v58, %v428_v63  ;;  %v429_v7 = vld [vmem:[#allocation2 + $0x28] sm:$0xf] }
  0xc0   : > { %v414_v43 = vld [vmem:[#allocation2 + $0x1a] sm:$0xf]  ;;  %v397_v44 = vadd.f32 %v393_v37, %v384_v36  ;;  %v435_v47 = vadd.f32 %v431_v22, %v421_v34  ;;  %v385_v50 = vadd.f32 %v381_v31, %v372_v26  ;;  %v422_v51 = vadd.f32 %v418_v25, %v409_v41  ;;  %v415_v3 = vld [vmem:[#allocation2 + $0x22] sm:$0xf]  ;;  %v442_v18 = vld [vmem:[#allocation2 + $0x29] sm:$0xf] }
  0xc1   : > { %v440_v45 = vld [vmem:[#allocation2 + $0x19] sm:$0xf]  ;;  %v432_v52 = vmul.f32 %v819_v58, %v427_v39  ;;  %v419_v57 = vmul.f32 %v813_v49, %v414_v43  ;;  %v407_v9 = vmul.f32 %v810_v48, %v402_v55  ;;  %v454_v11 = vld [vmem:[#allocation2 + $0x22] sm:$0xf]  ;;  %v446_v14 = vmul.f32 %v827_v10, %v441_v1  ;;  %v455_v27 = vld [vmem:[#allocation2 + $0x2a] sm:$0xf] }
  0xc2   : > { %v410_v56 = vadd.f32 %v406_v38, %v397_v44  ;;  %v453_v59 = vld [vmem:[#allocation2 + $0x1a] sm:$0xf]  ;;  %v448_v60 = vadd.f32 %v444_v35, %v435_v47  ;;  %v445_v2 = vmul.f32 %v827_v10, %v440_v45  ;;  %v398_v8 = vadd.f32 %v394_v62, %v385_v50 }
  0xc3   : > { %v436_v0 = vadd.f32 %v432_v52, %v422_v51  ;;  %v458_v12 = vmul.f32 %v631_v40, %v453_v59  ;;  %v420_v20 = vmul.f32 %v813_v49, %v415_v3  ;;  %v434_v23 = vmul.f32 %v819_v58, %v429_v7 }
  0xc4   : > { %v423_v4 = vadd.f32 %v419_v57, %v410_v56  ;;  %v461_v6 = vadd.f32 %v457_v61, %v448_v60  ;;  %v411_v19 = vadd.f32 %v407_v9, %v398_v8  ;;  %v459_v28 = vmul.f32 %v631_v40, %v454_v11 }
  0xc5   : > { %v449_v13 = vadd.f32 %v445_v2, %v436_v0  ;;  %v447_v30 = vmul.f32 %v827_v10, %v442_v18  ;;  %v460_v34 = vmul.f32 %v631_v40, %v455_v27  ;;  %v633_v10 = vld [vmem:[%s877_s6] ss:$0 sm:$0xff] }
  0xc6   : > { %v469_v46 = vadd.f32 %v632_v53, %v461_v6  ;;  %v437_v15 = vadd.f32 %v433_v5, %v423_v4  ;;  %v424_v29 = vadd.f32 %v420_v20, %v411_v19 }
  0xc7   : > { %v462_v22 = vadd.f32 %v458_v12, %v449_v13 }
  0xc8   : > { %v473_v24 = vmax.f32 %v469_v46, 0.0  ;;  %v450_v21 = vadd.f32 %v446_v14, %v437_v15  ;;  %v438_v33 = vadd.f32 %v434_v23, %v424_v29 }
  0xc9   : > { %v470_v48 = vadd.f32 %v632_v53, %v462_v22 }
  0xca   : > { %494 = vst [vmem:[#allocation1] ss:$2 sm:$0xff] %v473_v24  ;;  %v463_v31 = vadd.f32 %v459_v28, %v450_v21  ;;  %v451_v49 = vadd.f32 %v447_v30, %v438_v33 }
  0xcb   : > { %v474_v32 = vmax.f32 %v470_v48, 0.0 }
  0xcc   : > { %v471_v36 = vadd.f32 %v632_v53, %v463_v31  ;;  %v464_v38 = vadd.f32 %v460_v34, %v451_v49 }
  0xcd   : > { %496 = vst [vmem:[#allocation1 + $0x1] ss:$2 sm:$0xff] %v474_v32 }
  0xce   : > { %v475_v37 = vmax.f32 %v471_v36, 0.0  ;;  %v472_v58 = vadd.f32 %v632_v53, %v464_v38 }
  0xd0   : > { %498 = vst [vmem:[#allocation1 + $0x10] ss:$2 sm:$0xff] %v475_v37  ;;  %v476_v39 = vmax.f32 %v472_v58, 0.0 }
  0xd2   : > { %500 = vst [vmem:[#allocation1 + $0x11] ss:$2 sm:$0xff] %v476_v39 }
  0xd4   : > { %v501_v41 = vld.sshfl [vmem:[#allocation1] sm:$0xff pattern:$0x75316420] }
  0xd5   : > { %599 = vmatmul.msk.f32.vlgmr.msra.gmra.mxu1 %vm503_vm2, %v501_v41 }
  0xd9   : > { %v502_v25 = vld.sshfl [vmem:[#allocation1 + $0x10] sm:$0xff pattern:$0x75316420] }
  0xdd   : > { %600 = vmatmul.msk.f32.gmra.mxu1 %vm503_vm2, %v502_v25 }
 0x152   : > { %v525_v40 = vpop.f32.mrf.mxu1 }
 0x153   : > { %v526_v42 = vadd.f32 %v633_v10, %v525_v40 }
 0x155   : > { %v531_v26 = vadd.f32 %v526_v42, %v751_v16 }
 0x157   : > { %533 = vst [vmem:[%s278_s30] sm:$0xff] %v531_v26 }
 0x15a   : > { %v528_v43 = vpop.f32.mrf.mxu1 }
 0x15b   : > { %v529_v35 = vadd.f32 %v633_v10, %v528_v43 }
 0x15d   : > { %v532_v44 = vadd.f32 %v529_v35, %v753_v17 }
 0x15f   : > { %534 = vst [vmem:[%s278_s30 + $0x8] sm:$0xff] %v532_v44 }
 0x160 PF: > { %s17_s24 = sadd.s32 1, %s640_s24  }
 0x161   : > { %p14_p4 = scmp.ge.s32.totalorder %s17_s24, 4  }
 0x163   :  { %16 = sbr.rel (!%p14_p4) target bundleno = 1 (0x1), region = 83 }

// kernel: feature_extractor.5
= control target key start
LH: loop header
LB: loop body
LE: loop exit
PB: predicated region body
PF: predicated region fallthrough
CT: control target
= control target key end

     0   :  { %s790_s24 = smov 0   ;;  %s1004_s0 = inlined_call_operand.vmem [shape: f32[2,64,128], index: 0, kind: input, shape index: {}]   ;;  %s1005_s1 = inlined_call_operand.vmem [shape: f32[128,48], index: 1, kind: input, shape index: {}]   ;;  %s1006_s2 = inlined_call_operand.vmem [shape: f32[1,48], index: 2, kind: input, shape index: {}]   ;;  %s1007_s3 = inlined_call_operand.vmem [shape: f32[9,48], index: 3, kind: input, shape index: {}]   ;;  %s1008_s4 = inlined_call_operand.vmem [shape: f32[1,48], index: 4, kind: input, shape index: {}]   ;;  %s1009_s5 = inlined_call_operand.vmem [shape: f32[48,128], index: 5, kind: input, shape index: {}]   ;;  %s1010_s6 = inlined_call_operand.vmem [shape: f32[1,128], index: 6, kind: input, shape index: {}]   ;;  %s1011_s7 = inlined_call_operand.vmem [shape: f32[2,16,128], index: 7, kind: output, shape index: {}]  }
   0x1 LB: > { %s681_s25 = sadd.s32 4294967295, %s747_s24   ;;  %p685_p0 = scmp.ge.s32.totalorder %s747_s24, 1  ;;  %s747_s24 = sphi %s790_s24, %s17_s24  }
   0x2   : > { %p237_p1 = scmp.lt.s32.totalorder %s747_s24, 3 }
   0x4   : > { %p238_p2 = pnand %p685_p0, %p237_p1 }
   0x5   : > { %p269_p3 = scmp.lt.s32.totalorder (!%p238_p2), %s681_s25, 1 }
   0x6   : > { %241 = sbr.rel (%p238_p2) target bundleno = 365 (0x16d), region = 48 }
   0xb   : > { %v302_v0 = vld [vmem:[%s1005_s1 + $0x78] sm:$0xff]  ;;  %v301_v1 = vld [vmem:[%s1005_s1 + $0x70] sm:$0xff]  ;;  %v300_v2 = vld [vmem:[%s1005_s1 + $0x68] sm:$0xff]  ;;  %s1013_s25 = smov (!%p269_p3, %s681_s25), 1  ;;  %vm356_vm0 = vcmask 392192   ;;  %v749_v24 = vmov 0.0  }
   0xc   : > { %307 = vmatpush.msra.mxu0 %v302_v0  ;;  %696 = vmatpush.msra.mxu2 %v302_v0  ;;  %v299_v3 = vld [vmem:[%s1005_s1 + $0x60] sm:$0xff]  ;;  %v298_v4 = vld [vmem:[%s1005_s1 + $0x58] sm:$0xff]  ;;  %v297_v5 = vld [vmem:[%s1005_s1 + $0x50] sm:$0xff]  ;;  %s694_s8 = sshll.u32 %s1013_s25, 6  ;;  %357 = vst.msk [vmem:[#allocation2] sm:$0xff] %vm356_vm0, %v749_v24  ;;  %vm358_vm1 = vcmask 386048  }
   0xd   : > { %697 = vmatpush.msra.mxu3 %v302_v0  ;;  %v296_v6 = vld [vmem:[%s1005_s1 + $0x48] sm:$0xff]  ;;  %v295_v7 = vld [vmem:[%s1005_s1 + $0x40] sm:$0xff]  ;;  %v294_v8 = vld [vmem:[%s1005_s1 + $0x38] sm:$0xff]  ;;  %s273_s15 = scalar_lea.vmem %s1004_s0, %s694_s8  ;;  %360 = vst.msk [vmem:[#allocation2 + $0x10] sm:$0xff] %vm356_vm0, %v749_v24  ;;  %s695_s17 = sshll.u32 %s1013_s25, 4 }
   0xe   : > { %308 = vmatpush.msra.mxu0 %v301_v1  ;;  %698 = vmatpush.msra.mxu2 %v301_v1  ;;  %v293_v9 = vld [vmem:[%s1005_s1 + $0x30] sm:$0xff]  ;;  %v292_v10 = vld [vmem:[%s1005_s1 + $0x28] sm:$0xff]  ;;  %v291_v11 = vld [vmem:[%s1005_s1 + $0x20] sm:$0xff]  ;;  %359 = vst.msk [vmem:[#allocation2 + $0x8] sm:$0x3] %vm358_vm1, %v749_v24  ;;  %s278_s22 = scalar_lea.vmem %s1011_s7, %s695_s17 }
   0xf   : > { %699 = vmatpush.msra.mxu3 %v301_v1  ;;  %v290_v12 = vld [vmem:[%s1005_s1 + $0x18] sm:$0xff]  ;;  %v289_v13 = vld [vmem:[%s1005_s1 + $0x10] sm:$0xff]  ;;  %v288_v14 = vld [vmem:[%s1005_s1 + $0x8] sm:$0xff]  ;;  %361 = vst.msk [vmem:[#allocation2 + $0x18] sm:$0x3] %vm358_vm1, %v749_v24 }
  0x10   : > { %309 = vmatpush.msra.mxu0 %v300_v2  ;;  %700 = vmatpush.msra.mxu2 %v300_v2  ;;  %v287_v15 = vld [vmem:[%s1005_s1] sm:$0xff]  ;;  %v282_v17 = vld [vmem:[%s273_s15 + $0x18] sm:$0xff]  ;;  %v284_v18 = vld [vmem:[%s273_s15 + $0x28] sm:$0xff]  ;;  %362 = vst.msk [vmem:[#allocation2 + $0x20] sm:$0xff] %vm356_vm0, %v749_v24 }
  0x11   : > { %701 = vmatpush.msra.mxu3 %v300_v2  ;;  %v279_v16 = vld [vmem:[%s273_s15] sm:$0xff]  ;;  %v280_v19 = vld [vmem:[%s273_s15 + $0x8] sm:$0xff]  ;;  %v285_v21 = vld [vmem:[%s273_s15 + $0x30] sm:$0xff]  ;;  %363 = vst.msk [vmem:[#allocation2 + $0x28] sm:$0x3] %vm358_vm1, %v749_v24 }
  0x12   : > { %310 = vmatpush.msra.mxu0 %v299_v3  ;;  %702 = vmatpush.msra.mxu2 %v299_v3  ;;  %v283_v20 = vld [vmem:[%s273_s15 + $0x20] sm:$0xff]  ;;  %v281_v22 = vld [vmem:[%s273_s15 + $0x10] sm:$0xff]  ;;  %v286_v23 = vld [vmem:[%s273_s15 + $0x38] sm:$0xff]  ;;  %364 = vst.msk [vmem:[#allocation2 + $0x30] sm:$0xff] %vm356_vm0, %v749_v24 }
  0x13   : > { %703 = vmatpush.msra.mxu3 %v299_v3  ;;  %365 = vst.msk [vmem:[#allocation2 + $0x38] sm:$0x3] %vm358_vm1, %v749_v24  ;;  %v877_v25 = vld [vmem:[%s1006_s2] ss:$0 sm:$0xff]  ;;  %v557_v46 = vld [vmem:[%s1009_s5 + $0x28] sm:$0xff]  ;;  %v555_v53 = vld [vmem:[%s1009_s5 + $0x18] sm:$0xff] }
  0x14   : > { %311 = vmatpush.msra.mxu0 %v298_v4  ;;  %704 = vmatpush.msra.mxu2 %v298_v4  ;;  %366 = vst.msk [vmem:[#allocation2 + $0x40] sm:$0xff] %vm356_vm0, %v749_v24  ;;  %v882_v27 = vld [vmem:[%s1007_s3] sm:$0xff]  ;;  %v389_v32 = vld [vmem:[#allocation2] ss:$2 sm:$0xf]  ;;  %v554_v54 = vld [vmem:[%s1009_s5 + $0x10] sm:$0xff] }
  0x15   : > { %705 = vmatpush.msra.mxu3 %v298_v4  ;;  %367 = vst.msk [vmem:[#allocation2 + $0x48] sm:$0x3] %vm358_vm1, %v749_v24  ;;  %v886_v30 = vperm.slane %v882_v27, 0  ;;  %v889_v31 = vperm.slane %v882_v27, 1  ;;  %v895_v36 = vperm.slane %v882_v27, 2  ;;  %v556_v47 = vld [vmem:[%s1009_s5 + $0x20] sm:$0xff]  ;;  %589 = vmatpush.msra.mxu1 %v557_v46 }
  0x16   : > { %312 = vmatpush.msra.mxu0 %v297_v5  ;;  %706 = vmatpush.msra.mxu2 %v297_v5  ;;  %368 = vst.msk [vmem:[#allocation2 + $0x50] sm:$0xff] %vm356_vm0, %v749_v24  ;;  %v406_v33 = vld [vmem:[#allocation2 + $0x1] ss:$2 sm:$0xf]  ;;  %v908_v50 = vperm.slane %v882_v27, 3  ;;  %v924_v60 = vperm.slane %v882_v27, 4 }
  0x17   : > { %707 = vmatpush.msra.mxu3 %v297_v5  ;;  %369 = vst.msk [vmem:[#allocation2 + $0x58] sm:$0x3] %vm358_vm1, %v749_v24  ;;  %v397_v34 = vmul.f32 %v886_v30, %v389_v32  ;;  %v414_v35 = vmul.f32 %v889_v31, %v406_v33  ;;  %v423_v39 = vld [vmem:[#allocation2 + $0x2] ss:$2 sm:$0xf]  ;;  %590 = vmatpush.msra.mxu1 %v556_v47  ;;  %v552_v0 = vld [vmem:[%s1009_s5] sm:$0xff] }
  0x18   : > { %313 = vmatpush.msra.mxu0 %v296_v6  ;;  %708 = vmatpush.msra.mxu2 %v296_v6  ;;  %370 = vst.msk [vmem:[#allocation2 + $0x60] sm:$0xff] %vm356_vm0, %v749_v24  ;;  %v431_v49 = vmul.f32 %v895_v36, %v423_v39  ;;  %v553_v59 = vld [vmem:[%s1009_s5 + $0x8] sm:$0xff] }
  0x19   : > { %709 = vmatpush.msra.mxu3 %v296_v6  ;;  %371 = vst.msk [vmem:[#allocation2 + $0x68] sm:$0x3] %vm358_vm1, %v749_v24  ;;  %v418_v48 = vadd.f32 %v414_v35, %v397_v34  ;;  %591 = vmatpush.msra.mxu1 %v555_v53  ;;  %v934_v6 = vperm.slane %v882_v27, 5 }
  0x1a   : > { %314 = vmatpush.msra.mxu0 %v295_v7  ;;  %710 = vmatpush.msra.mxu2 %v295_v7  ;;  %372 = vst.msk [vmem:[#allocation2 + $0x70] sm:$0xff] %vm356_vm0, %v749_v24 }
  0x1b   : > { %711 = vmatpush.msra.mxu3 %v295_v7  ;;  %373 = vst.msk [vmem:[#allocation2 + $0x78] sm:$0x3] %vm358_vm1, %v749_v24  ;;  %v435_v55 = vadd.f32 %v431_v49, %v418_v48  ;;  %592 = vmatpush.msra.mxu1 %v554_v54  ;;  %v937_v7 = vperm.slane %v882_v27, 6  ;;  %v967_v48 = vld [vmem:[%s1008_s4] ss:$0 sm:$0xff] }
  0x1c   : > { %315 = vmatpush.msra.mxu0 %v294_v8  ;;  %712 = vmatpush.msra.mxu2 %v294_v8  ;;  %374 = vst.msk [vmem:[#allocation2 + $0x80] sm:$0xff] %vm356_vm0, %v749_v24 }
  0x1d   : > { %713 = vmatpush.msra.mxu3 %v294_v8  ;;  %375 = vst.msk [vmem:[#allocation2 + $0x88] sm:$0x3] %vm358_vm1, %v749_v24  ;;  %593 = vmatpush.msra.mxu1 %v553_v59 }
  0x1e   : > { %316 = vmatpush.msra.mxu0 %v293_v9  ;;  %714 = vmatpush.msra.mxu2 %v293_v9 }
  0x1f   : > { %715 = vmatpush.msra.mxu3 %v293_v9  ;;  %594 = vmatpush.msra.mxu1 %v552_v0 }
  0x20   : > { %317 = vmatpush.msra.mxu0 %v292_v10  ;;  %716 = vmatpush.msra.mxu2 %v292_v10 }
  0x21   : > { %717 = vmatpush.msra.mxu3 %v292_v10 }
  0x22   : > { %318 = vmatpush.msra.mxu0 %v291_v11  ;;  %718 = vmatpush.msra.mxu2 %v291_v11 }
  0x23   : > { %719 = vmatpush.msra.mxu3 %v291_v11 }
  0x24   : > { %319 = vmatpush.msra.mxu0 %v290_v12  ;;  %720 = vmatpush.msra.mxu2 %v290_v12 }
  0x25   : > { %721 = vmatpush.msra.mxu3 %v290_v12 }
  0x26   : > { %320 = vmatpush.msra.mxu0 %v289_v13  ;;  %722 = vmatpush.msra.mxu2 %v289_v13 }
  0x27   : > { %723 = vmatpush.msra.mxu3 %v289_v13 }
  0x28   : > { %321 = vmatpush.msra.mxu0 %v288_v14  ;;  %724 = vmatpush.msra.mxu2 %v288_v14 }
  0x29   : > { %725 = vmatpush.msra.mxu3 %v288_v14 }
  0x2a   : > { %322 = vmatpush.msra.mxu0 %v287_v15  ;;  %726 = vmatpush.msra.mxu2 %v287_v15 }
  0x2b   : > { %727 = vmatpush.msra.mxu3 %v287_v15  ;;  %323 = vmatmul.f32.vlgmr.msra.gmra.mxu0 %v279_v16 }
  0x2c   : > { %332 = vmatmul.f32.vlgmr.msra.gmra.mxu2 %v282_v17  ;;  %338 = vmatmul.f32.vlgmr.msra.gmra.mxu3 %v284_v18 }
  0x33   : > { %326 = vmatmul.f32.gmra.mxu0 %v280_v19  ;;  %v941_v19 = vperm.slane %v882_v27, 7 }
  0x34   : > { %335 = vmatmul.f32.gmra.mxu2 %v283_v20  ;;  %341 = vmatmul.f32.gmra.mxu3 %v285_v21 }
  0x3b   : > { %329 = vmatmul.f32.gmra.mxu0 %v281_v22 }
  0x3c   : > { %344 = vmatmul.f32.gmra.mxu3 %v286_v23 }
  0xa8   : > { %v324_v26 = vpop.f32.mrf.mxu0 }
  0xa9   : > { %v325_v28 = vadd.f32 %v877_v25, %v324_v26  ;;  %v949_v26 = vld [vmem:[%s1007_s3 + $0x8] ss:$0 sm:$0xff] }
  0xab   : > { %v348_v29 = vmax.f32 %v325_v28, 0.0 }
  0xad   : > { %379 = vst.msk [vmem:[#allocation2 + $0x11] sm:$0xff] %vm356_vm0, %v348_v29 }
  0xaf   : > { %v333_v37 = vpop.f32.mrf.mxu2  ;;  %v339_v38 = vpop.f32.mrf.mxu3 }
  0xb0   : > { %v334_v40 = vadd.f32 %v877_v25, %v333_v37  ;;  %v340_v41 = vadd.f32 %v877_v25, %v339_v38  ;;  %v327_v42 = vpop.f32.mrf.mxu0 }
  0xb1   : > { %v328_v43 = vadd.f32 %v877_v25, %v327_v42 }
  0xb2   : > { %v351_v44 = vmax.f32 %v334_v40, 0.0  ;;  %v353_v45 = vmax.f32 %v340_v41, 0.0 }
  0xb3   : > { %v349_v51 = vmax.f32 %v328_v43, 0.0 }
  0xb4   : > { %v439_v52 = vld [vmem:[#allocation2 + $0x10] ss:$2 sm:$0xf]  ;;  %382 = vst.msk [vmem:[#allocation2 + $0x41] sm:$0xff] %vm356_vm0, %v351_v44 }
  0xb5   : > { %384 = vst.msk [vmem:[#allocation2 + $0x61] sm:$0xff] %vm356_vm0, %v353_v45  ;;  %v447_v56 = vmul.f32 %v908_v50, %v439_v52  ;;  %v456_v63 = vld [vmem:[#allocation2 + $0x11] ss:$2 sm:$0xf] }
  0xb6   : > { %380 = vst.msk [vmem:[#allocation2 + $0x21] sm:$0xff] %vm356_vm0, %v349_v51  ;;  %v464_v4 = vmul.f32 %v924_v60, %v456_v63  ;;  %v473_v5 = vld [vmem:[#allocation2 + $0x12] ss:$2 sm:$0xf] }
  0xb7   : > { %v336_v57 = vpop.f32.mrf.mxu2  ;;  %v342_v58 = vpop.f32.mrf.mxu3  ;;  %v451_v1 = vadd.f32 %v447_v56, %v435_v55  ;;  %v481_v20 = vmul.f32 %v934_v6, %v473_v5 }
  0xb8   : > { %v337_v61 = vadd.f32 %v877_v25, %v336_v57  ;;  %v330_v62 = vpop.f32.mrf.mxu0  ;;  %v343_v2 = vadd.f32 %v877_v25, %v342_v58 }
  0xb9   : > { %v331_v3 = vadd.f32 %v877_v25, %v330_v62  ;;  %v468_v11 = vadd.f32 %v464_v4, %v451_v1 }
  0xba   : > { %v352_v8 = vmax.f32 %v337_v61, 0.0  ;;  %v354_v16 = vmax.f32 %v343_v2, 0.0 }
  0xbb   : > { %v393_v9 = vld [vmem:[#allocation2 + $0x40] ss:$2 sm:$0xf]  ;;  %v410_v10 = vld [vmem:[#allocation2 + $0x41] ss:$2 sm:$0xf]  ;;  %v485_v35 = vadd.f32 %v481_v20, %v468_v11 }
  0xbc   : > { %v395_v12 = vld [vmem:[#allocation2 + $0x60] ss:$2 sm:$0xf]  ;;  %v412_v13 = vld [vmem:[#allocation2 + $0x61] ss:$2 sm:$0xf]  ;;  %v399_v21 = vmul.f32 %v886_v30, %v393_v9  ;;  %v416_v22 = vmul.f32 %v889_v31, %v410_v10 }
  0xbd   : > { %v427_v15 = vld [vmem:[#allocation2 + $0x42] ss:$2 sm:$0xf]  ;;  %v350_v17 = vmax.f32 %v331_v3, 0.0  ;;  %v400_v28 = vmul.f32 %v886_v30, %v395_v12  ;;  %383 = vst.msk [vmem:[#allocation2 + $0x51] sm:$0xff] %vm356_vm0, %v352_v8 }
  0xbe   : > { %v429_v23 = vld [vmem:[#allocation2 + $0x62] ss:$2 sm:$0xf]  ;;  %v408_v29 = vld [vmem:[#allocation2 + $0x21] ss:$2 sm:$0xf]  ;;  %v420_v38 = vadd.f32 %v416_v22, %v399_v21  ;;  %v433_v39 = vmul.f32 %v895_v36, %v427_v15 }
  0xbf   : > { %v345_v14 = vpop.f32.mrf.mxu3  ;;  %v391_v24 = vld [vmem:[#allocation2 + $0x20] ss:$2 sm:$0xf]  ;;  %v507_v33 = vld [vmem:[#allocation2 + $0x21] ss:$2 sm:$0xf]  ;;  %v434_v43 = vmul.f32 %v895_v36, %v429_v23  ;;  %v415_v45 = vmul.f32 %v889_v31, %v408_v29 }
  0xc0   : > { %v346_v18 = vadd.f32 %v877_v25, %v345_v14  ;;  %v417_v25 = vmul.f32 %v889_v31, %v412_v13  ;;  %v490_v27 = vld [vmem:[#allocation2 + $0x20] ss:$2 sm:$0xf]  ;;  %385 = vst.msk [vmem:[#allocation2 + $0x71] sm:$0xff] %vm356_vm0, %v354_v16  ;;  %v515_v41 = vmul.f32 %v941_v19, %v507_v33  ;;  %v398_v44 = vmul.f32 %v886_v30, %v391_v24 }
  0xc1   : > { %v498_v32 = vmul.f32 %v937_v7, %v490_v27  ;;  %v524_v37 = vld [vmem:[#allocation2 + $0x22] ss:$2 sm:$0xf]  ;;  %381 = vst.msk [vmem:[#allocation2 + $0x31] sm:$0xff] %vm356_vm0, %v350_v17  ;;  %v437_v49 = vadd.f32 %v433_v39, %v420_v38 }
  0xc2   : > { %v355_v34 = vmax.f32 %v346_v18, 0.0  ;;  %v421_v42 = vadd.f32 %v417_v25, %v400_v28  ;;  %v532_v47 = vmul.f32 %v949_v26, %v524_v37  ;;  %v425_v51 = vld [vmem:[#allocation2 + $0x22] ss:$2 sm:$0xf]  ;;  %v419_v54 = vadd.f32 %v415_v45, %v398_v44 }
  0xc3   : > { %v502_v40 = vadd.f32 %v498_v32, %v485_v35  ;;  %v494_v61 = vld [vmem:[#allocation2 + $0x60] ss:$2 sm:$0xf]  ;;  %v432_v62 = vmul.f32 %v895_v36, %v425_v51  ;;  %v511_v18 = vld [vmem:[#allocation2 + $0x61] ss:$2 sm:$0xf] }
  0xc4   : > { %386 = vst.msk [vmem:[#allocation2 + $0x81] sm:$0xff] %vm356_vm0, %v355_v34  ;;  %v438_v53 = vadd.f32 %v434_v43, %v421_v42  ;;  %v443_v55 = vld [vmem:[#allocation2 + $0x50] ss:$2 sm:$0xf]  ;;  %v500_v24 = vmul.f32 %v937_v7, %v494_v61  ;;  %v517_v37 = vmul.f32 %v941_v19, %v511_v18 }
  0xc5   : > { %v519_v46 = vadd.f32 %v515_v41, %v502_v40  ;;  %v460_v56 = vld [vmem:[#allocation2 + $0x51] ss:$2 sm:$0xf]  ;;  %v449_v30 = vmul.f32 %v908_v50, %v443_v55  ;;  %v477_v57 = vld [vmem:[#allocation2 + $0x52] ss:$2 sm:$0xf]  ;;  %v436_v9 = vadd.f32 %v432_v62, %v419_v54 }
  0xc6   : > { %v466_v31 = vmul.f32 %v924_v60, %v460_v56  ;;  %v483_v3 = vmul.f32 %v934_v6, %v477_v57  ;;  %v492_v17 = vld [vmem:[#allocation2 + $0x40] ss:$2 sm:$0xf]  ;;  %v509_v34 = vld [vmem:[#allocation2 + $0x41] ss:$2 sm:$0xf] }
  0xc7   : > { %v536_v52 = vadd.f32 %v532_v47, %v519_v46  ;;  %v445_v58 = vld [vmem:[#allocation2 + $0x70] ss:$2 sm:$0xf]  ;;  %v462_v0 = vld [vmem:[#allocation2 + $0x71] ss:$2 sm:$0xf]  ;;  %v453_v2 = vadd.f32 %v449_v30, %v437_v49 }
  0xc8   : > { %v450_v63 = vmul.f32 %v908_v50, %v445_v58  ;;  %v479_v1 = vld [vmem:[#allocation2 + $0x72] ss:$2 sm:$0xf]  ;;  %v467_v4 = vmul.f32 %v924_v60, %v462_v0  ;;  %v458_v8 = vld [vmem:[#allocation2 + $0x31] ss:$2 sm:$0xf] }
  0xc9   : > { %v544_v59 = vadd.f32 %v967_v48, %v536_v52  ;;  %v441_v5 = vld [vmem:[#allocation2 + $0x30] ss:$2 sm:$0xf]  ;;  %v484_v11 = vmul.f32 %v934_v6, %v479_v1  ;;  %v470_v36 = vadd.f32 %v466_v31, %v453_v2  ;;  %v465_v22 = vmul.f32 %v924_v60, %v458_v8  ;;  %v528_v33 = vld [vmem:[#allocation2 + $0x62] ss:$2 sm:$0xf] }
  0xca   : > { %v454_v10 = vadd.f32 %v450_v63, %v438_v53  ;;  %v448_v12 = vmul.f32 %v908_v50, %v441_v5  ;;  %v475_v13 = vld [vmem:[#allocation2 + $0x32] ss:$2 sm:$0xf]  ;;  %v499_v60 = vmul.f32 %v937_v7, %v492_v17  ;;  %v526_v41 = vld [vmem:[#allocation2 + $0x42] ss:$2 sm:$0xf]  ;;  %v534_v43 = vmul.f32 %v949_v26, %v528_v33 }
  0xcb   : > { %v496_v14 = vld [vmem:[#allocation2 + $0x80] ss:$2 sm:$0xf]  ;;  %v513_v15 = vld [vmem:[#allocation2 + $0x81] ss:$2 sm:$0xf]  ;;  %v487_v28 = vadd.f32 %v483_v3, %v470_v36  ;;  %v482_v50 = vmul.f32 %v934_v6, %v475_v13  ;;  %v516_v6 = vmul.f32 %v941_v19, %v509_v34  ;;  %v533_v49 = vmul.f32 %v949_v26, %v526_v41 }
  0xcc   : > { %v548_v16 = vmax.f32 %v544_v59, 0.0  ;;  %v471_v20 = vadd.f32 %v467_v4, %v454_v10  ;;  %v452_v21 = vadd.f32 %v448_v12, %v436_v9  ;;  %v501_v23 = vmul.f32 %v937_v7, %v496_v14  ;;  %v530_v25 = vld [vmem:[#allocation2 + $0x82] ss:$2 sm:$0xf] }
  0xcd   : > { %v518_v32 = vmul.f32 %v941_v19, %v513_v15  ;;  %v504_v35 = vadd.f32 %v500_v24, %v487_v28  ;;  %v535_v40 = vmul.f32 %v949_v26, %v530_v25  ;;  %v740_v26 = vld [vmem:[%s1010_s6] ss:$0 sm:$0xff] }
  0xce   : > { %566 = vst [vmem:[#allocation1] ss:$2 sm:$0xff] %v548_v16  ;;  %v469_v29 = vadd.f32 %v465_v22, %v452_v21  ;;  %v488_v27 = vadd.f32 %v484_v11, %v471_v20 }
  0xcf   : > { %v521_v42 = vadd.f32 %v517_v37, %v504_v35 }
  0xd0   : > { %v486_v38 = vadd.f32 %v482_v50, %v469_v29  ;;  %v505_v39 = vadd.f32 %v501_v23, %v488_v27 }
  0xd1   : > { %v538_v46 = vadd.f32 %v534_v43, %v521_v42 }
  0xd2   : > { %v503_v44 = vadd.f32 %v499_v60, %v486_v38  ;;  %v522_v45 = vadd.f32 %v518_v32, %v505_v39 }
  0xd3   : > { %v546_v7 = vadd.f32 %v967_v48, %v538_v46 }
  0xd4   : > { %v520_v47 = vadd.f32 %v516_v6, %v503_v44  ;;  %v539_v51 = vadd.f32 %v535_v40, %v522_v45 }
  0xd5   : > { %v550_v54 = vmax.f32 %v546_v7, 0.0 }
  0xd6   : > { %v537_v52 = vadd.f32 %v533_v49, %v520_v47  ;;  %v547_v53 = vadd.f32 %v967_v48, %v539_v51 }
  0xd7   : > { %570 = vst [vmem:[#allocation1 + $0x10] ss:$2 sm:$0xff] %v550_v54 }
  0xd8   : > { %v545_v55 = vadd.f32 %v967_v48, %v537_v52  ;;  %v551_v56 = vmax.f32 %v547_v53, 0.0 }
  0xda   : > { %v549_v30 = vmax.f32 %v545_v55, 0.0  ;;  %572 = vst [vmem:[#allocation1 + $0x11] ss:$2 sm:$0xff] %v551_v56 }
  0xdc   : > { %568 = vst [vmem:[#allocation1 + $0x1] ss:$2 sm:$0xff] %v549_v30 }
  0xe1   : > { %v574_v31 = vld.sshfl [vmem:[#allocation1 + $0x10] sm:$0xff pattern:$0x75316420] }
  0xe3   : > { %v573_v19 = vld.sshfl [vmem:[#allocation1] sm:$0xff pattern:$0x75316420] }
  0xe4   : > { %690 = vmatmul.msk.f32.vlgmr.msra.gmra.mxu1 %vm356_vm0, %v573_v19 }
  0xec   : > { %691 = vmatmul.msk.f32.gmra.mxu1 %vm356_vm0, %v574_v31 }
 0x161   : > { %v596_v48 = vpop.f32.mrf.mxu1 }
 0x162   : > { %v597_v57 = vadd.f32 %v740_v26, %v596_v48 }
 0x164   : > { %602 = vst [vmem:[%s278_s22] sm:$0xff] %v597_v57 }
 0x169   : > { %v599_v58 = vpop.f32.mrf.mxu1 }
 0x16a   : > { %v600_v59 = vadd.f32 %v740_v26, %v599_v58 }
 0x16c   : > { %603 = vst [vmem:[%s278_s22 + $0x8] sm:$0xff] %v600_v59 }
 0x16d PF: > { %s17_s24 = sadd.s32 1, %s747_s24  }
 0x16e   : > { %p14_p4 = scmp.ge.s32.totalorder %s17_s24, 4  }
 0x170   :  { %16 = sbr.rel (!%p14_p4) target bundleno = 1 (0x1), region = 116 }

// kernel: feature_extractor.7
= control target key start
LH: loop header
LB: loop body
LE: loop exit
PB: predicated region body
PF: predicated region fallthrough
CT: control target
= control target key end

     0   :  { %12 = vsyncpa [#allocation4], 0  ;;  %s1041_s0 = inlined_call_operand.vmem [shape: f32[2,16,128], index: 0, kind: input, shape index: {}]   ;;  %s1042_s1 = inlined_call_operand.vmem [shape: f32[128,72], index: 1, kind: input, shape index: {}]   ;;  %s1043_s2 = inlined_call_operand.vmem [shape: f32[1,72], index: 2, kind: input, shape index: {}]   ;;  %s1044_s3 = inlined_call_operand.vmem [shape: f32[9,72], index: 3, kind: input, shape index: {}]   ;;  %s1045_s4 = inlined_call_operand.vmem [shape: f32[1,72], index: 4, kind: input, shape index: {}]   ;;  %s1046_s5 = inlined_call_operand.vmem [shape: f32[72,128], index: 5, kind: input, shape index: {}]   ;;  %s1047_s6 = inlined_call_operand.vmem [shape: f32[1,128], index: 6, kind: input, shape index: {}]   ;;  %s1048_s7 = inlined_call_operand.hbm [shape: f32[2,16,128], index: 7, kind: output, shape index: {}]  }
   0x1   :  { %14 = vsyncpa [#allocation4 + $0x1], 0  ;;  %s796_s24 = smov 0   ;;  %s798_s25 = smov 0  }
   0x2   :  { %s800_s26 = smov 0   ;;  %s802_s27 = smov 0  }
   0x3 LB: > { %s817_s28 = sadd.s32 4294967295, %s751_s27   ;;  %s611_s29 = sadd.s32 4294967294, %s751_s27   ;;  %s751_s27 = sphi %s802_s27, %s1054_s27   ;;  %s747_s26 = sphi %s800_s26, %s1053_s26   ;;  %s743_s25 = sphi %s798_s25, %s1052_s25   ;;  %s739_s24 = sphi %s796_s24, %s1051_s24  }
   0x4   : > { %s821_s30 = sadd.s32 1, %s751_s27   ;;  %s179_s8 = sadd.s32 1, %s747_s26 }
   0x5   : > { %s176_s9 = ssub.s32 %s751_s27, %s821_s30  ;;  %p189_p0 = scmp.ne.s32.totalorder %s747_s26, %s743_s25 }
   0x6   : > { %p177_p1 = scmp.eq.s32.totalorder %s176_s9, 0  ;;  %p190_p2 = scmp.eq.s32.totalorder %s817_s28, 1 }
   0x7   : > { %p195_p3 = scmp.ne.s32.totalorder %s743_s25, %s739_s24  ;;  %p196_p4 = scmp.eq.s32.totalorder %s611_s29, 1 }
   0x8   : > { %s832_s10 = scalar_select %p177_p1, %s747_s26, %s179_s8  }
   0x9   : > { %p834_p5 = por %p190_p2, %p189_p0  ;;  %p838_p6 = por %p196_p4, %p195_p3 }
   0xa   : > { %p614_p7 = scmp.ge.s32.totalorder %s751_s27, 1  ;;  %p240_p8 = scmp.lt.s32.totalorder %s751_s27, 3 }
   0xc   : > { %p241_p9 = pnand %p614_p7, %p240_p8 }
   0xd   : > { %p272_p10 = scmp.lt.s32.totalorder (!%p241_p9), %s817_s28, 1  ;;  %s269_s20 = sand.u32 (!%p241_p9), 1, %s743_s25  }
   0xe   : > { %244 = sbr.rel (%p241_p9) target bundleno = 363 (0x16b), region = 48  ;;  %s615_s23 = sshll.u32 (!%p241_p9), %s269_s20, 4 }
   0xf   : > { %s626_s29 = sshll.u32 (!%p241_p9), %s817_s28, 4  ;;  %s271_s8 = scalar_lea.vmem (!%p241_p9), [#allocation3], %s615_s23 }
  0x10   : > { %s545_s14 = scalar_lea.hbm (!%p241_p9), %s1048_s7, %s626_s29  ;;  %s546_s15 = sshll.u32 (!%p241_p9), %s271_s8, 4  ;;  %s547_s15 = int_to_ptr.vmem [resolvable:$true] %s546_s15 }
  0x11   : > { %s548_s16 = sshll.u32 (!%p241_p9), %s545_s14, 4  ;;  %s534_s17 = scalar_lea.sflag (!%p241_p9), [#allocation4], %s269_s20  ;;  %s549_s16 = int_to_ptr.hbm [resolvable:$true] %s548_s16 }
  0x13   : > { %v294_v0 = vld [vmem:[%s1042_s1 + $0x78] sm:$0xff]  ;;  %v293_v1 = vld [vmem:[%s1042_s1 + $0x70] sm:$0xff]  ;;  %v292_v2 = vld [vmem:[%s1042_s1 + $0x68] sm:$0xff]  ;;  %s273_s21 = scalar_select %p272_p10, %s817_s28, 1  ;;  %vm324_vm0 = vcmask 586752   ;;  %v753_v18 = vmov 0.0  }
  0x14   : > { %299 = vmatpush.msra.mxu0 %v294_v0  ;;  %627 = vmatpush.msra.mxu2 %v294_v0  ;;  %v291_v3 = vld [vmem:[%s1042_s1 + $0x60] sm:$0xff]  ;;  %v290_v4 = vld [vmem:[%s1042_s1 + $0x58] sm:$0xff]  ;;  %v289_v5 = vld [vmem:[%s1042_s1 + $0x50] sm:$0xff]  ;;  %325 = vst.msk [vmem:[#allocation2] sm:$0x3f] %vm324_vm0, %v753_v18  ;;  %vm338_vm1 = vcmask 584704  }
  0x15   : > { %v288_v6 = vld [vmem:[%s1042_s1 + $0x48] sm:$0xff]  ;;  %v287_v7 = vld [vmem:[%s1042_s1 + $0x40] sm:$0xff]  ;;  %v286_v8 = vld [vmem:[%s1042_s1 + $0x38] sm:$0xff]  ;;  %s625_s9 = sshll.u32 %s273_s21, 4  ;;  %326 = vst.msk [vmem:[#allocation2 + $0x8] sm:$0x3f] %vm324_vm0, %v753_v18 }
  0x16   : > { %300 = vmatpush.msra.mxu0 %v293_v1  ;;  %628 = vmatpush.msra.mxu2 %v293_v1  ;;  %v285_v9 = vld [vmem:[%s1042_s1 + $0x30] sm:$0xff]  ;;  %v284_v10 = vld [vmem:[%s1042_s1 + $0x28] sm:$0xff]  ;;  %v283_v11 = vld [vmem:[%s1042_s1 + $0x20] sm:$0xff]  ;;  %s276_s19 = scalar_lea.vmem %s1041_s0, %s625_s9  ;;  %327 = vst.msk [vmem:[#allocation2 + $0x10] sm:$0x3f] %vm324_vm0, %v753_v18  ;;  %vm501_vm2 = vcmask 588800  }
  0x17   : > { %v282_v12 = vld [vmem:[%s1042_s1 + $0x18] sm:$0xff]  ;;  %v281_v13 = vld [vmem:[%s1042_s1 + $0x10] sm:$0xff]  ;;  %v280_v14 = vld [vmem:[%s1042_s1 + $0x8] sm:$0xff]  ;;  %330 = vst.msk [vmem:[#allocation2 + $0x28] sm:$0x3f] %vm324_vm0, %v753_v18  ;;  %s703_s28 = sshra.s32 %s549_s16, 4  ;;  %s704_s28 = int_to_ptr.hbm [resolvable:$true] %s703_s28 }
  0x18   : > { %301 = vmatpush.msra.mxu0 %v292_v2  ;;  %629 = vmatpush.msra.mxu2 %v292_v2  ;;  %v279_v15 = vld [vmem:[%s1042_s1] sm:$0xff]  ;;  %v899_v17 = vld [vmem:[%s276_s19 + $0x8] sm:$0xff]  ;;  %328 = vst.msk [vmem:[#allocation2 + $0x18] sm:$0x3f] %vm324_vm0, %v753_v18  ;;  %v482_v22 = vld [vmem:[%s1046_s5 + $0x38] sm:$0xff]  ;;  %s705_s18 = scalar_lea.hbm %s704_s28, 16  ;;  %p710_p0 = scmp.lt.s32.totalorder %s704_s28, %s1048_s7 }
  0x19   : > { %v897_v16 = vld [vmem:[%s276_s19] sm:$0xff]  ;;  %329 = vst.msk [vmem:[#allocation2 + $0x20] sm:$0x3f] %vm324_vm0, %v753_v18  ;;  %v481_v23 = vld [vmem:[%s1046_s5 + $0x30] sm:$0xff]  ;;  %v480_v27 = vld [vmem:[%s1046_s5 + $0x28] sm:$0xff]  ;;  %p706_p11 = scmp.ne.s32.totalorder %s704_s28, %s705_s18  ;;  %s709_s21 = scalar_lea.hbm %s1048_s7, 32 }
  0x1a   : > { %302 = vmatpush.msra.mxu0 %v291_v3  ;;  %630 = vmatpush.msra.mxu2 %v291_v3  ;;  %v483_v19 = vld [vmem:[%s1046_s5 + $0x40] sm:$0xff]  ;;  %v478_v36 = vld [vmem:[%s1046_s5 + $0x18] sm:$0xff]  ;;  %v477_v40 = vld [vmem:[%s1046_s5 + $0x10] sm:$0xff]  ;;  %p711_p1 = scmp.lt.s32.totalorder %s709_s21, %s705_s18 }
  0x1b   : > { %v685_v20 = vld [vmem:[%s1043_s2] ss:$0 sm:$0xff]  ;;  %513 = vmatpush.msra.mxu1 %v483_v19  ;;  %v345_v29 = vld [vmem:[#allocation2] sm:$0xf]  ;;  %p707_p12 = pnand %p706_p11, %p834_p5 }
  0x1c   : > { %303 = vmatpush.msra.mxu0 %v290_v4  ;;  %631 = vmatpush.msra.mxu2 %v290_v4  ;;  %v912_v21 = vld [vmem:[%s1044_s3] sm:$0xff]  ;;  %v358_v30 = vld [vmem:[#allocation2 + $0x1] sm:$0xf]  ;;  %p712_p2 = por %p711_p1, %p710_p0 }
  0x1d   : > { %514 = vmatpush.msra.mxu1 %v482_v22  ;;  %v921_v25 = vperm.slane %v912_v21, 0  ;;  %v924_v26 = vperm.slane %v912_v21, 1  ;;  %v479_v31 = vld [vmem:[%s1046_s5 + $0x20] sm:$0xff]  ;;  %v935_v35 = vperm.slane %v912_v21, 2  ;;  %v371_v38 = vld [vmem:[#allocation2 + $0x2] sm:$0xf]  ;;  %p708_p13 = pneg %p707_p12 }
  0x1e   : > { %304 = vmatpush.msra.mxu0 %v289_v5  ;;  %632 = vmatpush.msra.mxu2 %v289_v5  ;;  %v476_v44 = vld [vmem:[%s1046_s5 + $0x8] sm:$0xff]  ;;  %v950_v46 = vperm.slane %v912_v21, 3  ;;  %v475_v47 = vld [vmem:[%s1046_s5] sm:$0xff]  ;;  %v956_v48 = vperm.slane %v912_v21, 4  ;;  %v959_v49 = vperm.slane %v912_v21, 5  ;;  %v965_v58 = vperm.slane %v912_v21, 6 }
  0x1f   : > { %515 = vmatpush.msra.mxu1 %v481_v23  ;;  %v350_v33 = vmul.f32 %v921_v25, %v345_v29  ;;  %v363_v34 = vmul.f32 %v924_v26, %v358_v30  ;;  %v376_v43 = vmul.f32 %v935_v35, %v371_v38  ;;  %p713_p3 = pnand %p712_p2, %p708_p13 }
  0x20   : > { %305 = vmatpush.msra.mxu0 %v288_v6  ;;  %633 = vmatpush.msra.mxu2 %v288_v6 }
  0x21   : > { %516 = vmatpush.msra.mxu1 %v480_v27  ;;  %v367_v42 = vadd.f32 %v363_v34, %v350_v33 }
  0x22   : > { %306 = vmatpush.msra.mxu0 %v287_v7  ;;  %634 = vmatpush.msra.mxu2 %v287_v7 }
  0x23   : > { %517 = vmatpush.msra.mxu1 %v479_v31  ;;  %v380_v53 = vadd.f32 %v376_v43, %v367_v42 }
  0x24   : > { %307 = vmatpush.msra.mxu0 %v286_v8  ;;  %635 = vmatpush.msra.mxu2 %v286_v8 }
  0x25   : > { %518 = vmatpush.msra.mxu1 %v478_v36 }
  0x26   : > { %308 = vmatpush.msra.mxu0 %v285_v9  ;;  %636 = vmatpush.msra.mxu2 %v285_v9 }
  0x27   : > { %519 = vmatpush.msra.mxu1 %v477_v40  ;;  %v686_v40 = vld [vmem:[%s1044_s3 + $0x8] ss:$0 sm:$0xff] }
  0x28   : > { %309 = vmatpush.msra.mxu0 %v284_v10  ;;  %637 = vmatpush.msra.mxu2 %v284_v10  ;;  %v973_v10 = vperm.slane %v912_v21, 7 }
  0x29   : > { %520 = vmatpush.msra.mxu1 %v476_v44 }
  0x2a   : > { %310 = vmatpush.msra.mxu0 %v283_v11  ;;  %638 = vmatpush.msra.mxu2 %v283_v11 }
  0x2b   : > { %521 = vmatpush.msra.mxu1 %v475_v47 }
  0x2c   : > { %311 = vmatpush.msra.mxu0 %v282_v12  ;;  %639 = vmatpush.msra.mxu2 %v282_v12 }
  0x2e   : > { %312 = vmatpush.msra.mxu0 %v281_v13  ;;  %640 = vmatpush.msra.mxu2 %v281_v13 }
  0x30   : > { %313 = vmatpush.msra.mxu0 %v280_v14  ;;  %641 = vmatpush.msra.mxu2 %v280_v14 }
  0x32   : > { %314 = vmatpush.msra.mxu0 %v279_v15  ;;  %642 = vmatpush.msra.mxu2 %v279_v15 }
  0x33   : > { %315 = vmatmul.f32.vlgmr.msra.gmra.mxu0 %v897_v16  ;;  %318 = vmatmul.f32.vlgmr.msra.gmra.mxu2 %v899_v17 }
  0xb0   : > { %v316_v24 = vpop.f32.mrf.mxu0 }
  0xb1   : > { %v317_v28 = vadd.f32 %v685_v20, %v316_v24 }
  0xb3   : > { %v322_v32 = vmax.f32 %v317_v28, 0.0 }
  0xb5   : > { %v333_v37 = vrot.slane %v322_v32, 4  ;;  %339 = vst.msk [vmem:[#allocation2 + $0x9] sm:$0xf] %vm338_vm1, %v322_v32 }
  0xb6   : > { %v319_v39 = vpop.f32.mrf.mxu2 }
  0xb7   : > { %340 = vst.msk [vmem:[#allocation2 + $0x11] sm:$0xf] %vm338_vm1, %v333_v37  ;;  %v320_v41 = vadd.f32 %v685_v20, %v319_v39 }
  0xb9   : > { %v323_v45 = vmax.f32 %v320_v41, 0.0 }
  0xbb   : > { %341 = vst.msk [vmem:[#allocation2 + $0x19] sm:$0xf] %vm338_vm1, %v323_v45  ;;  %v334_v59 = vrot.slane %v323_v45, 4 }
  0xbc   : > { %v346_v50 = vld [vmem:[#allocation2 + $0x8] sm:$0xf] }
  0xbd   : > { %v359_v51 = vld [vmem:[#allocation2 + $0x9] sm:$0xf]  ;;  %v351_v54 = vmul.f32 %v921_v25, %v346_v50  ;;  %342 = vst.msk [vmem:[#allocation2 + $0x21] sm:$0xf] %vm338_vm1, %v334_v59 }
  0xbe   : > { %v372_v52 = vld [vmem:[#allocation2 + $0xa] sm:$0xf]  ;;  %v364_v55 = vmul.f32 %v924_v26, %v359_v51  ;;  %v347_v60 = vld [vmem:[#allocation2 + $0x10] sm:$0xf] }
  0xbf   : > { %v384_v56 = vld [vmem:[#allocation2 + $0x8] sm:$0xf]  ;;  %v360_v61 = vld [vmem:[#allocation2 + $0x11] sm:$0xf]  ;;  %v352_v0 = vmul.f32 %v921_v25, %v347_v60  ;;  %v377_v4 = vmul.f32 %v935_v35, %v372_v52 }
  0xc0   : > { %v397_v57 = vld [vmem:[#allocation2 + $0x9] sm:$0xf]  ;;  %v389_v62 = vmul.f32 %v950_v46, %v384_v56  ;;  %v365_v1 = vmul.f32 %v924_v26, %v360_v61  ;;  %v368_v2 = vadd.f32 %v364_v55, %v351_v54  ;;  %v373_v3 = vld [vmem:[#allocation2 + $0x12] sm:$0xf] }
  0xc1   : > { %v410_v63 = vld [vmem:[#allocation2 + $0xa] sm:$0xf]  ;;  %v385_v5 = vld [vmem:[#allocation2 + $0x10] sm:$0xf]  ;;  %v402_v8 = vmul.f32 %v956_v48, %v397_v57  ;;  %v378_v18 = vmul.f32 %v935_v35, %v373_v3 }
  0xc2   : > { %v398_v6 = vld [vmem:[#allocation2 + $0x11] sm:$0xf]  ;;  %v393_v7 = vadd.f32 %v389_v62, %v380_v53  ;;  %v369_v11 = vadd.f32 %v365_v1, %v352_v0  ;;  %v381_v12 = vadd.f32 %v377_v4, %v368_v2  ;;  %v390_v13 = vmul.f32 %v950_v46, %v385_v5  ;;  %v348_v23 = vld [vmem:[#allocation2 + $0x18] sm:$0xf] }
  0xc3   : > { %v424_v9 = vld [vmem:[#allocation2 + $0x10] sm:$0xf]  ;;  %v415_v15 = vmul.f32 %v959_v49, %v410_v63  ;;  %v403_v19 = vmul.f32 %v956_v48, %v398_v6  ;;  %v361_v24 = vld [vmem:[#allocation2 + $0x19] sm:$0xf]  ;;  %v353_v29 = vmul.f32 %v921_v25, %v348_v23  ;;  %v687_v53 = vld [vmem:[%s1045_s4] ss:$0 sm:$0xff] }
  0xc4   : > { %v411_v14 = vld [vmem:[#allocation2 + $0x12] sm:$0xf]  ;;  %v406_v20 = vadd.f32 %v402_v8, %v393_v7  ;;  %v429_v22 = vmul.f32 %v965_v58, %v424_v9  ;;  %v374_v21 = vld [vmem:[#allocation2 + $0x1a] sm:$0xf]  ;;  %v394_v27 = vadd.f32 %v390_v13, %v381_v12  ;;  %v366_v30 = vmul.f32 %v924_v26, %v361_v24  ;;  %v387_v54 = vld [vmem:[#allocation2 + $0x20] sm:$0xf] }
  0xc5   : > { %v437_v28 = vld [vmem:[#allocation2 + $0x11] sm:$0xf]  ;;  %v379_v31 = vmul.f32 %v935_v35, %v374_v21  ;;  %v386_v32 = vld [vmem:[#allocation2 + $0x18] sm:$0xf]  ;;  %v382_v36 = vadd.f32 %v378_v18, %v369_v11  ;;  %v416_v25 = vmul.f32 %v959_v49, %v411_v14  ;;  %v400_v55 = vld [vmem:[#allocation2 + $0x21] sm:$0xf]  ;;  %v392_v62 = vmul.f32 %v950_v46, %v387_v54 }
  0xc6   : > { %v399_v33 = vld [vmem:[#allocation2 + $0x19] sm:$0xf]  ;;  %v419_v34 = vadd.f32 %v415_v15, %v406_v20  ;;  %v391_v37 = vmul.f32 %v950_v46, %v386_v32  ;;  %v407_v41 = vadd.f32 %v403_v19, %v394_v27  ;;  %v450_v42 = vld [vmem:[#allocation2 + $0x12] sm:$0xf]  ;;  %v370_v26 = vadd.f32 %v366_v30, %v353_v29  ;;  %v426_v63 = vld [vmem:[#allocation2 + $0x20] sm:$0xf] }
  0xc7   : > { %v404_v38 = vmul.f32 %v956_v48, %v399_v33  ;;  %v425_v39 = vld [vmem:[#allocation2 + $0x18] sm:$0xf]  ;;  %v442_v35 = vmul.f32 %v973_v10, %v437_v28  ;;  %v455_v61 = vmul.f32 %v686_v40, %v450_v42  ;;  %v439_v1 = vld [vmem:[#allocation2 + $0x21] sm:$0xf]  ;;  %v431_v5 = vmul.f32 %v965_v58, %v426_v63  ;;  %v427_v7 = vld [vmem:[#allocation2 + $0x28] sm:$0xf] }
  0xc8   : > { %v412_v43 = vld [vmem:[#allocation2 + $0x1a] sm:$0xf]  ;;  %v395_v44 = vadd.f32 %v391_v37, %v382_v36  ;;  %v433_v47 = vadd.f32 %v429_v22, %v419_v34  ;;  %v383_v50 = vadd.f32 %v379_v31, %v370_v26  ;;  %v420_v51 = vadd.f32 %v416_v25, %v407_v41  ;;  %v413_v3 = vld [vmem:[#allocation2 + $0x22] sm:$0xf]  ;;  %v440_v18 = vld [vmem:[#allocation2 + $0x29] sm:$0xf] }
  0xc9   : > { %v438_v45 = vld [vmem:[#allocation2 + $0x19] sm:$0xf]  ;;  %v430_v52 = vmul.f32 %v965_v58, %v425_v39  ;;  %v417_v57 = vmul.f32 %v959_v49, %v412_v43  ;;  %v405_v9 = vmul.f32 %v956_v48, %v400_v55  ;;  %v452_v11 = vld [vmem:[#allocation2 + $0x22] sm:$0xf]  ;;  %v444_v14 = vmul.f32 %v973_v10, %v439_v1  ;;  %v453_v27 = vld [vmem:[#allocation2 + $0x2a] sm:$0xf] }
  0xca   : > { %v408_v56 = vadd.f32 %v404_v38, %v395_v44  ;;  %v451_v59 = vld [vmem:[#allocation2 + $0x1a] sm:$0xf]  ;;  %v446_v60 = vadd.f32 %v442_v35, %v433_v47  ;;  %v443_v2 = vmul.f32 %v973_v10, %v438_v45  ;;  %v396_v8 = vadd.f32 %v392_v62, %v383_v50 }
  0xcb   : > { %v434_v0 = vadd.f32 %v430_v52, %v420_v51  ;;  %v456_v12 = vmul.f32 %v686_v40, %v451_v59  ;;  %v418_v20 = vmul.f32 %v959_v49, %v413_v3  ;;  %v432_v23 = vmul.f32 %v965_v58, %v427_v7 }
  0xcc   : > { %v421_v4 = vadd.f32 %v417_v57, %v408_v56  ;;  %v459_v6 = vadd.f32 %v455_v61, %v446_v60  ;;  %v409_v19 = vadd.f32 %v405_v9, %v396_v8  ;;  %v457_v28 = vmul.f32 %v686_v40, %v452_v11 }
  0xcd   : > { %v447_v13 = vadd.f32 %v443_v2, %v434_v0  ;;  %v445_v30 = vmul.f32 %v973_v10, %v440_v18  ;;  %v458_v34 = vmul.f32 %v686_v40, %v453_v27  ;;  %v688_v40 = vld [vmem:[%s1047_s6] ss:$0 sm:$0xff] }
  0xce   : > { %v467_v46 = vadd.f32 %v687_v53, %v459_v6  ;;  %v435_v15 = vadd.f32 %v431_v5, %v421_v4  ;;  %v422_v29 = vadd.f32 %v418_v20, %v409_v19 }
  0xcf   : > { %v460_v22 = vadd.f32 %v456_v12, %v447_v13 }
  0xd0   : > { %v471_v24 = vmax.f32 %v467_v46, 0.0  ;;  %v448_v21 = vadd.f32 %v444_v14, %v435_v15  ;;  %v436_v33 = vadd.f32 %v432_v23, %v422_v29 }
  0xd1   : > { %v468_v48 = vadd.f32 %v687_v53, %v460_v22 }
  0xd2   : > { %492 = vst [vmem:[#allocation1] ss:$2 sm:$0xff] %v471_v24  ;;  %v461_v31 = vadd.f32 %v457_v28, %v448_v21  ;;  %v449_v49 = vadd.f32 %v445_v30, %v436_v33 }
  0xd3   : > { %v472_v32 = vmax.f32 %v468_v48, 0.0 }
  0xd4   : > { %v469_v36 = vadd.f32 %v687_v53, %v461_v31  ;;  %v462_v58 = vadd.f32 %v458_v34, %v449_v49 }
  0xd5   : > { %494 = vst [vmem:[#allocation1 + $0x1] ss:$2 sm:$0xff] %v472_v32 }
  0xd6   : > { %v473_v37 = vmax.f32 %v469_v36, 0.0  ;;  %v470_v38 = vadd.f32 %v687_v53, %v462_v58 }
  0xd8   : > { %496 = vst [vmem:[#allocation1 + $0x10] ss:$2 sm:$0xff] %v473_v37  ;;  %v474_v39 = vmax.f32 %v470_v38, 0.0 }
  0xda   : > { %498 = vst [vmem:[#allocation1 + $0x11] ss:$2 sm:$0xff] %v474_v39 }
  0xdc   : > { %v499_v41 = vld.sshfl [vmem:[#allocation1] sm:$0xff pattern:$0x75316420] }
  0xdd   : > { %618 = vmatmul.msk.f32.vlgmr.msra.gmra.mxu1 %vm501_vm2, %v499_v41 }
  0xe1   : > { %v500_v10 = vld.sshfl [vmem:[#allocation1 + $0x10] sm:$0xff pattern:$0x75316420] }
  0xe5   : > { %619 = vmatmul.msk.f32.gmra.mxu1 %vm501_vm2, %v500_v10 }
 0x15a   : > { %v523_v25 = vpop.f32.mrf.mxu1 }
 0x15b   : > { %v524_v42 = vadd.f32 %v688_v40, %v523_v25 }
 0x15d   : > { %v529_v26 = vadd.f32 %v524_v42, %v897_v16 }
 0x15f   : > { %531 = vst [vmem:[%s271_s8] sm:$0xff] %v529_v26 }
 0x162   : > { %v526_v43 = vpop.f32.mrf.mxu1 }
 0x163   : > { %v527_v35 = vadd.f32 %v688_v40, %v526_v43 }
 0x165   : > { %v530_v44 = vadd.f32 %v527_v35, %v899_v17 }
 0x167   : > { %532 = vst [vmem:[%s271_s8 + $0x8] sm:$0xff] %v530_v44 }
 0x168   : > { %716 = shalt.err (!%p713_p3)
}
 0x169   : > { %s754_s20 = smov 128   ;;  %s755_s8 = smov 8  }
 0x16a   : > { %643 = dma.vmem_to_hbm [thread:$0]  (%p834_p5), %s547_s15, 256, %s549_s16, %s534_s17, %s754_s20, %s754_s20, %s755_s8  }
 0x16b PF: > { %p649_p4 = scmp.ge.s32.totalorder %s751_s27, 2  ;;  %s563_s9 = sand.u32 1, %s739_s24  }
 0x16c   : > { %s564_s13 = scalar_lea.sflag [#allocation4], %s563_s9 }
 0x16d   : > { %p646_p7 = pnand %p649_p4, %p838_p6 }
 0x16f   : > { %p647_p8 = pneg %p646_p7 }
 0x171   : > { %734 = dma.done.wait (%p647_p8), %s564_s13, 256  }
 0x172   : > { %736 = vsyncadd (%p647_p8), %s564_s13, 4294967040  ;;  %p17_p9 = scmp.ge.s32.totalorder %s821_s30, 4   ;;  %s1051_s24 = smov %s743_s25 }
 0x173   : > { %s1052_s25 = smov %s747_s26  ;;  %s1053_s26 = smov %s832_s10 }
 0x174   : > { %s1054_s27 = smov %s821_s30  ;;  %19 = sbr.rel (!%p17_p9) target bundleno = 3 (0x3), region = 88 }
 0x179   :  { %570 = vsyncpa [#allocation4], 1 }
 0x17a   :  { %572 = vsyncpa [#allocation4 + $0x1], 1 }

// kernel: feature_extractor.4
= control target key start
LH: loop header
LB: loop body
LE: loop exit
PB: predicated region body
PF: predicated region fallthrough
CT: control target
= control target key end

     0   :  { %s1545_s24 = smov 0   ;;  %s2091_s0 = inlined_call_operand.vmem [shape: f32[2,16,16,1], index: 0, kind: input, shape index: {}]   ;;  %s2092_s1 = inlined_call_operand.vmem [shape: f32[9,32], index: 1, kind: input, shape index: {}]   ;;  %s2093_s2 = inlined_call_operand.vmem [shape: f32[1,32], index: 2, kind: input, shape index: {}]   ;;  %s2094_s3 = inlined_call_operand.vmem [shape: f32[9,32], index: 3, kind: input, shape index: {}]   ;;  %s2095_s4 = inlined_call_operand.vmem [shape: f32[1,32], index: 4, kind: input, shape index: {}]   ;;  %s2096_s5 = inlined_call_operand.vmem [shape: f32[32,128], index: 5, kind: input, shape index: {}]   ;;  %s2097_s6 = inlined_call_operand.vmem [shape: f32[1,128], index: 6, kind: input, shape index: {}]   ;;  %s2098_s7 = inlined_call_operand.vmem [shape: f32[2,64,128], index: 7, kind: output, shape index: {}]  }
   0x1 LB: > { %s1431_s25 = sadd.s32 4294967295, %s1494_s24   ;;  %p1435_p0 = scmp.ge.s32.totalorder %s1494_s24, 1  ;;  %s1494_s24 = sphi %s1545_s24, %s17_s24  }
   0x2   : > { %p237_p1 = scmp.lt.s32.totalorder %s1494_s24, 3 }
   0x4   : > { %p238_p2 = pnand %p1435_p0, %p237_p1 }
   0x5   : > { %s1497_s26 = smov (!%p238_p2), 1   ;;  %p269_p3 = scmp.lt.s32.totalorder (!%p238_p2), %s1431_s25, 1 }
   0x6   : > { %241 = sbr.rel (%p238_p2) target bundleno = 648 (0x288), region = 48  ;;  %s1498_s8 = smov (!%p238_p2), 3  }
   0x7   : > { %s1499_s9 = smov (!%p238_p2), 2   ;;  %s1500_s10 = smov (!%p238_p2), 5  }
   0x8   : > { %s1501_s11 = smov (!%p238_p2), 4   ;;  %s1502_s12 = smov (!%p238_p2), 7  }
   0x9   : > { %s1503_s13 = smov (!%p238_p2), 8   ;;  %s1504_s14 = smov (!%p238_p2), 6  }
   0xb   : > { %vm279_vm0 = vcmask 7168   ;;  %v1496_v0 = vmov 0.0   ;;  %s2100_s25 = smov (!%p269_p3, %s1431_s25), 1  ;;  %vm282_vm1 = vcmask 1024   ;;  %vm471_vm2 = vcmask 15368  }
   0xc   : > { %280 = vst.msk [vmem:[#allocation2] sm:$0xff] %vm279_vm0, %v1496_v0  ;;  %s1459_s27 = sshll.u32 %s2100_s25, 8  ;;  %vm917_vm3 = vcmask 1040384   ;;  %vm528_vm4 = vcmask 23568   ;;  %vm584_vm5 = vcmask 31768   ;;  %vm641_vm6 = vcmask 39968  }
   0xd   : > { %281 = vst.msk [vmem:[#allocation2 + $0x8] sm:$0xff] %vm279_vm0, %v1496_v0  ;;  %s1630_s30 = scalar_lea.vmem %s2091_s0, %s1459_s27  ;;  %vm698_vm7 = vcmask 48168   ;;  %vm755_vm8 = vcmask 56368   ;;  %vm812_vm9 = vcmask 64568   ;;  %vm869_vm10 = vcmask 72768  }
   0xe   : > { %284 = vst.msk [vmem:[#allocation2 + $0x18] sm:$0xff] %vm279_vm0, %v1496_v0  ;;  %v335_v2 = vld [vmem:[%s1630_s30] sm:$0xff]  ;;  %v336_v3 = vld [vmem:[%s1630_s30 + $0x8] sm:$0xff]  ;;  %v337_v8 = vld [vmem:[%s1630_s30 + $0x10] sm:$0xff]  ;;  %vm892_vm11 = vcmask 72704   ;;  %vm970_vm12 = vcmask 261120  }
   0xf   : > { %285 = vst.msk [vmem:[#allocation2 + $0x20] sm:$0xff] %vm279_vm0, %v1496_v0  ;;  %v338_v9 = vld [vmem:[%s1630_s30 + $0x18] sm:$0xff]  ;;  %v339_v10 = vld [vmem:[%s1630_s30 + $0x20] sm:$0xff]  ;;  %v340_v11 = vld [vmem:[%s1630_s30 + $0x28] sm:$0xff]  ;;  %vm972_vm13 = vcmask 254976  }
  0x10   : > { %287 = vst.msk [vmem:[#allocation2 + $0x30] sm:$0xff] %vm279_vm0, %v1496_v0  ;;  %v341_v12 = vld [vmem:[%s1630_s30 + $0x30] sm:$0xff]  ;;  %v342_v13 = vld [vmem:[%s1630_s30 + $0x38] sm:$0xff]  ;;  %v343_v14 = vld [vmem:[%s1630_s30 + $0x40] sm:$0xff] }
  0x11   : > { %288 = vst.msk [vmem:[#allocation2 + $0x38] sm:$0xff] %vm279_vm0, %v1496_v0  ;;  %v344_v15 = vld [vmem:[%s1630_s30 + $0x48] sm:$0xff]  ;;  %v345_v19 = vld [vmem:[%s1630_s30 + $0x50] sm:$0xff]  ;;  %v346_v20 = vld [vmem:[%s1630_s30 + $0x58] sm:$0xff] }
  0x12   : > { %290 = vst.msk [vmem:[#allocation2 + $0x48] sm:$0xff] %vm279_vm0, %v1496_v0  ;;  %v347_v27 = vld [vmem:[%s1630_s30 + $0x60] sm:$0xff]  ;;  %v348_v28 = vld [vmem:[%s1630_s30 + $0x68] sm:$0xff]  ;;  %v349_v32 = vld [vmem:[%s1630_s30 + $0x70] sm:$0xff] }
  0x13   : > { %291 = vst.msk [vmem:[#allocation2 + $0x50] sm:$0xff] %vm279_vm0, %v1496_v0  ;;  %v350_v33 = vld [vmem:[%s1630_s30 + $0x78] sm:$0xff]  ;;  %v353_v37 = vld [vmem:[%s1630_s30 + $0x90] sm:$0xff]  ;;  %v351_v42 = vld [vmem:[%s1630_s30 + $0x80] sm:$0xff] }
  0x14   : > { %v424_v1 = vld [vmem:[#allocation2 + $0x1] ss:$2 sm:$0xff]  ;;  %293 = vst.msk [vmem:[#allocation2 + $0x60] sm:$0xff] %vm279_vm0, %v1496_v0  ;;  %v354_v38 = vld [vmem:[%s1630_s30 + $0x98] sm:$0xff]  ;;  %v357_v54 = vld [vmem:[%s1630_s30 + $0xb0] sm:$0xff] }
  0x15   : > { %447 = vrot.lane.b32.xlu0 %v424_v1, %s1497_s26  ;;  %294 = vst.msk [vmem:[#allocation2 + $0x68] sm:$0xff] %vm279_vm0, %v1496_v0  ;;  %v352_v43 = vld [vmem:[%s1630_s30 + $0x88] sm:$0xff]  ;;  %v355_v46 = vld [vmem:[%s1630_s30 + $0xa0] sm:$0xff]  ;;  %v358_v55 = vld [vmem:[%s1630_s30 + $0xb8] sm:$0xff] }
  0x16   : > { %296 = vst.msk [vmem:[#allocation2 + $0x78] sm:$0xff] %vm279_vm0, %v1496_v0  ;;  %v356_v47 = vld [vmem:[%s1630_s30 + $0xa8] sm:$0xff] }
  0x17   : > { %297 = vst.msk [vmem:[#allocation2 + $0x80] sm:$0xff] %vm279_vm0, %v1496_v0  ;;  %v400_v58 = vld [vmem:[#allocation2] ss:$2 sm:$0xff] }
  0x18   : > { %299 = vst.msk [vmem:[#allocation2 + $0x90] sm:$0xff] %vm279_vm0, %v1496_v0 }
  0x19   : > { %300 = vst.msk [vmem:[#allocation2 + $0x98] sm:$0xff] %vm279_vm0, %v1496_v0 }
  0x1a   : > { %302 = vst.msk [vmem:[#allocation2 + $0xa8] sm:$0xff] %vm279_vm0, %v1496_v0 }
  0x1b   : > { %303 = vst.msk [vmem:[#allocation2 + $0xb0] sm:$0xff] %vm279_vm0, %v1496_v0 }
  0x1c   : > { %305 = vst.msk [vmem:[#allocation2 + $0xc0] sm:$0xff] %vm279_vm0, %v1496_v0 }
  0x1d   : > { %306 = vst.msk [vmem:[#allocation2 + $0xc8] sm:$0xff] %vm279_vm0, %v1496_v0 }
  0x1e   : > { %308 = vst.msk [vmem:[#allocation2 + $0xd8] sm:$0xff] %vm279_vm0, %v1496_v0 }
  0x1f   : > { %309 = vst.msk [vmem:[#allocation2 + $0xe0] sm:$0xff] %vm279_vm0, %v1496_v0 }
  0x20   : > { %311 = vst.msk [vmem:[#allocation2 + $0xf0] sm:$0xff] %vm279_vm0, %v1496_v0 }
  0x21   : > { %312 = vst.msk [vmem:[#allocation2 + $0xf8] sm:$0xff] %vm279_vm0, %v1496_v0 }
  0x22   : > { %314 = vst.msk [vmem:[#allocation2 + $0x108] sm:$0xff] %vm279_vm0, %v1496_v0 }
  0x23   : > { %315 = vst.msk [vmem:[#allocation2 + $0x110] sm:$0xff] %vm279_vm0, %v1496_v0 }
  0x24   : > { %317 = vst.msk [vmem:[#allocation2 + $0x120] sm:$0xff] %vm279_vm0, %v1496_v0 }
  0x25   : > { %318 = vst.msk [vmem:[#allocation2 + $0x128] sm:$0xff] %vm279_vm0, %v1496_v0 }
  0x26   : > { %320 = vst.msk [vmem:[#allocation2 + $0x138] sm:$0xff] %vm279_vm0, %v1496_v0 }
  0x27   : > { %321 = vst.msk [vmem:[#allocation2 + $0x140] sm:$0xff] %vm279_vm0, %v1496_v0 }
  0x28   : > { %323 = vst.msk [vmem:[#allocation2 + $0x150] sm:$0xff] %vm279_vm0, %v1496_v0 }
  0x29   : > { %324 = vst.msk [vmem:[#allocation2 + $0x158] sm:$0xff] %vm279_vm0, %v1496_v0 }
  0x2a   : > { %326 = vst.msk [vmem:[#allocation2 + $0x168] sm:$0xff] %vm279_vm0, %v1496_v0 }
  0x2b   : > { %327 = vst.msk [vmem:[#allocation2 + $0x170] sm:$0xff] %vm279_vm0, %v1496_v0 }
  0x2c   : > { %329 = vst.msk [vmem:[#allocation2 + $0x180] sm:$0xff] %vm279_vm0, %v1496_v0 }
  0x2d   : > { %330 = vst.msk [vmem:[#allocation2 + $0x188] sm:$0xff] %vm279_vm0, %v1496_v0 }
  0x2e   : > { %286 = vst.msk [vmem:[#allocation2 + $0x28] sm:$0x3] %vm282_vm1, %v1496_v0 }
  0x2f   : > { %368 = vst.msk [vmem:[#allocation2 + $0x19] sm:$0xff] %vm279_vm0, %v335_v2  ;;  %v359_v2 = vld [vmem:[%s1630_s30 + $0xc0] sm:$0xff] }
  0x30   : > { %369 = vst.msk [vmem:[#allocation2 + $0x21] sm:$0xff] %vm279_vm0, %v336_v3  ;;  %v360_v3 = vld [vmem:[%s1630_s30 + $0xc8] sm:$0xff] }
  0x31   : > { %283 = vst.msk [vmem:[#allocation2 + $0x10] sm:$0x3] %vm282_vm1, %v1496_v0 }
  0x32   : > { %289 = vst.msk [vmem:[#allocation2 + $0x40] sm:$0x3] %vm282_vm1, %v1496_v0 }
  0x33   : > { %292 = vst.msk [vmem:[#allocation2 + $0x58] sm:$0x3] %vm282_vm1, %v1496_v0 }
  0x34   : > { %295 = vst.msk [vmem:[#allocation2 + $0x70] sm:$0x3] %vm282_vm1, %v1496_v0 }
  0x35   : > { %298 = vst.msk [vmem:[#allocation2 + $0x88] sm:$0x3] %vm282_vm1, %v1496_v0 }
  0x36   : > { %301 = vst.msk [vmem:[#allocation2 + $0xa0] sm:$0x3] %vm282_vm1, %v1496_v0 }
  0x37   : > { %v537_v4 = vld [vmem:[#allocation2 + $0x18] ss:$2 sm:$0xff]  ;;  %304 = vst.msk [vmem:[#allocation2 + $0xb8] sm:$0x3] %vm282_vm1, %v1496_v0  ;;  %v594_v7 = vld [vmem:[#allocation2 + $0x19] ss:$2 sm:$0xff] }
  0x38   : > { %560 = vrot.lane.b32.xlu1 %v537_v4, %s1498_s8  ;;  %307 = vst.msk [vmem:[#allocation2 + $0xd0] sm:$0x3] %vm282_vm1, %v1496_v0  ;;  %v481_v5 = vld [vmem:[#allocation2 + $0x2] ss:$2 sm:$0xff] }
  0x39   : > { %v651_v6 = vld [vmem:[#allocation2 + $0x1a] ss:$2 sm:$0xff]  ;;  %310 = vst.msk [vmem:[#allocation2 + $0xe8] sm:$0x3] %vm282_vm1, %v1496_v0  ;;  %504 = vrot.lane.b32.xlu0 %v481_v5, %s1499_s9 }
  0x3a   : > { %674 = vrot.lane.b32.xlu2 %v651_v6, %s1500_s10  ;;  %313 = vst.msk [vmem:[#allocation2 + $0x100] sm:$0x3] %vm282_vm1, %v1496_v0 }
  0x3b   : > { %316 = vst.msk [vmem:[#allocation2 + $0x118] sm:$0x3] %vm282_vm1, %v1496_v0 }
  0x3c   : > { %319 = vst.msk [vmem:[#allocation2 + $0x130] sm:$0x3] %vm282_vm1, %v1496_v0 }
  0x3d   : > { %322 = vst.msk [vmem:[#allocation2 + $0x148] sm:$0x3] %vm282_vm1, %v1496_v0 }
  0x3e   : > { %325 = vst.msk [vmem:[#allocation2 + $0x160] sm:$0x3] %vm282_vm1, %v1496_v0 }
  0x3f   : > { %328 = vst.msk [vmem:[#allocation2 + $0x178] sm:$0x3] %vm282_vm1, %v1496_v0 }
  0x40   : > { %331 = vst.msk [vmem:[#allocation2 + $0x190] sm:$0x3] %vm282_vm1, %v1496_v0  ;;  %617 = vrot.lane.b32.xlu1 %v594_v7, %s1501_s11 }
  0x41   : > { %370 = vst.msk [vmem:[#allocation2 + $0x31] sm:$0xff] %vm279_vm0, %v337_v8 }
  0x42   : > { %371 = vst.msk [vmem:[#allocation2 + $0x39] sm:$0xff] %vm279_vm0, %v338_v9  ;;  %v361_v9 = vld [vmem:[%s1630_s30 + $0xd0] sm:$0xff] }
  0x43   : > { %372 = vst.msk [vmem:[#allocation2 + $0x49] sm:$0xff] %vm279_vm0, %v339_v10  ;;  %v362_v10 = vld [vmem:[%s1630_s30 + $0xd8] sm:$0xff] }
  0x44   : > { %373 = vst.msk [vmem:[#allocation2 + $0x51] sm:$0xff] %vm279_vm0, %v340_v11 }
  0x45   : > { %374 = vst.msk [vmem:[#allocation2 + $0x61] sm:$0xff] %vm279_vm0, %v341_v12  ;;  %v887_v12 = vld [vmem:[%s2092_s1 + $0x8] sm:$0x1] }
  0x46   : > { %375 = vst.msk [vmem:[#allocation2 + $0x69] sm:$0xff] %vm279_vm0, %v342_v13  ;;  %v886_v13 = vld [vmem:[%s2092_s1] sm:$0xff]  ;;  %1440 = vmatpush.msk.msra.mxu0 %vm917_vm3, %v887_v12  ;;  %1461 = vmatpush.msk.msra.mxu3 %vm917_vm3, %v887_v12 }
  0x47   : > { %376 = vst.msk [vmem:[#allocation2 + $0x79] sm:$0xff] %vm279_vm0, %v343_v14 }
  0x48   : > { %377 = vst.msk [vmem:[#allocation2 + $0x81] sm:$0xff] %vm279_vm0, %v344_v15  ;;  %936 = vmatpush.msra.mxu0 %v886_v13  ;;  %1462 = vmatpush.msra.mxu3 %v886_v13 }
  0x49   : > { %v765_v16 = vld [vmem:[#allocation2 + $0x31] ss:$2 sm:$0xff]  ;;  %v822_v17 = vld [vmem:[#allocation2 + $0x32] ss:$2 sm:$0xff]  ;;  %378 = vst.msk [vmem:[#allocation2 + $0x91] sm:$0xff] %vm279_vm0, %v345_v19 }
  0x4a   : > { %788 = vrot.lane.b32.xlu0 %v765_v16, %s1502_s12  ;;  %845 = vrot.lane.b32.xlu1 %v822_v17, %s1503_s13  ;;  %v708_v18 = vld [vmem:[#allocation2 + $0x30] ss:$2 sm:$0xff]  ;;  %379 = vst.msk [vmem:[#allocation2 + $0x99] sm:$0xff] %vm279_vm0, %v346_v20  ;;  %v426_v23 = vld [vmem:[#allocation2 + $0x31] ss:$2 sm:$0xff] }
  0x4b   : > { %731 = vrot.lane.b32.xlu2 %v708_v18, %s1504_s14  ;;  %v483_v21 = vld [vmem:[#allocation2 + $0x32] ss:$2 sm:$0xff]  ;;  %v596_v26 = vld [vmem:[#allocation2 + $0x49] ss:$2 sm:$0xff]  ;;  %380 = vst.msk [vmem:[#allocation2 + $0xa9] sm:$0xff] %vm279_vm0, %v347_v27 }
  0x4c   : > { %v539_v22 = vld [vmem:[#allocation2 + $0x48] ss:$2 sm:$0xff]  ;;  %381 = vst.msk [vmem:[#allocation2 + $0xb1] sm:$0xff] %vm279_vm0, %v348_v28 }
  0x4d   : > { %v653_v24 = vld [vmem:[#allocation2 + $0x4a] ss:$2 sm:$0xff]  ;;  %v428_v30 = vld [vmem:[#allocation2 + $0x61] ss:$2 sm:$0xff]  ;;  %382 = vst.msk [vmem:[#allocation2 + $0xc1] sm:$0xff] %vm279_vm0, %v349_v32 }
  0x4e   : > { %v710_v25 = vld [vmem:[#allocation2 + $0x60] ss:$2 sm:$0xff]  ;;  %v767_v31 = vld [vmem:[#allocation2 + $0x61] ss:$2 sm:$0xff]  ;;  %383 = vst.msk [vmem:[#allocation2 + $0xc9] sm:$0xff] %vm279_vm0, %v350_v33 }
  0x4f   : > { %v824_v29 = vld [vmem:[#allocation2 + $0x62] ss:$2 sm:$0xff]  ;;  %v598_v35 = vld [vmem:[#allocation2 + $0x79] ss:$2 sm:$0xff]  ;;  %386 = vst.msk [vmem:[#allocation2 + $0xf1] sm:$0xff] %vm279_vm0, %v353_v37 }
  0x50   : > { %v541_v34 = vld [vmem:[#allocation2 + $0x78] ss:$2 sm:$0xff]  ;;  %387 = vst.msk [vmem:[#allocation2 + $0xf9] sm:$0xff] %vm279_vm0, %v354_v38 }
  0x51   : > { %v485_v36 = vld [vmem:[#allocation2 + $0x62] ss:$2 sm:$0xff]  ;;  %v769_v40 = vld [vmem:[#allocation2 + $0x91] ss:$2 sm:$0xff]  ;;  %384 = vst.msk [vmem:[#allocation2 + $0xd9] sm:$0xff] %vm279_vm0, %v351_v42 }
  0x52   : > { %506 = vrot.lane.b32.xlu0 %v483_v21, %s1499_s9  ;;  %562 = vrot.lane.b32.xlu1 %v539_v22, %s1498_s8  ;;  %v712_v39 = vld [vmem:[#allocation2 + $0x90] ss:$2 sm:$0xff]  ;;  %385 = vst.msk [vmem:[#allocation2 + $0xe1] sm:$0xff] %vm279_vm0, %v352_v43  ;;  %v430_v44 = vld [vmem:[#allocation2 + $0x91] ss:$2 sm:$0xff]  ;;  %v363_v22 = vld [vmem:[%s1630_s30 + $0xe0] sm:$0xff] }
  0x53   : > { %449 = vrot.lane.b32.xlu2 %v426_v23, %s1497_s26  ;;  %v655_v41 = vld [vmem:[#allocation2 + $0x7a] ss:$2 sm:$0xff]  ;;  %388 = vst.msk [vmem:[#allocation2 + $0x109] sm:$0xff] %vm279_vm0, %v355_v46  ;;  %v600_v49 = vld [vmem:[#allocation2 + $0xa9] ss:$2 sm:$0xff] }
  0x54   : > { %v487_v45 = vld [vmem:[#allocation2 + $0x92] ss:$2 sm:$0xff]  ;;  %389 = vst.msk [vmem:[#allocation2 + $0x111] sm:$0xff] %vm279_vm0, %v356_v47  ;;  %v364_v23 = vld [vmem:[%s1630_s30 + $0xe8] sm:$0xff] }
  0x55   : > { %v826_v48 = vld [vmem:[#allocation2 + $0x92] ss:$2 sm:$0xff]  ;;  %v771_v52 = vld [vmem:[#allocation2 + $0xc1] ss:$2 sm:$0xff]  ;;  %v828_v53 = vld [vmem:[#allocation2 + $0xc2] ss:$2 sm:$0xff] }
  0x56   : > { %v657_v50 = vld [vmem:[#allocation2 + $0xaa] ss:$2 sm:$0xff]  ;;  %390 = vst.msk [vmem:[#allocation2 + $0x121] sm:$0xff] %vm279_vm0, %v357_v54  ;;  %v432_v61 = vld [vmem:[#allocation2 + $0xc1] ss:$2 sm:$0xff] }
  0x57   : > { %v543_v51 = vld [vmem:[#allocation2 + $0xa8] ss:$2 sm:$0xff]  ;;  %391 = vst.msk [vmem:[#allocation2 + $0x129] sm:$0xff] %vm279_vm0, %v358_v55  ;;  %v434_v59 = vld [vmem:[#allocation2 + $0xf1] ss:$2 sm:$0xff] }
  0x58   : > { %v714_v56 = vld [vmem:[#allocation2 + $0xc0] ss:$2 sm:$0xff]  ;;  %415 = vst.msk [vmem:[#allocation3] sm:$0xff] %vm279_vm0, %v400_v58  ;;  %v402_v5 = vld [vmem:[#allocation2 + $0x30] ss:$2 sm:$0xff] }
  0x59   : > { %v489_v60 = vld [vmem:[#allocation2 + $0xc2] ss:$2 sm:$0xff]  ;;  %v491_v1 = vld [vmem:[#allocation2 + $0xf2] ss:$2 sm:$0xff]  ;;  %392 = vst.msk [vmem:[#allocation2 + $0x139] sm:$0xff] %vm279_vm0, %v359_v2 }
  0x5a   : > { %676 = vrot.lane.b32.xlu0 %v653_v24, %s1500_s10  ;;  %733 = vrot.lane.b32.xlu1 %v710_v25, %s1504_s14  ;;  %v545_v62 = vld [vmem:[#allocation2 + $0xd8] ss:$2 sm:$0xff]  ;;  %393 = vst.msk [vmem:[#allocation2 + $0x141] sm:$0xff] %vm279_vm0, %v360_v3  ;;  %v602_v8 = vld [vmem:[#allocation2 + $0xd9] ss:$2 sm:$0xff] }
  0x5b   : > { %619 = vrot.lane.b32.xlu2 %v596_v26, %s1501_s11  ;;  %v547_v63 = vld [vmem:[#allocation2 + $0x108] ss:$2 sm:$0xff]  ;;  %416 = vst.msk [vmem:[#allocation3 + $0x8] sm:$0xff] %vm279_vm0, %v402_v5  ;;  %v604_v6 = vld [vmem:[#allocation2 + $0x109] ss:$2 sm:$0xff] }
  0x5c   : > { %v659_v7 = vld [vmem:[#allocation2 + $0xda] ss:$2 sm:$0xff]  ;;  %394 = vst.msk [vmem:[#allocation2 + $0x151] sm:$0xff] %vm279_vm0, %v361_v9  ;;  %v661_v16 = vld [vmem:[#allocation2 + $0x10a] ss:$2 sm:$0xff] }
  0x5d   : > { %395 = vst.msk [vmem:[#allocation2 + $0x159] sm:$0xff] %vm279_vm0, %v362_v10  ;;  %v716_v14 = vld [vmem:[#allocation2 + $0xf0] ss:$2 sm:$0xff]  ;;  %v773_v24 = vld [vmem:[#allocation2 + $0xf1] ss:$2 sm:$0xff] }
  0x5e   : > { %v718_v15 = vld [vmem:[#allocation2 + $0x120] ss:$2 sm:$0xff]  ;;  %v775_v20 = vld [vmem:[#allocation2 + $0x121] ss:$2 sm:$0xff]  ;;  %396 = vst.msk [vmem:[#allocation2 + $0x169] sm:$0xff] %vm279_vm0, %v363_v22 }
  0x5f   : > { %v830_v21 = vld [vmem:[#allocation2 + $0xf2] ss:$2 sm:$0xff]  ;;  %397 = vst.msk [vmem:[#allocation2 + $0x171] sm:$0xff] %vm279_vm0, %v364_v23  ;;  %v436_v27 = vld [vmem:[#allocation2 + $0x121] ss:$2 sm:$0xff] }
  0x60   : > { %v493_v28 = vld [vmem:[#allocation2 + $0x122] ss:$2 sm:$0xff]  ;;  %974 = vst.msk [vmem:[#allocation4 + $0x10] sm:$0xff] %vm970_vm12, %v1496_v0 }
  0x61   : > { %v404_v32 = vld [vmem:[#allocation2 + $0x60] ss:$2 sm:$0xff]  ;;  %975 = vst.msk [vmem:[#allocation4 + $0x18] sm:$0x3] %vm972_vm13, %v1496_v0 }
  0x62   : > { %847 = vrot.lane.b32.xlu0 %v824_v29, %s1503_s13  ;;  %451 = vrot.lane.b32.xlu1 %v428_v30, %s1497_s26  ;;  %v365_v29 = vld [vmem:[%s1630_s30 + $0xf0] sm:$0xff]  ;;  %v366_v30 = vld [vmem:[%s1630_s30 + $0xf8] sm:$0xff]  ;;  %417 = vst.msk [vmem:[#allocation3 + $0x10] sm:$0xff] %vm279_vm0, %v404_v32 }
  0x63   : > { %790 = vrot.lane.b32.xlu2 %v767_v31, %s1502_s12  ;;  %v832_v31 = vld [vmem:[#allocation2 + $0x122] ss:$2 sm:$0xff]  ;;  %398 = vst.msk [vmem:[#allocation2 + $0x181] sm:$0xff] %vm279_vm0, %v365_v29 }
  0x64   : > { %399 = vst.msk [vmem:[#allocation2 + $0x189] sm:$0xff] %vm279_vm0, %v366_v30  ;;  %v663_v37 = vld [vmem:[#allocation2 + $0x13a] ss:$2 sm:$0xff]  ;;  %v777_v43 = vld [vmem:[#allocation2 + $0x151] ss:$2 sm:$0xff] }
  0x65   : > { %v549_v38 = vld [vmem:[#allocation2 + $0x138] ss:$2 sm:$0xff]  ;;  %971 = vst.msk [vmem:[#allocation4] sm:$0xff] %vm970_vm12, %v1496_v0 }
  0x66   : > { %v720_v46 = vld [vmem:[#allocation2 + $0x150] ss:$2 sm:$0xff]  ;;  %v608_v58 = vld [vmem:[#allocation2 + $0x169] ss:$2 sm:$0xff]  ;;  %973 = vst.msk [vmem:[#allocation4 + $0x8] sm:$0x3] %vm972_vm13, %v1496_v0 }
  0x67   : > { %976 = vst.msk [vmem:[#allocation4 + $0x20] sm:$0xff] %vm970_vm12, %v1496_v0 }
  0x68   : > { %977 = vst.msk [vmem:[#allocation4 + $0x28] sm:$0x3] %vm972_vm13, %v1496_v0 }
  0x69   : > { %978 = vst.msk [vmem:[#allocation4 + $0x30] sm:$0xff] %vm970_vm12, %v1496_v0 }
  0x6a   : > { %564 = vrot.lane.b32.xlu0 %v541_v34, %s1498_s8  ;;  %621 = vrot.lane.b32.xlu1 %v598_v35, %s1501_s11  ;;  %979 = vst.msk [vmem:[#allocation4 + $0x38] sm:$0x3] %vm972_vm13, %v1496_v0 }
  0x6b   : > { %508 = vrot.lane.b32.xlu2 %v485_v36, %s1499_s9  ;;  %v606_v36 = vld [vmem:[#allocation2 + $0x139] ss:$2 sm:$0xff]  ;;  %v836_v2 = vld [vmem:[#allocation2 + $0x182] ss:$2 sm:$0xff]  ;;  %980 = vst.msk [vmem:[#allocation4 + $0x40] sm:$0xff] %vm970_vm12, %v1496_v0 }
  0x6c   : > { %v779_v3 = vld [vmem:[#allocation2 + $0x181] ss:$2 sm:$0xff]  ;;  %981 = vst.msk [vmem:[#allocation4 + $0x48] sm:$0x3] %vm972_vm13, %v1496_v0 }
  0x6d   : > { %982 = vst.msk [vmem:[#allocation4 + $0x50] sm:$0xff] %vm970_vm12, %v1496_v0 }
  0x6e   : > { %983 = vst.msk [vmem:[#allocation4 + $0x58] sm:$0x3] %vm972_vm13, %v1496_v0 }
  0x6f   : > { %984 = vst.msk [vmem:[#allocation4 + $0x60] sm:$0xff] %vm970_vm12, %v1496_v0 }
  0x70   : > { %985 = vst.msk [vmem:[#allocation4 + $0x68] sm:$0x3] %vm972_vm13, %v1496_v0 }
  0x71   : > { %986 = vst.msk [vmem:[#allocation4 + $0x70] sm:$0xff] %vm970_vm12, %v1496_v0 }
  0x72   : > { %735 = vrot.lane.b32.xlu0 %v712_v39, %s1504_s14  ;;  %792 = vrot.lane.b32.xlu1 %v769_v40, %s1502_s12  ;;  %987 = vst.msk [vmem:[#allocation4 + $0x78] sm:$0x3] %vm972_vm13, %v1496_v0 }
  0x73   : > { %678 = vrot.lane.b32.xlu2 %v655_v41, %s1500_s10  ;;  %988 = vst.msk [vmem:[#allocation4 + $0x80] sm:$0xff] %vm970_vm12, %v1496_v0 }
  0x74   : > { %989 = vst.msk [vmem:[#allocation4 + $0x88] sm:$0x3] %vm972_vm13, %v1496_v0 }
  0x75   : > { %990 = vst.msk [vmem:[#allocation4 + $0x90] sm:$0xff] %vm970_vm12, %v1496_v0 }
  0x76   : > { %991 = vst.msk [vmem:[#allocation4 + $0x98] sm:$0x3] %vm972_vm13, %v1496_v0  ;;  %v1001_v0 = vld [vmem:[%s2094_s3] sm:$0xff] }
  0x7a   : > { %453 = vrot.lane.b32.xlu0 %v430_v44, %s1497_s26  ;;  %510 = vrot.lane.b32.xlu1 %v487_v45, %s1499_s9  ;;  %v834_v44 = vld [vmem:[#allocation2 + $0x152] ss:$2 sm:$0xff] }
  0x7b   : > { %849 = vrot.lane.b32.xlu2 %v826_v48, %s1503_s13  ;;  %v406_v45 = vld [vmem:[#allocation2 + $0x90] ss:$2 sm:$0xff] }
  0x7c   : > { %418 = vst.msk [vmem:[#allocation3 + $0x18] sm:$0xff] %vm279_vm0, %v406_v45  ;;  %v1251_v45 = vld [vmem:[%s2096_s5 + $0x10] sm:$0xff] }
  0x82   : > { %623 = vrot.lane.b32.xlu0 %v600_v49, %s1501_s11  ;;  %680 = vrot.lane.b32.xlu1 %v657_v50, %s1500_s10  ;;  %v495_v50 = vld [vmem:[#allocation2 + $0x152] ss:$2 sm:$0xff] }
  0x83   : > { %566 = vrot.lane.b32.xlu2 %v543_v51, %s1498_s8  ;;  %v551_v51 = vld [vmem:[#allocation2 + $0x168] ss:$2 sm:$0xff] }
  0x87   : > { %v448_v57 = vpop.permute.xlu0 %447 }
  0x88   : > { %472 = vst.msk [vmem:[#allocation3] sm:$0xff] %vm471_vm2, %v448_v57  ;;  %v722_v57 = vld [vmem:[#allocation2 + $0x180] ss:$2 sm:$0xff] }
  0x8a   : > { %794 = vrot.lane.b32.xlu0 %v771_v52, %s1502_s12  ;;  %851 = vrot.lane.b32.xlu1 %v828_v53, %s1503_s13  ;;  %v438_v52 = vld [vmem:[#allocation2 + $0x151] ss:$2 sm:$0xff] }
  0x8b   : > { %737 = vrot.lane.b32.xlu2 %v714_v56, %s1504_s14  ;;  %v665_v56 = vld [vmem:[#allocation2 + $0x16a] ss:$2 sm:$0xff] }
  0x92   : > { %457 = vrot.lane.b32.xlu0 %v434_v59, %s1497_s26  ;;  %512 = vrot.lane.b32.xlu1 %v489_v60, %s1499_s9 }
  0x93   : > { %455 = vrot.lane.b32.xlu2 %v432_v61, %s1497_s26 }
  0x94   : > { %v675_v4 = vpop.permute.xlu2 %674 }
  0x9a   : > { %568 = vrot.lane.b32.xlu0 %v545_v62, %s1498_s8  ;;  %570 = vrot.lane.b32.xlu1 %v547_v63, %s1498_s8  ;;  %v408_v63 = vld [vmem:[#allocation2 + $0xc0] ss:$2 sm:$0xff] }
  0x9b   : > { %514 = vrot.lane.b32.xlu2 %v491_v1, %s1499_s9  ;;  %v410_v1 = vld [vmem:[#allocation2 + $0xf0] ss:$2 sm:$0xff]  ;;  %419 = vst.msk [vmem:[#allocation3 + $0x20] sm:$0xff] %vm279_vm0, %v408_v63 }
  0x9c   : > { %420 = vst.msk [vmem:[#allocation3 + $0x28] sm:$0xff] %vm279_vm0, %v410_v1 }
  0xa2   : > { %627 = vrot.lane.b32.xlu0 %v604_v6, %s1501_s11  ;;  %682 = vrot.lane.b32.xlu1 %v659_v7, %s1500_s10 }
  0xa3   : > { %625 = vrot.lane.b32.xlu2 %v602_v8, %s1501_s11 }
  0xa5   : > { %v732_v11 = vpop.permute.xlu2 %731 }
  0xaa   : > { %739 = vrot.lane.b32.xlu0 %v716_v14, %s1504_s14  ;;  %741 = vrot.lane.b32.xlu1 %v718_v15, %s1504_s14  ;;  %v561_v17 = vpop.permute.xlu1 %560 }
  0xab   : > { %v505_v18 = vpop.permute.xlu0 %504  ;;  %684 = vrot.lane.b32.xlu2 %v661_v16, %s1500_s10 }
  0xac   : > { %529 = vst.msk [vmem:[#allocation3] sm:$0xff] %vm528_vm4, %v505_v18 }
  0xad   : > { %585 = vst.msk [vmem:[#allocation3] sm:$0xff] %vm584_vm5, %v561_v17  ;;  %v450_v19 = vpop.permute.xlu2 %449 }
  0xae   : > { %473 = vst.msk [vmem:[#allocation3 + $0x8] sm:$0xff] %vm471_vm2, %v450_v19 }
  0xb2   : > { %798 = vrot.lane.b32.xlu0 %v775_v20, %s1502_s12  ;;  %853 = vrot.lane.b32.xlu1 %v830_v21, %s1503_s13  ;;  %v618_v25 = vpop.permute.xlu1 %617  ;;  %v412_v21 = vld [vmem:[#allocation2 + $0x120] ss:$2 sm:$0xff] }
  0xb3   : > { %642 = vst.msk [vmem:[#allocation3] sm:$0xff] %vm641_vm6, %v618_v25  ;;  %796 = vrot.lane.b32.xlu2 %v773_v24, %s1502_s12 }
  0xb4   : > { %699 = vst.msk [vmem:[#allocation3] sm:$0xff] %vm698_vm7, %v675_v4 }
  0xb5   : > { %756 = vst.msk [vmem:[#allocation3] sm:$0xff] %vm755_vm8, %v732_v11  ;;  %v620_v26 = vpop.permute.xlu2 %619 }
  0xb6   : > { %421 = vst.msk [vmem:[#allocation3 + $0x30] sm:$0xff] %vm279_vm0, %v412_v21 }
  0xba   : > { %459 = vrot.lane.b32.xlu0 %v436_v27, %s1497_s26  ;;  %516 = vrot.lane.b32.xlu1 %v493_v28, %s1499_s9 }
  0xbb   : > { %855 = vrot.lane.b32.xlu2 %v832_v31, %s1503_s13  ;;  %v414_v31 = vld [vmem:[#allocation2 + $0x150] ss:$2 sm:$0xff] }
  0xbc   : > { %v789_v33 = vpop.permute.xlu0 %788  ;;  %v846_v34 = vpop.permute.xlu1 %845  ;;  %422 = vst.msk [vmem:[#allocation3 + $0x38] sm:$0xff] %vm279_vm0, %v414_v31 }
  0xbd   : > { %813 = vst.msk [vmem:[#allocation3] sm:$0xff] %vm812_vm9, %v789_v33  ;;  %v791_v35 = vpop.permute.xlu2 %790 }
  0xbe   : > { %870 = vst.msk [vmem:[#allocation3] sm:$0xff] %vm869_vm10, %v846_v34 }
  0xc2   : > { %629 = vrot.lane.b32.xlu0 %v606_v36, %s1501_s11  ;;  %686 = vrot.lane.b32.xlu1 %v663_v37, %s1500_s10 }
  0xc3   : > { %572 = vrot.lane.b32.xlu2 %v549_v38, %s1498_s8 }
  0xc4   : > { %v507_v39 = vpop.permute.xlu0 %506  ;;  %v563_v40 = vpop.permute.xlu1 %562 }
  0xc5   : > { %530 = vst.msk [vmem:[#allocation3 + $0x8] sm:$0xff] %vm528_vm4, %v507_v39  ;;  %v878_v41 = vld [vmem:[#allocation3] sm:$0xff]  ;;  %v509_v42 = vpop.permute.xlu2 %508 }
  0xc6   : > { %586 = vst.msk [vmem:[#allocation3 + $0x8] sm:$0xff] %vm584_vm5, %v563_v40  ;;  %1441 = vmatmul.msk.f32.vlgmr.msra.gmra.mxu0 %vm892_vm11, %v878_v41 }
  0xc7   : > { %643 = vst.msk [vmem:[#allocation3 + $0x8] sm:$0xff] %vm641_vm6, %v620_v26 }
  0xca   : > { %800 = vrot.lane.b32.xlu0 %v777_v43, %s1502_s12  ;;  %857 = vrot.lane.b32.xlu1 %v834_v44, %s1503_s13  ;;  %v1252_v44 = vld [vmem:[%s2096_s5 + $0x18] sm:$0xff] }
  0xcb   : > { %743 = vrot.lane.b32.xlu2 %v720_v46, %s1504_s14  ;;  %v1911_v46 = vld [vmem:[%s2093_s2] ss:$0 sm:$0xff]  ;;  %1293 = vmatpush.msra.mxu1 %v1252_v44 }
  0xcc   : > { %v677_v47 = vpop.permute.xlu0 %676  ;;  %v734_v48 = vpop.permute.xlu1 %733  ;;  %1463 = vmatpush.msra.mxu2 %v1252_v44 }
  0xcd   : > { %700 = vst.msk [vmem:[#allocation3 + $0x8] sm:$0xff] %vm698_vm7, %v677_v47  ;;  %v679_v49 = vpop.permute.xlu2 %678  ;;  %1294 = vmatpush.msra.mxu1 %v1251_v45 }
  0xce   : > { %757 = vst.msk [vmem:[#allocation3 + $0x8] sm:$0xff] %vm755_vm8, %v734_v48  ;;  %v1250_v48 = vld [vmem:[%s2096_s5 + $0x8] sm:$0xff]  ;;  %1464 = vmatpush.msra.mxu2 %v1251_v45 }
  0xcf   : > { %814 = vst.msk [vmem:[#allocation3 + $0x8] sm:$0xff] %vm812_vm9, %v791_v35  ;;  %1295 = vmatpush.msra.mxu1 %v1250_v48 }
  0xd0   : > { %1465 = vmatpush.msra.mxu2 %v1250_v48 }
  0xd2   : > { %518 = vrot.lane.b32.xlu0 %v495_v50, %s1499_s9  ;;  %574 = vrot.lane.b32.xlu1 %v551_v51, %s1498_s8 }
  0xd3   : > { %461 = vrot.lane.b32.xlu2 %v438_v52, %s1497_s26 }
  0xd4   : > { %v848_v53 = vpop.permute.xlu0 %847  ;;  %v452_v54 = vpop.permute.xlu1 %451 }
  0xd5   : > { %871 = vst.msk [vmem:[#allocation3 + $0x8] sm:$0xff] %vm869_vm10, %v848_v53  ;;  %v850_v55 = vpop.permute.xlu2 %849 }
  0xd6   : > { %474 = vst.msk [vmem:[#allocation3 + $0x10] sm:$0xff] %vm471_vm2, %v452_v54 }
  0xd7   : > { %531 = vst.msk [vmem:[#allocation3 + $0x10] sm:$0xff] %vm528_vm4, %v509_v42 }
  0xda   : > { %688 = vrot.lane.b32.xlu0 %v665_v56, %s1500_s10  ;;  %745 = vrot.lane.b32.xlu1 %v722_v57, %s1504_s14  ;;  %s1460_s14 = sshll.u32 %s2100_s25, 6 }
  0xdb   : > { %631 = vrot.lane.b32.xlu2 %v608_v58, %s1501_s11  ;;  %v1938_v58 = vperm.slane %v1001_v0, 0  ;;  %s2069_s18 = scalar_lea.vmem %s2098_s7, %s1460_s14 }
  0xdc   : > { %v565_v59 = vpop.permute.xlu0 %564  ;;  %v879_v60 = vld [vmem:[#allocation3 + $0x8] sm:$0xff]  ;;  %v622_v61 = vpop.permute.xlu1 %621 }
  0xdd   : > { %587 = vst.msk [vmem:[#allocation3 + $0x10] sm:$0xff] %vm584_vm5, %v565_v59  ;;  %1442 = vmatmul.msk.f32.gmra.mxu0 %vm892_vm11, %v879_v60  ;;  %v567_v62 = vpop.permute.xlu2 %566  ;;  %v1940_v59 = vperm.slane %v1001_v0, 1  ;;  %v1003_v60 = vld [vmem:[#allocation4] sm:$0xff] }
  0xde   : > { %644 = vst.msk [vmem:[#allocation3 + $0x10] sm:$0xff] %vm641_vm6, %v622_v61  ;;  %v1028_v61 = vld [vmem:[#allocation4 + $0x1] sm:$0xff]  ;;  %v1012_v63 = vmul.f32 %v1938_v58, %v1003_v60 }
  0xdf   : > { %701 = vst.msk [vmem:[#allocation3 + $0x10] sm:$0xff] %vm698_vm7, %v679_v49  ;;  %v1037_v1 = vmul.f32 %v1940_v59, %v1028_v61 }
  0xe2   : > { %859 = vrot.lane.b32.xlu0 %v836_v2, %s1503_s13  ;;  %v1947_v2 = vperm.slane %v1001_v0, 2 }
  0xe3   : > { %802 = vrot.lane.b32.xlu2 %v779_v3, %s1502_s12 }
  0xe4   : > { %v736_v4 = vpop.permute.xlu0 %735  ;;  %v793_v5 = vpop.permute.xlu1 %792 }
  0xe5   : > { %758 = vst.msk [vmem:[#allocation3 + $0x10] sm:$0xff] %vm755_vm8, %v736_v4  ;;  %v738_v6 = vpop.permute.xlu2 %737  ;;  %v1053_v4 = vld [vmem:[#allocation4 + $0x2] sm:$0xff] }
  0xe6   : > { %815 = vst.msk [vmem:[#allocation3 + $0x10] sm:$0xff] %vm812_vm9, %v793_v5  ;;  %v1045_v5 = vadd.f32 %v1037_v1, %v1012_v63 }
  0xe7   : > { %872 = vst.msk [vmem:[#allocation3 + $0x10] sm:$0xff] %vm869_vm10, %v850_v55 }
  0xec   : > { %v454_v7 = vpop.permute.xlu0 %453  ;;  %v511_v8 = vpop.permute.xlu1 %510 }
  0xed   : > { %475 = vst.msk [vmem:[#allocation3 + $0x18] sm:$0xff] %vm471_vm2, %v454_v7  ;;  %v456_v9 = vpop.permute.xlu2 %455  ;;  %v1951_v7 = vperm.slane %v1001_v0, 3 }
  0xee   : > { %532 = vst.msk [vmem:[#allocation3 + $0x18] sm:$0xff] %vm528_vm4, %v511_v8  ;;  %v880_v10 = vld [vmem:[#allocation3 + $0x10] sm:$0xff] }
  0xef   : > { %588 = vst.msk [vmem:[#allocation3 + $0x18] sm:$0xff] %vm584_vm5, %v567_v62  ;;  %1443 = vmatmul.msk.f32.gmra.mxu0 %vm892_vm11, %v880_v10  ;;  %v1249_v62 = vld [vmem:[%s2096_s5] sm:$0xff] }
  0xf0   : > { %476 = vst.msk [vmem:[#allocation3 + $0x20] sm:$0xff] %vm471_vm2, %v456_v9  ;;  %1296 = vmatpush.msra.mxu1 %v1249_v62  ;;  %1466 = vmatpush.msra.mxu2 %v1249_v62 }
  0xf4   : > { %v624_v11 = vpop.permute.xlu0 %623  ;;  %v681_v12 = vpop.permute.xlu1 %680 }
  0xf5   : > { %645 = vst.msk [vmem:[#allocation3 + $0x18] sm:$0xff] %vm641_vm6, %v624_v11  ;;  %v515_v13 = vpop.permute.xlu2 %514 }
  0xf6   : > { %702 = vst.msk [vmem:[#allocation3 + $0x18] sm:$0xff] %vm698_vm7, %v681_v12 }
  0xf7   : > { %759 = vst.msk [vmem:[#allocation3 + $0x18] sm:$0xff] %vm755_vm8, %v738_v6  ;;  %v1062_v6 = vmul.f32 %v1947_v2, %v1053_v4 }
  0xf9   : > { %v1070_v11 = vadd.f32 %v1062_v6, %v1045_v5 }
  0xfc   : > { %v795_v14 = vpop.permute.xlu0 %794  ;;  %v852_v15 = vpop.permute.xlu1 %851 }
  0xfd   : > { %816 = vst.msk [vmem:[#allocation3 + $0x18] sm:$0xff] %vm812_vm9, %v795_v14  ;;  %v626_v16 = vpop.permute.xlu2 %625 }
  0xfe   : > { %873 = vst.msk [vmem:[#allocation3 + $0x18] sm:$0xff] %vm869_vm10, %v852_v15  ;;  %v1956_v15 = vperm.slane %v1001_v0, 4 }
 0x104   : > { %v458_v17 = vpop.permute.xlu0 %457  ;;  %v513_v18 = vpop.permute.xlu1 %512 }
 0x105   : > { %477 = vst.msk [vmem:[#allocation3 + $0x28] sm:$0xff] %vm471_vm2, %v458_v17  ;;  %v881_v19 = vld [vmem:[#allocation3 + $0x18] sm:$0xff]  ;;  %v685_v20 = vpop.permute.xlu2 %684 }
 0x106   : > { %534 = vst.msk [vmem:[#allocation3 + $0x28] sm:$0xff] %vm528_vm4, %v515_v13  ;;  %1444 = vmatmul.msk.f32.gmra.mxu0 %vm892_vm11, %v881_v19  ;;  %v1960_v19 = vperm.slane %v1001_v0, 5 }
 0x107   : > { %533 = vst.msk [vmem:[#allocation3 + $0x20] sm:$0xff] %vm528_vm4, %v513_v18 }
 0x10c   : > { %v569_v22 = vpop.permute.xlu0 %568  ;;  %v571_v23 = vpop.permute.xlu1 %570 }
 0x10d   : > { %589 = vst.msk [vmem:[#allocation3 + $0x20] sm:$0xff] %vm584_vm5, %v569_v22  ;;  %v797_v24 = vpop.permute.xlu2 %796  ;;  %v1962_v22 = vperm.slane %v1001_v0, 6 }
 0x10e   : > { %646 = vst.msk [vmem:[#allocation3 + $0x20] sm:$0xff] %vm641_vm6, %v626_v16 }
 0x10f   : > { %590 = vst.msk [vmem:[#allocation3 + $0x28] sm:$0xff] %vm584_vm5, %v571_v23 }
 0x114   : > { %v628_v25 = vpop.permute.xlu0 %627  ;;  %v683_v26 = vpop.permute.xlu1 %682 }
 0x115   : > { %647 = vst.msk [vmem:[#allocation3 + $0x28] sm:$0xff] %vm641_vm6, %v628_v25  ;;  %v856_v27 = vpop.permute.xlu2 %855 }
 0x116   : > { %704 = vst.msk [vmem:[#allocation3 + $0x28] sm:$0xff] %vm698_vm7, %v685_v20 }
 0x117   : > { %703 = vst.msk [vmem:[#allocation3 + $0x20] sm:$0xff] %vm698_vm7, %v683_v26 }
 0x11c   : > { %v740_v28 = vpop.permute.xlu0 %739  ;;  %v742_v29 = vpop.permute.xlu1 %741 }
 0x11d   : > { %760 = vst.msk [vmem:[#allocation3 + $0x20] sm:$0xff] %vm755_vm8, %v740_v28  ;;  %v573_v30 = vpop.permute.xlu2 %572 }
 0x11e   : > { %817 = vst.msk [vmem:[#allocation3 + $0x20] sm:$0xff] %vm812_vm9, %v797_v24  ;;  %v1965_v24 = vperm.slane %v1001_v0, 7 }
 0x11f   : > { %761 = vst.msk [vmem:[#allocation3 + $0x28] sm:$0xff] %vm755_vm8, %v742_v29  ;;  %v1971_v29 = vld [vmem:[%s2094_s3 + $0x8] ss:$0 sm:$0xff] }
 0x124   : > { %v799_v32 = vpop.permute.xlu0 %798  ;;  %v854_v33 = vpop.permute.xlu1 %853 }
 0x125   : > { %818 = vst.msk [vmem:[#allocation3 + $0x28] sm:$0xff] %vm812_vm9, %v799_v32  ;;  %v744_v34 = vpop.permute.xlu2 %743 }
 0x126   : > { %875 = vst.msk [vmem:[#allocation3 + $0x28] sm:$0xff] %vm869_vm10, %v856_v27 }
 0x127   : > { %874 = vst.msk [vmem:[#allocation3 + $0x20] sm:$0xff] %vm869_vm10, %v854_v33 }
 0x12c   : > { %v460_v35 = vpop.permute.xlu0 %459  ;;  %v517_v36 = vpop.permute.xlu1 %516 }
 0x12d   : > { %478 = vst.msk [vmem:[#allocation3 + $0x30] sm:$0xff] %vm471_vm2, %v460_v35  ;;  %v883_v37 = vld [vmem:[#allocation3 + $0x28] sm:$0xff]  ;;  %v462_v38 = vpop.permute.xlu2 %461 }
 0x12e   : > { %1446 = vmatmul.msk.f32.vlgmr.msra.gmra.mxu3 %vm892_vm11, %v883_v37  ;;  %535 = vst.msk [vmem:[#allocation3 + $0x30] sm:$0xff] %vm528_vm4, %v517_v36  ;;  %v882_v39 = vld [vmem:[#allocation3 + $0x20] sm:$0xff]  ;;  %v1980_v37 = vld [vmem:[%s2095_s4] ss:$0 sm:$0xff] }
 0x12f   : > { %591 = vst.msk [vmem:[#allocation3 + $0x30] sm:$0xff] %vm584_vm5, %v573_v30  ;;  %1445 = vmatmul.msk.f32.gmra.mxu0 %vm892_vm11, %v882_v39 }
 0x130   : > { %479 = vst.msk [vmem:[#allocation3 + $0x38] sm:$0xff] %vm471_vm2, %v462_v38 }
 0x134   : > { %v630_v40 = vpop.permute.xlu0 %629  ;;  %v687_v41 = vpop.permute.xlu1 %686 }
 0x135   : > { %648 = vst.msk [vmem:[#allocation3 + $0x30] sm:$0xff] %vm641_vm6, %v630_v40  ;;  %v632_v47 = vpop.permute.xlu2 %631 }
 0x136   : > { %705 = vst.msk [vmem:[#allocation3 + $0x30] sm:$0xff] %vm698_vm7, %v687_v41 }
 0x137   : > { %762 = vst.msk [vmem:[#allocation3 + $0x30] sm:$0xff] %vm755_vm8, %v744_v34 }
 0x13c   : > { %v801_v42 = vpop.permute.xlu0 %800  ;;  %v858_v43 = vpop.permute.xlu1 %857 }
 0x13d   : > { %819 = vst.msk [vmem:[#allocation3 + $0x30] sm:$0xff] %vm812_vm9, %v801_v42  ;;  %v803_v55 = vpop.permute.xlu2 %802 }
 0x13e   : > { %876 = vst.msk [vmem:[#allocation3 + $0x30] sm:$0xff] %vm869_vm10, %v858_v43 }
 0x143   : > { %v938_v49 = vpop.f32.mrf.mxu0 }
 0x144   : > { %v519_v50 = vpop.permute.xlu0 %518  ;;  %v939_v51 = vadd.f32 %v1911_v46, %v938_v49  ;;  %v575_v52 = vpop.permute.xlu1 %574 }
 0x145   : > { %536 = vst.msk [vmem:[#allocation3 + $0x38] sm:$0xff] %vm528_vm4, %v519_v50  ;;  %v884_v53 = vld [vmem:[#allocation3 + $0x30] sm:$0xff] }
 0x146   : > { %v962_v54 = vmax.f32 %v939_v51, 0.0  ;;  %592 = vst.msk [vmem:[#allocation3 + $0x38] sm:$0xff] %vm584_vm5, %v575_v52  ;;  %1447 = vmatmul.msk.f32.gmra.mxu3 %vm892_vm11, %v884_v53 }
 0x147   : > { %649 = vst.msk [vmem:[#allocation3 + $0x38] sm:$0xff] %vm641_vm6, %v632_v47 }
 0x148   : > { %993 = vst.msk [vmem:[#allocation4 + $0x11] sm:$0xff] %vm970_vm12, %v962_v54 }
 0x14c   : > { %v689_v56 = vpop.permute.xlu0 %688  ;;  %v746_v57 = vpop.permute.xlu1 %745 }
 0x14d   : > { %706 = vst.msk [vmem:[#allocation3 + $0x38] sm:$0xff] %vm698_vm7, %v689_v56 }
 0x14e   : > { %763 = vst.msk [vmem:[#allocation3 + $0x38] sm:$0xff] %vm755_vm8, %v746_v57 }
 0x14f   : > { %820 = vst.msk [vmem:[#allocation3 + $0x38] sm:$0xff] %vm812_vm9, %v803_v55  ;;  %v1078_v8 = vld [vmem:[#allocation4 + $0x10] sm:$0xff] }
 0x150   : > { %v1087_v12 = vmul.f32 %v1951_v7, %v1078_v8  ;;  %v1103_v16 = vld [vmem:[#allocation4 + $0x11] sm:$0xff]  ;;  %v1013_v30 = vmul.f32 %v1078_v8, %v1938_v58 }
 0x151   : > { %v1112_v18 = vmul.f32 %v1956_v15, %v1103_v16  ;;  %v1128_v20 = vld [vmem:[#allocation4 + $0x12] sm:$0xff]  ;;  %v1038_v31 = vmul.f32 %v1103_v16, %v1940_v59 }
 0x152   : > { %v1095_v17 = vadd.f32 %v1087_v12, %v1070_v11  ;;  %v1137_v23 = vmul.f32 %v1960_v19, %v1128_v20  ;;  %v1063_v42 = vmul.f32 %v1128_v20, %v1947_v2 }
 0x153   : > { %v1046_v38 = vadd.f32 %v1038_v31, %v1013_v30 }
 0x154   : > { %v860_v3 = vpop.permute.xlu0 %859  ;;  %v1120_v21 = vadd.f32 %v1112_v18, %v1095_v17 }
 0x155   : > { %877 = vst.msk [vmem:[#allocation3 + $0x38] sm:$0xff] %vm869_vm10, %v860_v3  ;;  %v1071_v47 = vadd.f32 %v1063_v42, %v1046_v38 }
 0x156   : > { %v1145_v27 = vadd.f32 %v1137_v23, %v1120_v21 }
 0x15a   : > { %v941_v9 = vpop.f32.mrf.mxu0 }
 0x15b   : > { %v942_v10 = vadd.f32 %v1911_v46, %v941_v9 }
 0x15c   : > { %v885_v13 = vld [vmem:[#allocation3 + $0x38] sm:$0xff] }
 0x15d   : > { %v963_v14 = vmax.f32 %v942_v10, 0.0  ;;  %1448 = vmatmul.msk.f32.gmra.mxu3 %vm892_vm11, %v885_v13 }
 0x15f   : > { %994 = vst.msk [vmem:[#allocation4 + $0x21] sm:$0xff] %vm970_vm12, %v963_v14 }
 0x166   : > { %v1154_v25 = vld [vmem:[#allocation4 + $0x20] sm:$0xff] }
 0x167   : > { %v1179_v26 = vld [vmem:[#allocation4 + $0x21] sm:$0xff]  ;;  %v1163_v28 = vmul.f32 %v1962_v22, %v1154_v25  ;;  %v1088_v43 = vmul.f32 %v1154_v25, %v1951_v7  ;;  %v1014_v63 = vmul.f32 %v1154_v25, %v1938_v58 }
 0x168   : > { %v1204_v32 = vld [vmem:[#allocation4 + $0x22] sm:$0xff]  ;;  %v1188_v34 = vmul.f32 %v1965_v24, %v1179_v26  ;;  %v1113_v50 = vmul.f32 %v1179_v26, %v1956_v15  ;;  %v1039_v1 = vmul.f32 %v1179_v26, %v1940_v59 }
 0x169   : > { %v1171_v33 = vadd.f32 %v1163_v28, %v1145_v27  ;;  %v1213_v36 = vmul.f32 %v1971_v29, %v1204_v32  ;;  %v1096_v49 = vadd.f32 %v1088_v43, %v1071_v47  ;;  %v1138_v52 = vmul.f32 %v1204_v32, %v1960_v19 }
 0x16a   : > { %v1047_v5 = vadd.f32 %v1039_v1, %v1014_v63  ;;  %v1064_v10 = vmul.f32 %v1204_v32, %v1947_v2 }
 0x16b   : > { %v1196_v35 = vadd.f32 %v1188_v34, %v1171_v33  ;;  %v1121_v51 = vadd.f32 %v1113_v50, %v1096_v49 }
 0x16c   : > { %v944_v39 = vpop.f32.mrf.mxu0  ;;  %v1072_v13 = vadd.f32 %v1064_v10, %v1047_v5 }
 0x16d   : > { %v945_v40 = vadd.f32 %v1911_v46, %v944_v39  ;;  %v1221_v41 = vadd.f32 %v1213_v36, %v1196_v35  ;;  %v1146_v55 = vadd.f32 %v1138_v52, %v1121_v51 }
 0x16f   : > { %v964_v44 = vmax.f32 %v945_v40, 0.0  ;;  %v1233_v45 = vadd.f32 %v1980_v37, %v1221_v41 }
 0x171   : > { %995 = vst.msk [vmem:[#allocation4 + $0x31] sm:$0xff] %vm970_vm12, %v964_v44  ;;  %v1241_v48 = vmax.f32 %v1233_v45, 0.0 }
 0x173   : > { %1449 = vmatmul.msk.f32.vlgmr.msra.gmra.mxu1 %vm970_vm12, %v1241_v48 }
 0x178   : > { %v1155_v53 = vld [vmem:[#allocation4 + $0x30] sm:$0xff] }
 0x179   : > { %v1180_v54 = vld [vmem:[#allocation4 + $0x31] sm:$0xff]  ;;  %v1164_v56 = vmul.f32 %v1962_v22, %v1155_v53  ;;  %v1089_v11 = vmul.f32 %v1155_v53, %v1951_v7  ;;  %v1015_v35 = vmul.f32 %v1155_v53, %v1938_v58 }
 0x17a   : > { %v1205_v57 = vld [vmem:[#allocation4 + $0x32] sm:$0xff]  ;;  %v1189_v60 = vmul.f32 %v1965_v24, %v1180_v54  ;;  %v1114_v16 = vmul.f32 %v1180_v54, %v1956_v15  ;;  %v1040_v36 = vmul.f32 %v1180_v54, %v1940_v59 }
 0x17b   : > { %v1172_v0 = vadd.f32 %v1164_v56, %v1146_v55  ;;  %v1214_v62 = vmul.f32 %v1971_v29, %v1205_v57  ;;  %v1097_v14 = vadd.f32 %v1089_v11, %v1072_v13  ;;  %v1139_v18 = vmul.f32 %v1205_v57, %v1960_v19 }
 0x17c   : > { %v1048_v38 = vadd.f32 %v1040_v36, %v1015_v35  ;;  %v1065_v41 = vmul.f32 %v1205_v57, %v1947_v2 }
 0x17d   : > { %v1197_v61 = vadd.f32 %v1189_v60, %v1172_v0  ;;  %v1122_v17 = vadd.f32 %v1114_v16, %v1097_v14 }
 0x17e   : > { %v1073_v44 = vadd.f32 %v1065_v41, %v1048_v38 }
 0x17f   : > { %v1222_v3 = vadd.f32 %v1214_v62, %v1197_v61  ;;  %v1147_v23 = vadd.f32 %v1139_v18, %v1122_v17 }
 0x181   : > { %v1234_v4 = vadd.f32 %v1980_v37, %v1222_v3 }
 0x183   : > { %v947_v6 = vpop.f32.mrf.mxu0  ;;  %v1242_v8 = vmax.f32 %v1234_v4, 0.0 }
 0x184   : > { %v948_v9 = vadd.f32 %v1911_v46, %v947_v6 }
 0x185   : > { %1450 = vmatmul.msk.f32.gmra.mxu1 %vm970_vm12, %v1242_v8 }
 0x186   : > { %v965_v12 = vmax.f32 %v948_v9, 0.0 }
 0x188   : > { %996 = vst.msk [vmem:[#allocation4 + $0x41] sm:$0xff] %vm970_vm12, %v965_v12 }
 0x18f   : > { %v1156_v20 = vld [vmem:[#allocation4 + $0x40] sm:$0xff] }
 0x190   : > { %v1181_v21 = vld [vmem:[#allocation4 + $0x41] sm:$0xff]  ;;  %v1165_v25 = vmul.f32 %v1962_v22, %v1156_v20  ;;  %v1090_v42 = vmul.f32 %v1156_v20, %v1951_v7  ;;  %v1016_v48 = vmul.f32 %v1156_v20, %v1938_v58 }
 0x191   : > { %v1206_v26 = vld [vmem:[#allocation4 + $0x42] sm:$0xff]  ;;  %v1190_v28 = vmul.f32 %v1965_v24, %v1181_v21  ;;  %v1041_v49 = vmul.f32 %v1181_v21, %v1940_v59  ;;  %v1115_v51 = vmul.f32 %v1181_v21, %v1956_v15 }
 0x192   : > { %v1173_v27 = vadd.f32 %v1165_v25, %v1147_v23  ;;  %v1215_v31 = vmul.f32 %v1971_v29, %v1206_v26  ;;  %v1098_v47 = vadd.f32 %v1090_v42, %v1073_v44  ;;  %v1140_v55 = vmul.f32 %v1206_v26, %v1960_v19 }
 0x193   : > { %v1049_v54 = vadd.f32 %v1041_v49, %v1016_v48  ;;  %v1066_v56 = vmul.f32 %v1206_v26, %v1947_v2 }
 0x194   : > { %v1198_v30 = vadd.f32 %v1190_v28, %v1173_v27  ;;  %v1123_v53 = vadd.f32 %v1115_v51, %v1098_v47 }
 0x195   : > { %v1074_v62 = vadd.f32 %v1066_v56, %v1049_v54 }
 0x196   : > { %v1223_v32 = vadd.f32 %v1215_v31, %v1198_v30  ;;  %v1148_v60 = vadd.f32 %v1140_v55, %v1123_v53 }
 0x198   : > { %v1235_v33 = vadd.f32 %v1980_v37, %v1223_v32 }
 0x19a   : > { %v1243_v34 = vmax.f32 %v1235_v33, 0.0 }
 0x19c   : > { %1451 = vmatmul.msk.f32.gmra.mxu1 %vm970_vm12, %v1243_v34 }
 0x1ac   : > { %v950_v39 = vpop.f32.mrf.mxu0 }
 0x1ad   : > { %v951_v40 = vadd.f32 %v1911_v46, %v950_v39 }
 0x1af   : > { %v966_v43 = vmax.f32 %v951_v40, 0.0 }
 0x1b1   : > { %997 = vst.msk [vmem:[#allocation4 + $0x51] sm:$0xff] %vm970_vm12, %v966_v43  ;;  %v953_v45 = vpop.f32.mrf.mxu3 }
 0x1b2   : > { %v954_v50 = vadd.f32 %v1911_v46, %v953_v45 }
 0x1b4   : > { %v967_v52 = vmax.f32 %v954_v50, 0.0 }
 0x1b6   : > { %998 = vst.msk [vmem:[#allocation4 + $0x61] sm:$0xff] %vm970_vm12, %v967_v52 }
 0x1b8   : > { %v1157_v57 = vld [vmem:[#allocation4 + $0x50] sm:$0xff] }
 0x1b9   : > { %v1182_v0 = vld [vmem:[#allocation4 + $0x51] sm:$0xff]  ;;  %v1166_v61 = vmul.f32 %v1962_v22, %v1157_v57  ;;  %v1091_v63 = vmul.f32 %v1157_v57, %v1951_v7  ;;  %v1017_v25 = vmul.f32 %v1157_v57, %v1938_v58 }
 0x1ba   : > { %v1207_v1 = vld [vmem:[#allocation4 + $0x52] sm:$0xff]  ;;  %v1191_v4 = vmul.f32 %v1965_v24, %v1182_v0  ;;  %v1116_v6 = vmul.f32 %v1182_v0, %v1956_v15  ;;  %v1042_v26 = vmul.f32 %v1182_v0, %v1940_v59 }
 0x1bb   : > { %v1174_v3 = vadd.f32 %v1166_v61, %v1148_v60  ;;  %v1099_v5 = vadd.f32 %v1091_v63, %v1074_v62  ;;  %v1216_v9 = vmul.f32 %v1971_v29, %v1207_v1  ;;  %v1141_v11 = vmul.f32 %v1207_v1, %v1960_v19 }
 0x1bc   : > { %v1050_v32 = vadd.f32 %v1042_v26, %v1017_v25  ;;  %v1067_v34 = vmul.f32 %v1207_v1, %v1947_v2  ;;  %v1161_v25 = vld [vmem:[#allocation4 + $0x90] sm:$0xff] }
 0x1bd   : > { %v1199_v8 = vadd.f32 %v1191_v4, %v1174_v3  ;;  %v1124_v10 = vadd.f32 %v1116_v6, %v1099_v5  ;;  %v1158_v12 = vld [vmem:[#allocation4 + $0x60] sm:$0xff] }
 0x1be   : > { %v1167_v13 = vmul.f32 %v1962_v22, %v1158_v12  ;;  %v1183_v14 = vld [vmem:[#allocation4 + $0x61] sm:$0xff]  ;;  %v1075_v39 = vadd.f32 %v1067_v34, %v1050_v32  ;;  %v1092_v40 = vmul.f32 %v1158_v12, %v1951_v7  ;;  %v1018_v56 = vmul.f32 %v1158_v12, %v1938_v58 }
 0x1bf   : > { %v1224_v16 = vadd.f32 %v1216_v9, %v1199_v8  ;;  %v1149_v17 = vadd.f32 %v1141_v11, %v1124_v10  ;;  %v1192_v18 = vmul.f32 %v1965_v24, %v1183_v14  ;;  %v1208_v20 = vld [vmem:[#allocation4 + $0x62] sm:$0xff]  ;;  %v1117_v43 = vmul.f32 %v1183_v14, %v1956_v15 }
 0x1c0   : > { %v1217_v30 = vmul.f32 %v1971_v29, %v1208_v20  ;;  %v1100_v42 = vadd.f32 %v1092_v40, %v1075_v39  ;;  %v1142_v45 = vmul.f32 %v1208_v20, %v1960_v19  ;;  %v1043_v57 = vmul.f32 %v1183_v14, %v1940_v59 }
 0x1c1   : > { %v1236_v21 = vadd.f32 %v1980_v37, %v1224_v16  ;;  %v1175_v23 = vadd.f32 %v1167_v13, %v1149_v17  ;;  %v1068_v62 = vmul.f32 %v1208_v20, %v1947_v2  ;;  %v1170_v32 = vmul.f32 %v1962_v22, %v1161_v25 }
 0x1c2   : > { %v1125_v44 = vadd.f32 %v1117_v43, %v1100_v42  ;;  %v1051_v61 = vadd.f32 %v1043_v57, %v1018_v56 }
 0x1c3   : > { %v1244_v27 = vmax.f32 %v1236_v21, 0.0  ;;  %v1200_v28 = vadd.f32 %v1192_v18, %v1175_v23  ;;  %v1487_v18 = vld [vmem:[%s2097_s6] ss:$0 sm:$0xff] }
 0x1c4   : > { %v1150_v49 = vadd.f32 %v1142_v45, %v1125_v44  ;;  %v1076_v6 = vadd.f32 %v1068_v62, %v1051_v61 }
 0x1c5   : > { %1452 = vmatmul.msk.f32.gmra.mxu1 %vm970_vm12, %v1244_v27  ;;  %v1225_v31 = vadd.f32 %v1217_v30, %v1200_v28 }
 0x1c7   : > { %v1237_v33 = vadd.f32 %v1980_v37, %v1225_v31 }
 0x1c9   : > { %v956_v35 = vpop.f32.mrf.mxu3  ;;  %v1245_v36 = vmax.f32 %v1237_v33, 0.0  ;;  %v1186_v33 = vld [vmem:[#allocation4 + $0x91] sm:$0xff] }
 0x1ca   : > { %v957_v38 = vadd.f32 %v1911_v46, %v956_v35  ;;  %v1195_v40 = vmul.f32 %v1965_v24, %v1186_v33 }
 0x1cb   : > { %1453 = vmatmul.msk.f32.vlgmr.msra.gmra.mxu2 %vm970_vm12, %v1245_v36 }
 0x1cc   : > { %v968_v41 = vmax.f32 %v957_v38, 0.0  ;;  %v1211_v38 = vld [vmem:[#allocation4 + $0x92] sm:$0xff] }
 0x1cd   : > { %v1220_v43 = vmul.f32 %v1971_v29, %v1211_v38 }
 0x1ce   : > { %999 = vst.msk [vmem:[#allocation4 + $0x71] sm:$0xff] %vm970_vm12, %v968_v41 }
 0x1d5   : > { %v1159_v47 = vld [vmem:[#allocation4 + $0x70] sm:$0xff] }
 0x1d6   : > { %v1184_v48 = vld [vmem:[#allocation4 + $0x71] sm:$0xff]  ;;  %v1168_v50 = vmul.f32 %v1962_v22, %v1159_v47  ;;  %v1093_v4 = vmul.f32 %v1159_v47, %v1951_v7  ;;  %v1019_v9 = vmul.f32 %v1159_v47, %v1938_v58 }
 0x1d7   : > { %v1209_v51 = vld [vmem:[#allocation4 + $0x72] sm:$0xff]  ;;  %v1193_v53 = vmul.f32 %v1965_v24, %v1184_v48  ;;  %v1044_v10 = vmul.f32 %v1184_v48, %v1940_v59  ;;  %v1118_v11 = vmul.f32 %v1184_v48, %v1956_v15 }
 0x1d8   : > { %v1176_v52 = vadd.f32 %v1168_v50, %v1150_v49  ;;  %v1218_v55 = vmul.f32 %v1971_v29, %v1209_v51  ;;  %v1101_v8 = vadd.f32 %v1093_v4, %v1076_v6  ;;  %v1069_v14 = vmul.f32 %v1209_v51, %v1947_v2 }
 0x1d9   : > { %v1052_v13 = vadd.f32 %v1044_v10, %v1019_v9 }
 0x1da   : > { %v1201_v54 = vadd.f32 %v1193_v53, %v1176_v52  ;;  %v1126_v12 = vadd.f32 %v1118_v11, %v1101_v8 }
 0x1db   : > { %v1077_v59 = vadd.f32 %v1069_v14, %v1052_v13 }
 0x1dc   : > { %v1226_v0 = vadd.f32 %v1218_v55, %v1201_v54 }
 0x1de   : > { %v1238_v60 = vadd.f32 %v1980_v37, %v1226_v0 }
 0x1e0   : > { %v959_v63 = vpop.f32.mrf.mxu3  ;;  %v1246_v1 = vmax.f32 %v1238_v60, 0.0 }
 0x1e1   : > { %v960_v3 = vadd.f32 %v1911_v46, %v959_v63  ;;  %v1143_v46 = vmul.f32 %v1209_v51, %v1960_v19 }
 0x1e2   : > { %1454 = vmatmul.msk.f32.gmra.mxu2 %vm970_vm12, %v1246_v1 }
 0x1e3   : > { %v969_v5 = vmax.f32 %v960_v3, 0.0  ;;  %v1151_v20 = vadd.f32 %v1143_v46, %v1126_v12 }
 0x1e5   : > { %1000 = vst.msk [vmem:[#allocation4 + $0x81] sm:$0xff] %vm970_vm12, %v969_v5 }
 0x1ec   : > { %v1160_v16 = vld [vmem:[#allocation4 + $0x80] sm:$0xff] }
 0x1ed   : > { %v1185_v17 = vld [vmem:[#allocation4 + $0x81] sm:$0xff]  ;;  %v1169_v58 = vmul.f32 %v1962_v22, %v1160_v16  ;;  %v1094_v23 = vmul.f32 %v1160_v16, %v1951_v7 }
 0x1ee   : > { %v1210_v21 = vld [vmem:[#allocation4 + $0x82] sm:$0xff]  ;;  %v1194_v27 = vmul.f32 %v1965_v24, %v1185_v17  ;;  %v1119_v2 = vmul.f32 %v1185_v17, %v1956_v15 }
 0x1ef   : > { %v1177_v26 = vadd.f32 %v1169_v58, %v1151_v20  ;;  %v1102_v28 = vadd.f32 %v1094_v23, %v1077_v59  ;;  %v1219_v31 = vmul.f32 %v1971_v29, %v1210_v21  ;;  %v1144_v36 = vmul.f32 %v1210_v21, %v1960_v19 }
 0x1f0   : > { %v1298_v30 = vpop.f32.mrf.mxu1 }
 0x1f1   : > { %v1299_v7 = vadd.f32 %v1487_v18, %v1298_v30  ;;  %v1202_v34 = vadd.f32 %v1194_v27, %v1177_v26  ;;  %v1127_v35 = vadd.f32 %v1119_v2, %v1102_v28 }
 0x1f3   : > { %1322 = vst [vmem:[%s2069_s18] sm:$0xff] %v1299_v7  ;;  %v1227_v15 = vadd.f32 %v1219_v31, %v1202_v34  ;;  %v1152_v39 = vadd.f32 %v1144_v36, %v1127_v35 }
 0x1f5   : > { %v1239_v41 = vadd.f32 %v1980_v37, %v1227_v15  ;;  %v1178_v42 = vadd.f32 %v1170_v32, %v1152_v39 }
 0x1f7   : > { %v1247_v22 = vmax.f32 %v1239_v41, 0.0  ;;  %v1203_v44 = vadd.f32 %v1195_v40, %v1178_v42 }
 0x1f9   : > { %1455 = vmatmul.msk.f32.gmra.mxu2 %vm970_vm12, %v1247_v22  ;;  %v1228_v19 = vadd.f32 %v1220_v43, %v1203_v44 }
 0x1fb   : > { %v1240_v45 = vadd.f32 %v1980_v37, %v1228_v19 }
 0x1fd   : > { %v1248_v47 = vmax.f32 %v1240_v45, 0.0 }
 0x201   : > { %1456 = vmatmul.msk.f32.gmra.mxu2 %vm970_vm12, %v1248_v47 }
 0x202   : > { %v1301_v24 = vpop.f32.mrf.mxu1 }
 0x203   : > { %v1302_v48 = vadd.f32 %v1487_v18, %v1301_v24 }
 0x205   : > { %1323 = vst [vmem:[%s2069_s18 + $0x8] sm:$0xff] %v1302_v48 }
 0x219   : > { %v1304_v49 = vpop.f32.mrf.mxu1 }
 0x21a   : > { %v1305_v50 = vadd.f32 %v1487_v18, %v1304_v49 }
 0x21c   : > { %1324 = vst [vmem:[%s2069_s18 + $0x10] sm:$0xff] %v1305_v50 }
 0x242   : > { %v1307_v29 = vpop.f32.mrf.mxu1 }
 0x243   : > { %v1308_v51 = vadd.f32 %v1487_v18, %v1307_v29 }
 0x245   : > { %1325 = vst [vmem:[%s2069_s18 + $0x18] sm:$0xff] %v1308_v51 }
 0x24e   : > { %v1310_v52 = vpop.f32.mrf.mxu2 }
 0x24f   : > { %v1311_v53 = vadd.f32 %v1487_v18, %v1310_v52 }
 0x251   : > { %1326 = vst [vmem:[%s2069_s18 + $0x20] sm:$0xff] %v1311_v53 }
 0x265   : > { %v1313_v54 = vpop.f32.mrf.mxu2 }
 0x266   : > { %v1314_v37 = vadd.f32 %v1487_v18, %v1313_v54 }
 0x268   : > { %1327 = vst [vmem:[%s2069_s18 + $0x28] sm:$0xff] %v1314_v37 }
 0x27c   : > { %v1316_v55 = vpop.f32.mrf.mxu2 }
 0x27d   : > { %v1317_v56 = vadd.f32 %v1487_v18, %v1316_v55 }
 0x27f   : > { %1328 = vst [vmem:[%s2069_s18 + $0x30] sm:$0xff] %v1317_v56 }
 0x284   : > { %v1319_v57 = vpop.f32.mrf.mxu2 }
 0x285   : > { %v1320_v0 = vadd.f32 %v1487_v18, %v1319_v57 }
 0x287   : > { %1329 = vst [vmem:[%s2069_s18 + $0x38] sm:$0xff] %v1320_v0 }
 0x288 PF: > { %s17_s24 = sadd.s32 1, %s1494_s24  }
 0x289   : > { %p14_p4 = scmp.ge.s32.totalorder %s17_s24, 4  }
 0x28b   :  { %16 = sbr.rel (!%p14_p4) target bundleno = 1 (0x1), region = 151 }

</bundles_post_ra>
